<compile_context>
chip_gen: v5e
topology: v5e:2x2
jax: 0.10.0
libtpu: 0.0.40
codegen_flags: <defaults>
</compile_context>

<pallas_src>
import jax
import jax.numpy as jnp
from jax import lax
from jax.experimental import pallas as pl
from jax.experimental.pallas import tpu as pltpu


def _round_up(x, m):
    return (x + m - 1) // m * m


# ---------------------------------------------------------------------------
# Encoder: heads = x @ W_fused + b_fused ;  z = mean + noise * exp(log_std)
# ---------------------------------------------------------------------------
def _encoder_kernel(x_ref, wf_ref, bf_ref, noise_ref, z_ref, zlo_ref):
    # Single fused matmul (W_fused already contains W1 @ [Wm|Ws]).
    heads = jnp.dot(x_ref[...], wf_ref[...],
                    preferred_element_type=jnp.float32) + bf_ref[...]
    h2 = noise_ref.shape[-1]
    mean = heads[:, :h2]
    log_std = heads[:, h2:]
    z = mean + noise_ref[...] * jnp.exp(log_std)
    z_ref[...] = z.astype(z_ref.dtype)        # f32 representation output
    zlo_ref[...] = z.astype(zlo_ref.dtype)    # bf16 copy for the decoder


def _encode(features, w_fused, b_fused, noise, *, block_rows=256,
            matmul_dtype=jnp.bfloat16):
    n, d = features.shape
    h2 = noise.shape[1]
    two_h2 = w_fused.shape[1]
    tm = n if n <= block_rows else block_rows        # cap row tile; cdiv grid
    grid = (pl.cdiv(n, tm),)
    const = lambda shape: pl.BlockSpec(shape, lambda i: (0, 0))
    z, z_lo = pl.pallas_call(
        _encoder_kernel,
        out_shape=(jax.ShapeDtypeStruct((n, h2), jnp.float32),
                   jax.ShapeDtypeStruct((n, h2), matmul_dtype)),
        grid=grid,
        in_specs=[
            pl.BlockSpec((tm, d), lambda i: (i, 0)),       # feature row-block
            const((d, two_h2)),                            # W_fused (resident)
            const((1, two_h2)),                            # b_fused
            pl.BlockSpec((tm, h2), lambda i: (i, 0)),      # noise row-block
        ],
        out_specs=(pl.BlockSpec((tm, h2), lambda i: (i, 0)),
                   pl.BlockSpec((tm, h2), lambda i: (i, 0))),
        compiler_params=pltpu.CompilerParams(
            dimension_semantics=("parallel",)),
    )(features, w_fused, b_fused, noise)
    return z, z_lo


# ---------------------------------------------------------------------------
# Decoder: pre[i, j] tile = sigmoid(z_i @ z_j.T), tiled over the (N, N) output
# ---------------------------------------------------------------------------
def _decoder_kernel(zi_ref, zj_ref, pre_ref):
    # Contract the feature axis of BOTH operands -> no z.T temporary / XLU
    # transpose; bf16 operands, f32 accumulation on the MXU.
    adj = lax.dot_general(
        zi_ref[...], zj_ref[...],
        dimension_numbers=(((1,), (1,)), ((), ())),
        preferred_element_type=jnp.float32)
    # Sigmoid in f32 (portable to v5e: no bf16 VPU/EUP), cast only at the
    # store.  bf16 store halves the HBM writeback of this writeback-bound
    # kernel on all generations.
    pre_ref[...] = jax.nn.sigmoid(adj).astype(pre_ref.dtype)


def _decode(z_lo, *, block_m=256, block_n=1024, out_dtype=jnp.bfloat16):
    n, h2 = z_lo.shape

    # Row tile: keep >= 2 row programs whenever possible so v7x's 2 TCs both
    # get work (8-aligned so ragged edges stay legal block shapes).
    if n > block_m:
        tm = block_m
    else:
        tm = _round_up(max(1, (n + 1) // 2), 8)
        if tm >= n:
            tm = n                      # tiny N: single full-extent block
    # Lane tile: large & lane-dense (multiple of 128) or the full extent.
    tn = block_n if n > block_n else n

    grid = (pl.cdiv(n, tm), pl.cdiv(n, tn))   # ragged edges handled in-kernel
    return pl.pallas_call(
        _decoder_kernel,
        out_shape=jax.ShapeDtypeStruct((n, n), out_dtype),
        grid=grid,
        in_specs=[
            pl.BlockSpec((tm, h2), lambda i, j: (i, 0)),   # z row-block
            pl.BlockSpec((tn, h2), lambda i, j: (j, 0)),   # z col-block
        ],
        out_specs=pl.BlockSpec((tm, tn), lambda i, j: (i, j)),  # lane-dense
        compiler_params=pltpu.CompilerParams(
            dimension_semantics=("parallel", "parallel")),  # v7x: 2 TCs
    )(z_lo, z_lo)


# ---------------------------------------------------------------------------
# Wrapper
# ---------------------------------------------------------------------------
def vae_forward(features, w1, b1, wm, bm, ws, bs, noise,
                *, pre_dtype=jnp.bfloat16, decoder_matmul_dtype=jnp.bfloat16):
    # TODO(synk): F.dropout(training=True) in InnerProductDecoder is not
    # reproduced; eval-mode (identity) semantics are used.
    #
    # Encoder collapse (exact: there is no nonlinearity between hidden1 and
    # the heads in the module):
    #   (x @ W1 + b1) @ [Wm|Ws] + [bm|bs]
    #     == x @ (W1 @ [Wm|Ws]) + (b1 @ [Wm|Ws] + [bm|bs])
    w_heads = jnp.concatenate([wm, ws], axis=1)                    # (H1, 2*H2)
    b_heads = jnp.concatenate([bm, bs], axis=1)                    # (1, 2*H2)
    w_fused = jnp.dot(w1, w_heads, precision="highest")            # (D, 2*H2)
    b_fused = jnp.dot(b1, w_heads, precision="highest") + b_heads  # (1, 2*H2)

    z, z_lo = _encode(features, w_fused, b_fused, noise,
                      matmul_dtype=decoder_matmul_dtype)
    # pre in bf16 by default (precision tradeoff documented to the consumer);
    # pass pre_dtype=jnp.float32 if full precision is required.
    pre = _decode(z_lo, out_dtype=pre_dtype)
    return pre, z


def init_linear(key, fan_in, fan_out):
    # Deterministic init mimicking torch.nn.Linear default (U(+-1/sqrt(fan_in))).
    kw, kb = jax.random.split(key)
    bound = 1.0 / jnp.sqrt(fan_in)
    w = jax.random.uniform(kw, (fan_in, fan_out), jnp.float32, -bound, bound)
    b = jax.random.uniform(kb, (1, fan_out), jnp.float32, -bound, bound)
    return w, b


if __name__ == "__main__":
    # Small shapes consistent with the module: (N, input_dim) node features.
    N, input_dim, hidden_dim1, hidden_dim2 = 512, 32, 32, 16

    key = jax.random.PRNGKey(0)
    k_feat, k_h1, k_zm, k_zs, k_noise = jax.random.split(key, 5)

    features = jax.random.normal(k_feat, (N, input_dim), jnp.float32)
    w1, b1 = init_linear(k_h1, input_dim, hidden_dim1)
    wm, bm = init_linear(k_zm, hidden_dim1, hidden_dim2)
    ws, bs = init_linear(k_zs, hidden_dim1, hidden_dim2)
    noise = jax.random.normal(k_noise, (N, hidden_dim2), jnp.float32)

    pre, z = jax.jit(vae_forward)(features, w1, b1, wm, bm, ws, bs, noise)
    jax.block_until_ready((pre, z))

    # --- Pure-JAX reference checks (structural correctness) ---
    # Tolerances are loose enough to absorb (a) the exact-but-reassociated
    # fused-weight encoder math, (b) backend-default f32 matmul precision
    # differences between XLA and Mosaic, and (c) the deliberate bf16
    # decoder operands / bf16 pre output.
    h_ref = jnp.dot(features, w1, precision="highest") + b1
    mean_ref = jnp.dot(h_ref, wm, precision="highest") + bm
    log_std_ref = jnp.dot(h_ref, ws, precision="highest") + bs
    z_ref = mean_ref + noise * jnp.exp(log_std_ref)
    assert jnp.allclose(z, z_ref, atol=2e-2, rtol=2e-2), "z mismatch"

    z_q = z_ref.astype(jnp.bfloat16).astype(jnp.float32)
    pre_ref = jax.nn.sigmoid(jnp.dot(z_q, z_q.T, precision="highest"))
    assert jnp.allclose(pre.astype(jnp.float32), pre_ref,
                        atol=5e-2, rtol=0.0), "pre mismatch"

    assert pre.shape == (N, N) and z.shape == (N, hidden_dim2)
    assert bool(jnp.all(jnp.isfinite(pre))) and bool(jnp.all(jnp.isfinite(z)))

    print("KERNEL_OK")
</pallas_src>

<mosaic_0001>
module attributes {stable_mosaic.version = 11 : i64} {
  func.func @_encoder_kernel(%arg0: i32, %arg1: memref<256x32xf32, #tpu.memory_space<vmem>>, %arg2: memref<32x32xf32, #tpu.memory_space<vmem>>, %arg3: memref<1x32xf32, #tpu.memory_space<vmem>>, %arg4: memref<256x16xf32, #tpu.memory_space<vmem>>, %arg5: memref<256x16xf32, #tpu.memory_space<vmem>>, %arg6: memref<256x16xbf16, #tpu.memory_space<vmem>>) attributes {dimension_semantics = [#tpu.dimension_semantics<parallel>], iteration_bounds = array<i64: 2>, scalar_prefetch = 0 : i64, scratch_operands = 0 : i64, tpu.core_type = #tpu.core_type<tc>, window_params = [{transform_indices = @transform_0, window_bounds = array<i64: 256, 32>}, {pipeline_mode = #tpu.pipeline_mode<synchronous>, transform_indices = @transform_1, window_bounds = array<i64: 32, 32>}, {pipeline_mode = #tpu.pipeline_mode<synchronous>, transform_indices = @transform_2, window_bounds = array<i64: 1, 32>}, {transform_indices = @transform_3, window_bounds = array<i64: 256, 16>}, {transform_indices = @transform_4, window_bounds = array<i64: 256, 16>}, {transform_indices = @transform_5, window_bounds = array<i64: 256, 16>}]} {
    %c0 = arith.constant 0 : index
    %c0_0 = arith.constant 0 : index
    %0 = vector.load %arg1[%c0, %c0_0] : memref<256x32xf32, #tpu.memory_space<vmem>>, vector<256x32xf32>
    %c0_1 = arith.constant 0 : index
    %c0_2 = arith.constant 0 : index
    %1 = vector.load %arg2[%c0_1, %c0_2] : memref<32x32xf32, #tpu.memory_space<vmem>>, vector<32x32xf32>
    %cst = arith.constant dense<0.000000e+00> : vector<256x32xf32>
    %2 = tpu.matmul %0, %1, %cst {dimension_numbers = #tpu.dot_dimension_numbers<[1], [0], [0], [1], [0, 0, 1, 1], [], []>} : vector<256x32xf32>, vector<32x32xf32>, vector<256x32xf32> -> vector<256x32xf32>
    %c0_3 = arith.constant 0 : index
    %c0_4 = arith.constant 0 : index
    %3 = vector.load %arg3[%c0_3, %c0_4] : memref<1x32xf32, #tpu.memory_space<vmem>>, vector<1x32xf32>
    %4 = vector.broadcast %3 : vector<1x32xf32> to vector<256x32xf32>
    %5 = arith.addf %2, %4 : vector<256x32xf32>
    %6 = vector.extract_strided_slice %5 {offsets = [0, 0], sizes = [256, 16], strides = [1, 1]} : vector<256x32xf32> to vector<256x16xf32>
    %7 = vector.extract_strided_slice %5 {offsets = [0, 16], sizes = [256, 16], strides = [1, 1]} : vector<256x32xf32> to vector<256x16xf32>
    %c0_5 = arith.constant 0 : index
    %c0_6 = arith.constant 0 : index
    %8 = vector.load %arg4[%c0_5, %c0_6] : memref<256x16xf32, #tpu.memory_space<vmem>>, vector<256x16xf32>
    %9 = math.exp %7 : vector<256x16xf32>
    %10 = arith.mulf %8, %9 : vector<256x16xf32>
    %11 = arith.addf %6, %10 : vector<256x16xf32>
    %c0_7 = arith.constant 0 : index
    %c0_8 = arith.constant 0 : index
    %12 = vector.load %arg5[%c0_7, %c0_8] : memref<256x16xf32, #tpu.memory_space<vmem>>, vector<256x16xf32>
    tpu.vector_store %arg5[%c0_7, %c0_8], %11 {strides = array<i32>} : memref<256x16xf32, #tpu.memory_space<vmem>>, vector<256x16xf32>,
    %13 = arith.truncf %11 : vector<256x16xf32> to vector<256x16xbf16>
    %c0_9 = arith.constant 0 : index
    %c0_10 = arith.constant 0 : index
    %14 = vector.load %arg6[%c0_9, %c0_10] : memref<256x16xbf16, #tpu.memory_space<vmem>>, vector<256x16xbf16>
    tpu.vector_store %arg6[%c0_9, %c0_10], %13 {strides = array<i32>} : memref<256x16xbf16, #tpu.memory_space<vmem>>, vector<256x16xbf16>,
    return
  }
  func.func @transform_0(%arg0: i32) -> (i32, i32) {
    %c0_i32 = arith.constant 0 : i32
    %c0_i32_0 = arith.constant 0 : i32
    return %arg0, %c0_i32 : i32, i32
  }
  func.func @transform_1(%arg0: i32) -> (i32, i32) {
    %c0_i32 = arith.constant 0 : i32
    %c0_i32_0 = arith.constant 0 : i32
    %c0_i32_1 = arith.constant 0 : i32
    return %c0_i32, %c0_i32_0 : i32, i32
  }
  func.func @transform_2(%arg0: i32) -> (i32, i32) {
    %c0_i32 = arith.constant 0 : i32
    %c0_i32_0 = arith.constant 0 : i32
    %c0_i32_1 = arith.constant 0 : i32
    return %c0_i32, %c0_i32_0 : i32, i32
  }
  func.func @transform_3(%arg0: i32) -> (i32, i32) {
    %c0_i32 = arith.constant 0 : i32
    %c0_i32_0 = arith.constant 0 : i32
    return %arg0, %c0_i32 : i32, i32
  }
  func.func @transform_4(%arg0: i32) -> (i32, i32) {
    %c0_i32 = arith.constant 0 : i32
    %c0_i32_0 = arith.constant 0 : i32
    return %arg0, %c0_i32 : i32, i32
  }
  func.func @transform_5(%arg0: i32) -> (i32, i32) {
    %c0_i32 = arith.constant 0 : i32
    %c0_i32_0 = arith.constant 0 : i32
    return %arg0, %c0_i32 : i32, i32
  }
}

module attributes {stable_mosaic.version = 11 : i64} {
  func.func @_decoder_kernel(%arg0: i32, %arg1: i32, %arg2: memref<256x16xbf16, #tpu.memory_space<vmem>>, %arg3: memref<512x16xbf16, #tpu.memory_space<vmem>>, %arg4: memref<256x512xbf16, #tpu.memory_space<vmem>>) attributes {dimension_semantics = [#tpu.dimension_semantics<parallel>, #tpu.dimension_semantics<parallel>], iteration_bounds = array<i64: 2, 1>, scalar_prefetch = 0 : i64, scratch_operands = 0 : i64, tpu.core_type = #tpu.core_type<tc>, window_params = [{transform_indices = @transform_0, window_bounds = array<i64: 256, 16>}, {transform_indices = @transform_1, window_bounds = array<i64: 512, 16>}, {transform_indices = @transform_2, window_bounds = array<i64: 256, 512>}]} {
    %c0 = arith.constant 0 : index
    %c0_0 = arith.constant 0 : index
    %0 = vector.load %arg2[%c0, %c0_0] : memref<256x16xbf16, #tpu.memory_space<vmem>>, vector<256x16xbf16>
    %c0_1 = arith.constant 0 : index
    %c0_2 = arith.constant 0 : index
    %1 = vector.load %arg3[%c0_1, %c0_2] : memref<512x16xbf16, #tpu.memory_space<vmem>>, vector<512x16xbf16>
    %cst = arith.constant dense<0.000000e+00> : vector<256x512xf32>
    %2 = tpu.matmul %0, %1, %cst {dimension_numbers = #tpu.dot_dimension_numbers<[1], [1], [0], [0], [0, 0, 1, 0], [], []>} : vector<256x16xbf16>, vector<512x16xbf16>, vector<256x512xf32> -> vector<256x512xf32>
    %3 = arith.negf %2 : vector<256x512xf32>
    %4 = math.exp %3 : vector<256x512xf32>
    %cst_3 = arith.constant 1.000000e+00 : f32
    %5 = vector.broadcast %cst_3 : f32 to vector<256x512xf32>
    %6 = arith.addf %5, %4 : vector<256x512xf32>
    %7 = arith.divf %5, %6 : vector<256x512xf32>
    %8 = arith.truncf %7 : vector<256x512xf32> to vector<256x512xbf16>
    %c0_4 = arith.constant 0 : index
    %c0_5 = arith.constant 0 : index
    %9 = vector.load %arg4[%c0_4, %c0_5] : memref<256x512xbf16, #tpu.memory_space<vmem>>, vector<256x512xbf16>
    tpu.vector_store %arg4[%c0_4, %c0_5], %8 {strides = array<i32>} : memref<256x512xbf16, #tpu.memory_space<vmem>>, vector<256x512xbf16>,
    return
  }
  func.func @transform_0(%arg0: i32, %arg1: i32) -> (i32, i32) {
    %c0_i32 = arith.constant 0 : i32
    %c0_i32_0 = arith.constant 0 : i32
    return %arg0, %c0_i32 : i32, i32
  }
  func.func @transform_1(%arg0: i32, %arg1: i32) -> (i32, i32) {
    %c0_i32 = arith.constant 0 : i32
    %c0_i32_0 = arith.constant 0 : i32
    return %arg1, %c0_i32 : i32, i32
  }
  func.func @transform_2(%arg0: i32, %arg1: i32) -> (i32, i32) {
    %c0_i32 = arith.constant 0 : i32
    return %arg0, %arg1 : i32, i32
  }
}

</mosaic_0001>

<bundles_post_ra>
// kernel: vae_forward.2
= control target key start
LH: loop header
LB: loop body
LE: loop exit
PB: predicated region body
PF: predicated region fallthrough
CT: control target
= control target key end

     0   :  { %s1174_s18 = smov 0   ;;  %s1647_s0 = inlined_call_operand.vmem [shape: f32[512,32], index: 0, kind: input, shape index: {}]   ;;  %s1648_s1 = inlined_call_operand.vmem [shape: f32[32,32], index: 1, kind: input, shape index: {}]   ;;  %s1649_s2 = inlined_call_operand.vmem [shape: f32[1,32], index: 2, kind: input, shape index: {}]   ;;  %s1650_s3 = inlined_call_operand.vmem [shape: f32[512,16], index: 3, kind: input, shape index: {}]   ;;  %s1651_s4 = inlined_call_operand.vmem [shape: f32[512,16], index: 4, kind: output, shape index: {0}]   ;;  %s1652_s5 = inlined_call_operand.vmem [shape: bf16[512,16], index: 5, kind: output, shape index: {1}]  }
   0x1 LB: > { %s1002_s19 = sadd.s32 4294967295, %s1141_s18   ;;  %p1006_p0 = scmp.ge.s32.totalorder %s1141_s18, 1  ;;  %s1141_s18 = sphi %s1174_s18, %s16_s18  }
   0x2   : > { %p202_p1 = scmp.lt.s32.totalorder %s1141_s18, 3 }
   0x4   : > { %p203_p2 = pnand %p1006_p0, %p202_p1 }
   0x5   : > { %s1007_s24 = sshll.u32 (!%p203_p2), %s1002_s19, 5  ;;  %s1143_s10 = smov (!%p203_p2), 112  }
   0x6   : > { %206 = sbr.rel (%p203_p2) target bundleno = 367 (0x16f), region = 36  ;;  %p241_p3 = scmp.lt.s32.totalorder (!%p203_p2), %s1007_s24, 63 }
   0xb   : > { %v299_v0 = vld [vmem:[%s1648_s1 + $0x18] sm:$0xff]  ;;  %v298_v1 = vld [vmem:[%s1648_s1 + $0x10] sm:$0xff]  ;;  %v297_v2 = vld [vmem:[%s1648_s1 + $0x8] sm:$0xff]  ;;  %s1654_s24 = smov (!%p241_p3, %s1007_s24), 63  ;;  %vm304_vm0 = vcmask 261120   ;;  %vm802_vm1 = vcmask 130048  }
   0xc   : > { %413 = vmatpush.msra.mxu0 %v299_v0  ;;  %1049 = vmatpush.msra.mxu1 %v299_v0  ;;  %v296_v3 = vld [vmem:[%s1648_s1] sm:$0xff]  ;;  %s1197_s29 = sshll.u32 %s1654_s24, 3  ;;  %s1014_s14 = sshll.u32 %s1654_s24, 2  ;;  %vm867_vm2 = vcmask 125952  }
   0xd   : > { %1050 = vmatpush.msra.mxu2 %v299_v0  ;;  %1051 = vmatpush.msra.mxu3 %v299_v0  ;;  %s1203_s7 = scalar_lea.vmem %s1647_s0, %s1197_s29  ;;  %v1272_v36 = vld [vmem:[%s1649_s2] ss:$0 sm:$0xff]  ;;  %s1437_s13 = scalar_lea.vmem %s1650_s3, %s1197_s29 }
   0xe   : > { %414 = vmatpush.msra.mxu0 %v298_v1  ;;  %1052 = vmatpush.msra.mxu1 %v298_v1  ;;  %v264_v4 = vld [vmem:[%s1203_s7] sm:$0xff]  ;;  %v265_v8 = vld [vmem:[%s1203_s7 + $0x8] sm:$0xff]  ;;  %v266_v12 = vld [vmem:[%s1203_s7 + $0x10] sm:$0xff]  ;;  %s1446_s17 = scalar_lea.vmem %s1651_s4, %s1197_s29  ;;  %s1452_s21 = scalar_lea.vmem %s1652_s5, %s1014_s14 }
   0xf   : > { %1053 = vmatpush.msra.mxu2 %v298_v1  ;;  %1054 = vmatpush.msra.mxu3 %v298_v1  ;;  %v272_v5 = vld [vmem:[%s1203_s7 + $0x40] sm:$0xff]  ;;  %v273_v9 = vld [vmem:[%s1203_s7 + $0x48] sm:$0xff]  ;;  %v274_v13 = vld [vmem:[%s1203_s7 + $0x50] sm:$0xff] }
  0x10   : > { %415 = vmatpush.msra.mxu0 %v297_v2  ;;  %1055 = vmatpush.msra.mxu1 %v297_v2  ;;  %v280_v6 = vld [vmem:[%s1203_s7 + $0x80] sm:$0xff]  ;;  %v281_v10 = vld [vmem:[%s1203_s7 + $0x88] sm:$0xff]  ;;  %v290_v14 = vld [vmem:[%s1203_s7 + $0xd0] sm:$0xff] }
  0x11   : > { %1056 = vmatpush.msra.mxu2 %v297_v2  ;;  %1057 = vmatpush.msra.mxu3 %v297_v2  ;;  %v288_v7 = vld [vmem:[%s1203_s7 + $0xc0] sm:$0xff]  ;;  %v289_v11 = vld [vmem:[%s1203_s7 + $0xc8] sm:$0xff]  ;;  %v282_v15 = vld [vmem:[%s1203_s7 + $0x90] sm:$0xff] }
  0x12   : > { %416 = vmatpush.msra.mxu0 %v296_v3  ;;  %1058 = vmatpush.msra.mxu1 %v296_v3  ;;  %v267_v16 = vld [vmem:[%s1203_s7 + $0x18] sm:$0xff]  ;;  %v268_v20 = vld [vmem:[%s1203_s7 + $0x20] sm:$0xff]  ;;  %v269_v24 = vld [vmem:[%s1203_s7 + $0x28] sm:$0xff] }
  0x13   : > { %1059 = vmatpush.msra.mxu2 %v296_v3  ;;  %1060 = vmatpush.msra.mxu3 %v296_v3  ;;  %v275_v17 = vld [vmem:[%s1203_s7 + $0x58] sm:$0xff]  ;;  %v276_v21 = vld [vmem:[%s1203_s7 + $0x60] sm:$0xff]  ;;  %v277_v25 = vld [vmem:[%s1203_s7 + $0x68] sm:$0xff] }
  0x14   : > { %1015 = vmatmul.msk.f32.vlgmr.msra.gmra.mxu0 %vm304_vm0, %v264_v4  ;;  %1023 = vmatmul.msk.f32.vlgmr.msra.gmra.mxu1 %vm304_vm0, %v272_v5  ;;  %v283_v18 = vld [vmem:[%s1203_s7 + $0x98] sm:$0xff]  ;;  %v284_v22 = vld [vmem:[%s1203_s7 + $0xa0] sm:$0xff]  ;;  %v285_v26 = vld [vmem:[%s1203_s7 + $0xa8] sm:$0xff] }
  0x15   : > { %1031 = vmatmul.msk.f32.vlgmr.msra.gmra.mxu2 %vm304_vm0, %v280_v6  ;;  %1039 = vmatmul.msk.f32.vlgmr.msra.gmra.mxu3 %vm304_vm0, %v288_v7  ;;  %v291_v19 = vld [vmem:[%s1203_s7 + $0xd8] sm:$0xff]  ;;  %v292_v23 = vld [vmem:[%s1203_s7 + $0xe0] sm:$0xff]  ;;  %v293_v27 = vld [vmem:[%s1203_s7 + $0xe8] sm:$0xff] }
  0x16   : > { %v278_v28 = vld [vmem:[%s1203_s7 + $0x70] sm:$0xff]  ;;  %v279_v32 = vld [vmem:[%s1203_s7 + $0x78] sm:$0xff] }
  0x17   : > { %v270_v29 = vld [vmem:[%s1203_s7 + $0x30] sm:$0xff]  ;;  %v271_v33 = vld [vmem:[%s1203_s7 + $0x38] sm:$0xff] }
  0x18   : > { %v286_v30 = vld [vmem:[%s1203_s7 + $0xb0] sm:$0xff]  ;;  %v287_v34 = vld [vmem:[%s1203_s7 + $0xb8] sm:$0xff] }
  0x19   : > { %v294_v31 = vld [vmem:[%s1203_s7 + $0xf0] sm:$0xff]  ;;  %v295_v35 = vld [vmem:[%s1203_s7 + $0xf8] sm:$0xff] }
  0x1c   : > { %1016 = vmatmul.msk.f32.gmra.mxu0 %vm304_vm0, %v265_v8  ;;  %1024 = vmatmul.msk.f32.gmra.mxu1 %vm304_vm0, %v273_v9 }
  0x1d   : > { %1032 = vmatmul.msk.f32.gmra.mxu2 %vm304_vm0, %v281_v10  ;;  %1040 = vmatmul.msk.f32.gmra.mxu3 %vm304_vm0, %v289_v11 }
  0x24   : > { %1017 = vmatmul.msk.f32.gmra.mxu0 %vm304_vm0, %v266_v12  ;;  %1025 = vmatmul.msk.f32.gmra.mxu1 %vm304_vm0, %v274_v13 }
  0x25   : > { %1041 = vmatmul.msk.f32.gmra.mxu3 %vm304_vm0, %v290_v14  ;;  %1033 = vmatmul.msk.f32.gmra.mxu2 %vm304_vm0, %v282_v15 }
  0x2c   : > { %1018 = vmatmul.msk.f32.gmra.mxu0 %vm304_vm0, %v267_v16  ;;  %1026 = vmatmul.msk.f32.gmra.mxu1 %vm304_vm0, %v275_v17 }
  0x2d   : > { %1034 = vmatmul.msk.f32.gmra.mxu2 %vm304_vm0, %v283_v18  ;;  %1042 = vmatmul.msk.f32.gmra.mxu3 %vm304_vm0, %v291_v19 }
  0x34   : > { %1019 = vmatmul.msk.f32.gmra.mxu0 %vm304_vm0, %v268_v20  ;;  %1027 = vmatmul.msk.f32.gmra.mxu1 %vm304_vm0, %v276_v21 }
  0x35   : > { %1035 = vmatmul.msk.f32.gmra.mxu2 %vm304_vm0, %v284_v22  ;;  %1043 = vmatmul.msk.f32.gmra.mxu3 %vm304_vm0, %v292_v23 }
  0x3c   : > { %1020 = vmatmul.msk.f32.gmra.mxu0 %vm304_vm0, %v269_v24  ;;  %1028 = vmatmul.msk.f32.gmra.mxu1 %vm304_vm0, %v277_v25 }
  0x3d   : > { %1036 = vmatmul.msk.f32.gmra.mxu2 %vm304_vm0, %v285_v26  ;;  %1044 = vmatmul.msk.f32.gmra.mxu3 %vm304_vm0, %v293_v27 }
  0x44   : > { %1029 = vmatmul.msk.f32.gmra.mxu1 %vm304_vm0, %v278_v28  ;;  %1021 = vmatmul.msk.f32.gmra.mxu0 %vm304_vm0, %v270_v29 }
  0x45   : > { %1037 = vmatmul.msk.f32.gmra.mxu2 %vm304_vm0, %v286_v30  ;;  %1045 = vmatmul.msk.f32.gmra.mxu3 %vm304_vm0, %v294_v31 }
  0x4c   : > { %1030 = vmatmul.msk.f32.gmra.mxu1 %vm304_vm0, %v279_v32  ;;  %1022 = vmatmul.msk.f32.gmra.mxu0 %vm304_vm0, %v271_v33 }
  0x4d   : > { %1038 = vmatmul.msk.f32.gmra.mxu2 %vm304_vm0, %v287_v34  ;;  %1046 = vmatmul.msk.f32.gmra.mxu3 %vm304_vm0, %v295_v35 }
  0x91   : > { %v418_v37 = vpop.f32.mrf.mxu0  ;;  %v442_v38 = vpop.f32.mrf.mxu1 }
  0x92   : > { %v1275_v39 = vadd.f32 %v1272_v36, %v418_v37  ;;  %v1278_v40 = vadd.f32 %v1272_v36, %v442_v38 }
  0x94   : > { %v546_v41 = vmul.f32 1.442695, %v1275_v39  ;;  %v562_v42 = vmul.f32 1.442695, %v1278_v40 }
  0x96   : > { %1071 = vpow2.f32 %v546_v41 }
  0x97   : > { %1073 = vpow2.f32 %v562_v42 }
  0x98   : > { %v466_v43 = vpop.f32.mrf.mxu2  ;;  %v490_v44 = vpop.f32.mrf.mxu3 }
  0x99   : > { %v1283_v45 = vadd.f32 %v1272_v36, %v466_v43  ;;  %v1286_v46 = vadd.f32 %v1272_v36, %v490_v44  ;;  %v421_v47 = vpop.f32.mrf.mxu0  ;;  %v445_v48 = vpop.f32.mrf.mxu1 }
  0x9a   : > { %v1291_v52 = vadd.f32 %v1272_v36, %v421_v47  ;;  %v1310_v2 = vadd.f32 %v1272_v36, %v445_v48 }
  0x9b   : > { %v578_v49 = vmul.f32 1.442695, %v1283_v45  ;;  %v594_v50 = vmul.f32 1.442695, %v1286_v46 }
  0x9c   : > { %v1072_v51 = vpop.eup %1071  ;;  %v548_v54 = vmul.f32 1.442695, %v1291_v52  ;;  %v564_v10 = vmul.f32 1.442695, %v1310_v2 }
  0x9d   : > { %v1074_v53 = vpop.eup %1073  ;;  %1075 = vpow2.f32 %v578_v49  ;;  %642 = vrot.lane.b32.xlu0 %v1072_v51, %s1143_s10 }
  0x9e   : > { %1077 = vpow2.f32 %v594_v50  ;;  %658 = vrot.lane.b32.xlu2 %v1074_v53, %s1143_s10 }
  0x9f   : > { %1079 = vpow2.f32 %v548_v54 }
  0xa0   : > { %v469_v55 = vpop.f32.mrf.mxu2  ;;  %v493_v56 = vpop.f32.mrf.mxu3 }
  0xa1   : > { %v1297_v57 = vadd.f32 %v1272_v36, %v469_v55  ;;  %v1300_v58 = vadd.f32 %v1272_v36, %v493_v56  ;;  %v424_v59 = vpop.f32.mrf.mxu0  ;;  %v448_v60 = vpop.f32.mrf.mxu1 }
  0xa2   : > { %v1306_v1 = vadd.f32 %v1272_v36, %v424_v59  ;;  %v1318_v11 = vadd.f32 %v1272_v36, %v448_v60 }
  0xa3   : > { %v1076_v61 = vpop.eup %1075  ;;  %v580_v62 = vmul.f32 1.442695, %v1297_v57  ;;  %v596_v63 = vmul.f32 1.442695, %v1300_v58 }
  0xa4   : > { %v1078_v0 = vpop.eup %1077  ;;  %674 = vrot.lane.b32.xlu1 %v1076_v61, %s1143_s10  ;;  %v550_v3 = vmul.f32 1.442695, %v1306_v1  ;;  %v566_v17 = vmul.f32 1.442695, %v1318_v11 }
  0xa5   : > { %1081 = vpow2.f32 %v580_v62  ;;  %690 = vrot.lane.b32.xlu0 %v1078_v0, %s1143_s10  ;;  %v1080_v9 = vpop.eup %1079 }
  0xa6   : > { %1083 = vpow2.f32 %v596_v63 }
  0xa7   : > { %1085 = vpow2.f32 %v550_v3 }
  0xa8   : > { %v496_v4 = vpop.f32.mrf.mxu3  ;;  %v472_v5 = vpop.f32.mrf.mxu2 }
  0xa9   : > { %v1314_v6 = vadd.f32 %v1272_v36, %v496_v4  ;;  %v427_v7 = vpop.f32.mrf.mxu0  ;;  %v451_v8 = vpop.f32.mrf.mxu1  ;;  %v1326_v16 = vadd.f32 %v1272_v36, %v472_v5 }
  0xaa   : > { %v1322_v14 = vadd.f32 %v1272_v36, %v451_v8  ;;  %v1334_v24 = vadd.f32 %v1272_v36, %v427_v7 }
  0xab   : > { %v1082_v12 = vpop.eup %1081  ;;  %v598_v13 = vmul.f32 1.442695, %v1314_v6  ;;  %v582_v19 = vmul.f32 1.442695, %v1326_v16 }
  0xac   : > { %v1084_v15 = vpop.eup %1083  ;;  %676 = vrot.lane.b32.xlu2 %v1082_v12, %s1143_s10  ;;  %v568_v18 = vmul.f32 1.442695, %v1322_v14  ;;  %v552_v30 = vmul.f32 1.442695, %v1334_v24 }
  0xad   : > { %1087 = vpow2.f32 %v598_v13  ;;  %692 = vrot.lane.b32.xlu1 %v1084_v15, %s1143_s10  ;;  %644 = vrot.lane.b32.xlu0 %v1080_v9, %s1143_s10  ;;  %v1086_v23 = vpop.eup %1085 }
  0xae   : > { %1089 = vpow2.f32 %v564_v10 }
  0xaf   : > { %1091 = vpow2.f32 %v566_v17 }
  0xb0   : > { %v475_v20 = vpop.f32.mrf.mxu2  ;;  %v499_v22 = vpop.f32.mrf.mxu3  ;;  %1093 = vpow2.f32 %v568_v18 }
  0xb1   : > { %v430_v21 = vpop.f32.mrf.mxu0  ;;  %1095 = vpow2.f32 %v582_v19  ;;  %v1341_v28 = vadd.f32 %v1272_v36, %v499_v22  ;;  %v454_v29 = vpop.f32.mrf.mxu1  ;;  %v1349_v38 = vadd.f32 %v1272_v36, %v475_v20 }
  0xb2   : > { %v1337_v26 = vadd.f32 %v1272_v36, %v430_v21  ;;  %1097 = vpow2.f32 %v552_v30  ;;  %v1356_v42 = vadd.f32 %v1272_v36, %v454_v29 }
  0xb3   : > { %v1088_v25 = vpop.eup %1087  ;;  %v600_v33 = vmul.f32 1.442695, %v1341_v28  ;;  %v584_v43 = vmul.f32 1.442695, %v1349_v38 }
  0xb4   : > { %v1090_v27 = vpop.eup %1089  ;;  %694 = vrot.lane.b32.xlu2 %v1088_v25, %s1143_s10  ;;  %v554_v31 = vmul.f32 1.442695, %v1337_v26  ;;  %v570_v50 = vmul.f32 1.442695, %v1356_v42 }
  0xb5   : > { %646 = vrot.lane.b32.xlu1 %v1086_v23, %s1143_s10  ;;  %660 = vrot.lane.b32.xlu0 %v1090_v27, %s1143_s10  ;;  %v1092_v32 = vpop.eup %1091 }
  0xb6   : > { %v1094_v35 = vpop.eup %1093  ;;  %1099 = vpow2.f32 %v554_v31 }
  0xb7   : > { %v1096_v37 = vpop.eup %1095  ;;  %1101 = vpow2.f32 %v600_v33 }
  0xb8   : > { %v478_v34 = vpop.f32.mrf.mxu2  ;;  %v1098_v49 = vpop.eup %1097  ;;  %1103 = vpow2.f32 %v584_v43 }
  0xb9   : > { %v1352_v41 = vadd.f32 %v1272_v36, %v478_v34  ;;  %v457_v44 = vpop.f32.mrf.mxu1  ;;  %v433_v48 = vpop.f32.mrf.mxu0 }
  0xba   : > { %v502_v53 = vpop.f32.mrf.mxu3  ;;  %v1364_v56 = vadd.f32 %v1272_v36, %v433_v48  ;;  %v1379_v9 = vadd.f32 %v1272_v36, %v457_v44 }
  0xbb   : > { %v586_v47 = vmul.f32 1.442695, %v1352_v41  ;;  %v1367_v59 = vadd.f32 %v1272_v36, %v502_v53 }
  0xbc   : > { %664 = vrot.lane.b32.xlu2 %v1094_v35, %s1143_s10  ;;  %v1100_v54 = vpop.eup %1099  ;;  %v556_v61 = vmul.f32 1.442695, %v1364_v56  ;;  %v572_v15 = vmul.f32 1.442695, %v1379_v9 }
  0xbd   : > { %662 = vrot.lane.b32.xlu1 %v1092_v32, %s1143_s10  ;;  %678 = vrot.lane.b32.xlu0 %v1096_v37, %s1143_s10  ;;  %v1102_v55 = vpop.eup %1101  ;;  %1105 = vpow2.f32 %v586_v47  ;;  %v602_v62 = vmul.f32 1.442695, %v1367_v59 }
  0xbe   : > { %1107 = vpow2.f32 %v570_v50  ;;  %v1104_v63 = vpop.eup %1103 }
  0xbf   : > { %1109 = vpow2.f32 %v556_v61 }
  0xc0   : > { %v481_v51 = vpop.f32.mrf.mxu2  ;;  %1111 = vpow2.f32 %v602_v62 }
  0xc1   : > { %v1371_v60 = vadd.f32 %v1272_v36, %v481_v51  ;;  %v460_v3 = vpop.f32.mrf.mxu1  ;;  %v436_v7 = vpop.f32.mrf.mxu0 }
  0xc2   : > { %v1382_v10 = vadd.f32 %v1272_v36, %v460_v3  ;;  %v1386_v12 = vadd.f32 %v1272_v36, %v436_v7  ;;  %v505_v13 = vpop.f32.mrf.mxu3 }
  0xc3   : > { %v588_v0 = vmul.f32 1.442695, %v1371_v60  ;;  %v1106_v5 = vpop.eup %1105  ;;  %v1413_v47 = vadd.f32 %v1272_v36, %v505_v13 }
  0xc4   : > { %650 = vrot.lane.b32.xlu2 %v1100_v54, %s1143_s10  ;;  %v1108_v8 = vpop.eup %1107  ;;  %v574_v17 = vmul.f32 1.442695, %v1382_v10  ;;  %v558_v19 = vmul.f32 1.442695, %v1386_v12 }
  0xc5   : > { %648 = vrot.lane.b32.xlu1 %v1098_v49, %s1143_s10  ;;  %696 = vrot.lane.b32.xlu0 %v1102_v55, %s1143_s10  ;;  %1113 = vpow2.f32 %v588_v0  ;;  %v1110_v18 = vpop.eup %1109  ;;  %v604_v53 = vmul.f32 1.442695, %v1413_v47 }
  0xc6   : > { %v1112_v21 = vpop.eup %1111  ;;  %1115 = vpow2.f32 %v572_v15 }
  0xc7   : > { %1117 = vpow2.f32 %v574_v17  ;;  %v531_v17 = vld [vmem:[%s1437_s13 + $0x88] sm:$0xff] }
  0xc8   : > { %v484_v4 = vpop.f32.mrf.mxu2  ;;  %1119 = vpow2.f32 %v558_v19 }
  0xc9   : > { %v463_v22 = vpop.f32.mrf.mxu1  ;;  %v1394_v25 = vadd.f32 %v1272_v36, %v484_v4  ;;  %v439_v37 = vpop.f32.mrf.mxu0 }
  0xca   : > { %v1401_v29 = vadd.f32 %v1272_v36, %v463_v22  ;;  %v508_v32 = vpop.f32.mrf.mxu3  ;;  %v1410_v44 = vadd.f32 %v1272_v36, %v439_v37  ;;  %v514_v22 = vld [vmem:[%s1437_s13] sm:$0xff] }
  0xcb   : > { %v1114_v23 = vpop.eup %1113  ;;  %v590_v30 = vmul.f32 1.442695, %v1394_v25  ;;  %v1418_v48 = vadd.f32 %v1272_v36, %v508_v32  ;;  %v530_v37 = vld [vmem:[%s1437_s13 + $0x80] sm:$0xff] }
  0xcc   : > { %682 = vrot.lane.b32.xlu2 %v1106_v5, %s1143_s10  ;;  %v1116_v33 = vpop.eup %1115  ;;  %v576_v34 = vmul.f32 1.442695, %v1401_v29  ;;  %v560_v50 = vmul.f32 1.442695, %v1410_v44  ;;  %v522_v5 = vld [vmem:[%s1437_s13 + $0x40] sm:$0xff] }
  0xcd   : > { %680 = vrot.lane.b32.xlu1 %v1104_v63, %s1143_s10  ;;  %666 = vrot.lane.b32.xlu0 %v1108_v8, %s1143_s10  ;;  %v1118_v35 = vpop.eup %1117  ;;  %1121 = vpow2.f32 %v590_v30  ;;  %v606_v61 = vmul.f32 1.442695, %v1418_v48 }
  0xce   : > { %v1120_v43 = vpop.eup %1119 }
  0xd0   : > { %v487_v20 = vpop.f32.mrf.mxu2 }
  0xd1   : > { %v1397_v27 = vadd.f32 %v1272_v36, %v487_v20 }
  0xd2   : > { %v511_v54 = vpop.f32.mrf.mxu3 }
  0xd3   : > { %v592_v31 = vmul.f32 1.442695, %v1397_v27  ;;  %v1122_v49 = vpop.eup %1121  ;;  %v1425_v62 = vadd.f32 %v1272_v36, %v511_v54 }
  0xd4   : > { %652 = vrot.lane.b32.xlu2 %v1110_v18, %s1143_s10 }
  0xd5   : > { %698 = vrot.lane.b32.xlu1 %v1112_v21, %s1143_s10  ;;  %684 = vrot.lane.b32.xlu0 %v1114_v23, %s1143_s10  ;;  %1123 = vpow2.f32 %v592_v31  ;;  %v608_v63 = vmul.f32 1.442695, %v1425_v62  ;;  %v540_v21 = vld [vmem:[%s1437_s13 + $0xd0] sm:$0xff] }
  0xd6   : > { %1125 = vpow2.f32 %v576_v34 }
  0xd7   : > { %1127 = vpow2.f32 %v560_v50 }
  0xd8   : > { %1129 = vpow2.f32 %v604_v53 }
  0xd9   : > { %1131 = vpow2.f32 %v606_v61 }
  0xda   : > { %1133 = vpow2.f32 %v608_v63 }
  0xdb   : > { %v1124_v51 = vpop.eup %1123 }
  0xdc   : > { %670 = vrot.lane.b32.xlu2 %v1118_v35, %s1143_s10  ;;  %v1126_v55 = vpop.eup %1125 }
  0xdd   : > { %668 = vrot.lane.b32.xlu1 %v1116_v33, %s1143_s10  ;;  %654 = vrot.lane.b32.xlu0 %v1120_v43, %s1143_s10  ;;  %v1128_v0 = vpop.eup %1127  ;;  %v525_v43 = vld [vmem:[%s1437_s13 + $0x58] sm:$0xff] }
  0xde   : > { %v1130_v3 = vpop.eup %1129 }
  0xdf   : > { %v1132_v4 = vpop.eup %1131 }
  0xe0   : > { %v1134_v36 = vpop.eup %1133 }
  0xe4   : > { %688 = vrot.lane.b32.xlu2 %v1124_v51, %s1143_s10 }
  0xe5   : > { %686 = vrot.lane.b32.xlu1 %v1122_v49, %s1143_s10  ;;  %672 = vrot.lane.b32.xlu0 %v1126_v55, %s1143_s10  ;;  %v538_v49 = vld [vmem:[%s1437_s13 + $0xc0] sm:$0xff] }
  0xec   : > { %700 = vrot.lane.b32.xlu2 %v1130_v3, %s1143_s10 }
  0xed   : > { %656 = vrot.lane.b32.xlu1 %v1128_v0, %s1143_s10  ;;  %702 = vrot.lane.b32.xlu0 %v1132_v4, %s1143_s10 }
  0xf5   : > { %704 = vrot.lane.b32.xlu1 %v1134_v36, %s1143_s10  ;;  %v518_v36 = vld [vmem:[%s1437_s13 + $0x20] sm:$0xff] }
  0xf8   : > { %v659_v7 = vpop.permute.xlu2 %658 }
  0xf9   : > { %v746_v8 = vmul.f32 %v659_v7, %v522_v5  ;;  %v539_v5 = vld [vmem:[%s1437_s13 + $0xc8] sm:$0xff] }
  0xfa   : > { %v515_v7 = vld [vmem:[%s1437_s13 + $0x8] sm:$0xff] }
  0xfb   : > { %v778_v13 = vadd.f32 %v746_v8, %v1278_v40 }
  0xfd   : > { %811 = vst.msk [vmem:[%s1446_s17 + $0x40] sm:$0xff] %vm802_vm1, %v778_v13  ;;  %v843_v15 = vpack.c.bf16 %v778_v13, %v778_v13 }
  0xff   : > { %876 = vst.msk [vmem:[%s1452_s21 + $0x20] sm:$0xf] %vm867_vm2, %v843_v15 }
 0x106   : > { %v677_v18 = vpop.permute.xlu2 %676 }
 0x107   : > { %v755_v19 = vmul.f32 %v677_v18, %v531_v17 }
 0x109   : > { %v787_v40 = vadd.f32 %v755_v19, %v1297_v57 }
 0x10b   : > { %820 = vst.msk [vmem:[%s1446_s17 + $0x88] sm:$0xff] %vm802_vm1, %v787_v40  ;;  %v852_v20 = vpack.c.bf16 %v787_v40, %v787_v40 }
 0x10d   : > { %885 = vst.msk [vmem:[%s1452_s21 + $0x44] sm:$0xf] %vm867_vm2, %v852_v20 }
 0x10e   : > { %v695_v23 = vpop.permute.xlu2 %694 }
 0x10f   : > { %v764_v30 = vmul.f32 %v695_v23, %v540_v21  ;;  %v643_v31 = vpop.permute.xlu0 %642  ;;  %v516_v23 = vld [vmem:[%s1437_s13 + $0x10] sm:$0xff] }
 0x110   : > { %v738_v32 = vmul.f32 %v643_v31, %v514_v22  ;;  %v534_v22 = vld [vmem:[%s1437_s13 + $0xa0] sm:$0xff] }
 0x111   : > { %v796_v33 = vadd.f32 %v764_v30, %v1314_v6  ;;  %v523_v30 = vld [vmem:[%s1437_s13 + $0x48] sm:$0xff] }
 0x112   : > { %v770_v57 = vadd.f32 %v738_v32, %v1275_v39 }
 0x113   : > { %829 = vst.msk [vmem:[%s1446_s17 + $0xd0] sm:$0xff] %vm802_vm1, %v796_v33  ;;  %v861_v34 = vpack.c.bf16 %v796_v33, %v796_v33 }
 0x114   : > { %803 = vst.msk [vmem:[%s1446_s17] sm:$0xff] %vm802_vm1, %v770_v57  ;;  %v835_v35 = vpack.c.bf16 %v770_v57, %v770_v57 }
 0x115   : > { %894 = vst.msk [vmem:[%s1452_s21 + $0x68] sm:$0xf] %vm867_vm2, %v861_v34 }
 0x116   : > { %868 = vst.msk [vmem:[%s1452_s21] sm:$0xf] %vm867_vm2, %v835_v35  ;;  %v675_v6 = vpop.permute.xlu1 %674  ;;  %v665_v39 = vpop.permute.xlu2 %664 }
 0x117   : > { %v754_v50 = vmul.f32 %v675_v6, %v530_v37  ;;  %v749_v51 = vmul.f32 %v665_v39, %v525_v43  ;;  %v691_v53 = vpop.permute.xlu0 %690  ;;  %v519_v6 = vld [vmem:[%s1437_s13 + $0x28] sm:$0xff]  ;;  %v524_v39 = vld [vmem:[%s1437_s13 + $0x50] sm:$0xff] }
 0x118   : > { %v762_v54 = vmul.f32 %v691_v53, %v538_v49 }
 0x119   : > { %v786_v55 = vadd.f32 %v754_v50, %v1283_v45  ;;  %v781_v61 = vadd.f32 %v749_v51, %v1322_v14  ;;  %v532_v50 = vld [vmem:[%s1437_s13 + $0x90] sm:$0xff] }
 0x11a   : > { %v794_v63 = vadd.f32 %v762_v54, %v1286_v46 }
 0x11b   : > { %819 = vst.msk [vmem:[%s1446_s17 + $0x80] sm:$0xff] %vm802_vm1, %v786_v55  ;;  %v851_v0 = vpack.c.bf16 %v786_v55, %v786_v55  ;;  %v846_v3 = vpack.c.bf16 %v781_v61, %v781_v61 }
 0x11c   : > { %814 = vst.msk [vmem:[%s1446_s17 + $0x58] sm:$0xff] %vm802_vm1, %v781_v61  ;;  %v859_v4 = vpack.c.bf16 %v794_v63, %v794_v63 }
 0x11d   : > { %884 = vst.msk [vmem:[%s1452_s21 + $0x40] sm:$0xf] %vm867_vm2, %v851_v0 }
 0x11e   : > { %879 = vst.msk [vmem:[%s1452_s21 + $0x2c] sm:$0xf] %vm867_vm2, %v846_v3  ;;  %v651_v45 = vpop.permute.xlu2 %650 }
 0x11f   : > { %827 = vst.msk [vmem:[%s1446_s17 + $0xc0] sm:$0xff] %vm802_vm1, %v794_v63  ;;  %v693_v46 = vpop.permute.xlu1 %692  ;;  %v742_v14 = vmul.f32 %v651_v45, %v518_v36  ;;  %v645_v8 = vpop.permute.xlu0 %644  ;;  %v528_v36 = vld [vmem:[%s1437_s13 + $0x70] sm:$0xff] }
 0x120   : > { %892 = vst.msk [vmem:[%s1452_s21 + $0x60] sm:$0xf] %vm867_vm2, %v859_v4  ;;  %v763_v13 = vmul.f32 %v693_v46, %v539_v5  ;;  %v739_v15 = vmul.f32 %v645_v8, %v515_v7  ;;  %v517_v5 = vld [vmem:[%s1437_s13 + $0x18] sm:$0xff] }
 0x121   : > { %v774_v17 = vadd.f32 %v742_v14, %v1337_v26  ;;  %v541_v7 = vld [vmem:[%s1437_s13 + $0xd8] sm:$0xff] }
 0x122   : > { %v795_v18 = vadd.f32 %v763_v13, %v1300_v58  ;;  %v771_v19 = vadd.f32 %v739_v15, %v1291_v52 }
 0x123   : > { %807 = vst.msk [vmem:[%s1446_s17 + $0x20] sm:$0xff] %vm802_vm1, %v774_v17  ;;  %v839_v40 = vpack.c.bf16 %v774_v17, %v774_v17 }
 0x124   : > { %828 = vst.msk [vmem:[%s1446_s17 + $0xc8] sm:$0xff] %vm802_vm1, %v795_v18  ;;  %v860_v20 = vpack.c.bf16 %v795_v18, %v795_v18  ;;  %v836_v21 = vpack.c.bf16 %v771_v19, %v771_v19 }
 0x125   : > { %872 = vst.msk [vmem:[%s1452_s21 + $0x10] sm:$0xf] %vm867_vm2, %v839_v40  ;;  %v537_v40 = vld [vmem:[%s1437_s13 + $0xb8] sm:$0xff] }
 0x126   : > { %893 = vst.msk [vmem:[%s1452_s21 + $0x64] sm:$0xf] %vm867_vm2, %v860_v20  ;;  %v683_v58 = vpop.permute.xlu2 %682  ;;  %v533_v20 = vld [vmem:[%s1437_s13 + $0x98] sm:$0xff] }
 0x127   : > { %804 = vst.msk [vmem:[%s1446_s17 + $0x8] sm:$0xff] %vm802_vm1, %v771_v19  ;;  %v758_v52 = vmul.f32 %v683_v58, %v534_v22  ;;  %v647_v26 = vpop.permute.xlu1 %646  ;;  %v661_v31 = vpop.permute.xlu0 %660 }
 0x128   : > { %869 = vst.msk [vmem:[%s1452_s21 + $0x4] sm:$0xf] %vm867_vm2, %v836_v21  ;;  %v740_v32 = vmul.f32 %v647_v26, %v516_v23  ;;  %v747_v33 = vmul.f32 %v661_v31, %v523_v30  ;;  %v526_v21 = vld [vmem:[%s1437_s13 + $0x60] sm:$0xff] }
 0x129   : > { %v790_v57 = vadd.f32 %v758_v52, %v1352_v41 }
 0x12a   : > { %v772_v34 = vadd.f32 %v740_v32, %v1306_v1  ;;  %v779_v35 = vadd.f32 %v747_v33, %v1310_v2 }
 0x12b   : > { %823 = vst.msk [vmem:[%s1446_s17 + $0xa0] sm:$0xff] %vm802_vm1, %v790_v57  ;;  %v855_v37 = vpack.c.bf16 %v790_v57, %v790_v57  ;;  %v543_v57 = vld [vmem:[%s1437_s13 + $0xe8] sm:$0xff] }
 0x12c   : > { %805 = vst.msk [vmem:[%s1446_s17 + $0x10] sm:$0xff] %vm802_vm1, %v772_v34  ;;  %v837_v43 = vpack.c.bf16 %v772_v34, %v772_v34  ;;  %v844_v49 = vpack.c.bf16 %v779_v35, %v779_v35  ;;  %v542_v34 = vld [vmem:[%s1437_s13 + $0xe0] sm:$0xff] }
 0x12d   : > { %888 = vst.msk [vmem:[%s1452_s21 + $0x50] sm:$0xf] %vm867_vm2, %v855_v37 }
 0x12e   : > { %870 = vst.msk [vmem:[%s1452_s21 + $0x8] sm:$0xf] %vm867_vm2, %v837_v43  ;;  %v653_v1 = vpop.permute.xlu2 %652 }
 0x12f   : > { %812 = vst.msk [vmem:[%s1446_s17 + $0x48] sm:$0xff] %vm802_vm1, %v779_v35  ;;  %v743_v2 = vmul.f32 %v653_v1, %v519_v6  ;;  %v663_v41 = vpop.permute.xlu1 %662  ;;  %v679_v51 = vpop.permute.xlu0 %678  ;;  %v535_v35 = vld [vmem:[%s1437_s13 + $0xa8] sm:$0xff] }
 0x130   : > { %877 = vst.msk [vmem:[%s1452_s21 + $0x24] sm:$0xf] %vm867_vm2, %v844_v49  ;;  %v748_v53 = vmul.f32 %v663_v41, %v524_v39  ;;  %v756_v54 = vmul.f32 %v679_v51, %v532_v50  ;;  %v527_v51 = vld [vmem:[%s1437_s13 + $0x68] sm:$0xff] }
 0x131   : > { %v775_v55 = vadd.f32 %v743_v2, %v1364_v56 }
 0x132   : > { %v780_v61 = vadd.f32 %v748_v53, %v1318_v11  ;;  %v788_v63 = vadd.f32 %v756_v54, %v1326_v16  ;;  %v520_v53 = vld [vmem:[%s1437_s13 + $0x30] sm:$0xff] }
 0x133   : > { %808 = vst.msk [vmem:[%s1446_s17 + $0x28] sm:$0xff] %vm802_vm1, %v775_v55  ;;  %v840_v0 = vpack.c.bf16 %v775_v55, %v775_v55 }
 0x134   : > { %813 = vst.msk [vmem:[%s1446_s17 + $0x50] sm:$0xff] %vm802_vm1, %v780_v61  ;;  %v845_v3 = vpack.c.bf16 %v780_v61, %v780_v61  ;;  %v853_v4 = vpack.c.bf16 %v788_v63, %v788_v63 }
 0x135   : > { %873 = vst.msk [vmem:[%s1452_s21 + $0x14] sm:$0xf] %vm867_vm2, %v840_v0 }
 0x136   : > { %878 = vst.msk [vmem:[%s1452_s21 + $0x28] sm:$0xf] %vm867_vm2, %v845_v3  ;;  %v671_v11 = vpop.permute.xlu2 %670  ;;  %v536_v3 = vld [vmem:[%s1437_s13 + $0xb0] sm:$0xff] }
 0x137   : > { %821 = vst.msk [vmem:[%s1446_s17 + $0x90] sm:$0xff] %vm802_vm1, %v788_v63  ;;  %v752_v16 = vmul.f32 %v671_v11, %v528_v36  ;;  %v649_v56 = vpop.permute.xlu1 %648  ;;  %v697_v45 = vpop.permute.xlu0 %696 }
 0x138   : > { %886 = vst.msk [vmem:[%s1452_s21 + $0x48] sm:$0xf] %vm867_vm2, %v853_v4  ;;  %v741_v46 = vmul.f32 %v649_v56, %v517_v5  ;;  %v765_v14 = vmul.f32 %v697_v45, %v541_v7  ;;  %v529_v4 = vld [vmem:[%s1437_s13 + $0x78] sm:$0xff] }
 0x139   : > { %v784_v8 = vadd.f32 %v752_v16, %v1382_v10  ;;  %v521_v45 = vld [vmem:[%s1437_s13 + $0x38] sm:$0xff] }
 0x13a   : > { %v773_v13 = vadd.f32 %v741_v46, %v1334_v24  ;;  %v797_v15 = vadd.f32 %v765_v14, %v1341_v28  ;;  %v544_v46 = vld [vmem:[%s1437_s13 + $0xf0] sm:$0xff] }
 0x13b   : > { %817 = vst.msk [vmem:[%s1446_s17 + $0x70] sm:$0xff] %vm802_vm1, %v784_v8  ;;  %v849_v17 = vpack.c.bf16 %v784_v8, %v784_v8 }
 0x13c   : > { %806 = vst.msk [vmem:[%s1446_s17 + $0x18] sm:$0xff] %vm802_vm1, %v773_v13  ;;  %v838_v18 = vpack.c.bf16 %v773_v13, %v773_v13  ;;  %v862_v19 = vpack.c.bf16 %v797_v15, %v797_v15 }
 0x13d   : > { %882 = vst.msk [vmem:[%s1452_s21 + $0x38] sm:$0xf] %vm867_vm2, %v849_v17 }
 0x13e   : > { %871 = vst.msk [vmem:[%s1452_s21 + $0xc] sm:$0xf] %vm867_vm2, %v838_v18  ;;  %v689_v24 = vpop.permute.xlu2 %688 }
 0x13f   : > { %830 = vst.msk [vmem:[%s1446_s17 + $0xd8] sm:$0xff] %vm802_vm1, %v797_v15  ;;  %v761_v28 = vmul.f32 %v689_v24, %v537_v40  ;;  %v681_v10 = vpop.permute.xlu1 %680  ;;  %v667_v22 = vpop.permute.xlu0 %666 }
 0x140   : > { %895 = vst.msk [vmem:[%s1452_s21 + $0x6c] sm:$0xf] %vm867_vm2, %v862_v19  ;;  %v757_v23 = vmul.f32 %v681_v10, %v533_v20  ;;  %v750_v30 = vmul.f32 %v667_v22, %v526_v21  ;;  %v545_v19 = vld [vmem:[%s1437_s13 + $0xf8] sm:$0xff] }
 0x141   : > { %v793_v58 = vadd.f32 %v761_v28, %v1397_v27 }
 0x142   : > { %v789_v52 = vadd.f32 %v757_v23, %v1349_v38  ;;  %v782_v26 = vadd.f32 %v750_v30, %v1356_v42 }
 0x143   : > { %826 = vst.msk [vmem:[%s1446_s17 + $0xb8] sm:$0xff] %vm802_vm1, %v793_v58  ;;  %v858_v31 = vpack.c.bf16 %v793_v58, %v793_v58 }
 0x144   : > { %822 = vst.msk [vmem:[%s1446_s17 + $0x98] sm:$0xff] %vm802_vm1, %v789_v52  ;;  %v854_v32 = vpack.c.bf16 %v789_v52, %v789_v52  ;;  %v847_v33 = vpack.c.bf16 %v782_v26, %v782_v26 }
 0x145   : > { %891 = vst.msk [vmem:[%s1452_s21 + $0x5c] sm:$0xf] %vm867_vm2, %v858_v31 }
 0x146   : > { %887 = vst.msk [vmem:[%s1452_s21 + $0x4c] sm:$0xf] %vm867_vm2, %v854_v32  ;;  %v701_v38 = vpop.permute.xlu2 %700 }
 0x147   : > { %815 = vst.msk [vmem:[%s1446_s17 + $0x60] sm:$0xff] %vm802_vm1, %v782_v26  ;;  %v767_v42 = vmul.f32 %v701_v38, %v543_v57  ;;  %v699_v27 = vpop.permute.xlu1 %698  ;;  %v685_v37 = vpop.permute.xlu0 %684 }
 0x148   : > { %880 = vst.msk [vmem:[%s1452_s21 + $0x30] sm:$0xf] %vm867_vm2, %v847_v33  ;;  %v766_v43 = vmul.f32 %v699_v27, %v542_v34  ;;  %v759_v49 = vmul.f32 %v685_v37, %v535_v35 }
 0x149   : > { %v799_v6 = vadd.f32 %v767_v42, %v1413_v47 }
 0x14a   : > { %v798_v39 = vadd.f32 %v766_v43, %v1367_v59  ;;  %v791_v50 = vadd.f32 %v759_v49, %v1371_v60 }
 0x14b   : > { %832 = vst.msk [vmem:[%s1446_s17 + $0xe8] sm:$0xff] %vm802_vm1, %v799_v6  ;;  %v864_v1 = vpack.c.bf16 %v799_v6, %v799_v6 }
 0x14c   : > { %831 = vst.msk [vmem:[%s1446_s17 + $0xe0] sm:$0xff] %vm802_vm1, %v798_v39  ;;  %v863_v2 = vpack.c.bf16 %v798_v39, %v798_v39  ;;  %v856_v41 = vpack.c.bf16 %v791_v50, %v791_v50 }
 0x14d   : > { %897 = vst.msk [vmem:[%s1452_s21 + $0x74] sm:$0xf] %vm867_vm2, %v864_v1 }
 0x14e   : > { %896 = vst.msk [vmem:[%s1452_s21 + $0x70] sm:$0xf] %vm867_vm2, %v863_v2 }
 0x14f   : > { %824 = vst.msk [vmem:[%s1446_s17 + $0xa8] sm:$0xff] %vm802_vm1, %v791_v50  ;;  %v669_v59 = vpop.permute.xlu1 %668  ;;  %v655_v60 = vpop.permute.xlu0 %654 }
 0x150   : > { %889 = vst.msk [vmem:[%s1452_s21 + $0x54] sm:$0xf] %vm867_vm2, %v856_v41  ;;  %v751_v47 = vmul.f32 %v669_v59, %v527_v51  ;;  %v744_v54 = vmul.f32 %v655_v60, %v520_v53 }
 0x152   : > { %v783_v55 = vadd.f32 %v751_v47, %v1379_v9  ;;  %v776_v61 = vadd.f32 %v744_v54, %v1386_v12 }
 0x154   : > { %816 = vst.msk [vmem:[%s1446_s17 + $0x68] sm:$0xff] %vm802_vm1, %v783_v55  ;;  %v848_v63 = vpack.c.bf16 %v783_v55, %v783_v55  ;;  %v841_v0 = vpack.c.bf16 %v776_v61, %v776_v61 }
 0x155   : > { %809 = vst.msk [vmem:[%s1446_s17 + $0x30] sm:$0xff] %vm802_vm1, %v776_v61 }
 0x156   : > { %881 = vst.msk [vmem:[%s1452_s21 + $0x34] sm:$0xf] %vm867_vm2, %v848_v63 }
 0x157   : > { %874 = vst.msk [vmem:[%s1452_s21 + $0x18] sm:$0xf] %vm867_vm2, %v841_v0  ;;  %v687_v9 = vpop.permute.xlu1 %686  ;;  %v673_v36 = vpop.permute.xlu0 %672 }
 0x158   : > { %v760_v12 = vmul.f32 %v687_v9, %v536_v3  ;;  %v753_v5 = vmul.f32 %v673_v36, %v529_v4 }
 0x15a   : > { %v792_v7 = vadd.f32 %v760_v12, %v1394_v25  ;;  %v785_v11 = vadd.f32 %v753_v5, %v1401_v29 }
 0x15c   : > { %825 = vst.msk [vmem:[%s1446_s17 + $0xb0] sm:$0xff] %vm802_vm1, %v792_v7  ;;  %v857_v16 = vpack.c.bf16 %v792_v7, %v792_v7  ;;  %v850_v56 = vpack.c.bf16 %v785_v11, %v785_v11 }
 0x15d   : > { %818 = vst.msk [vmem:[%s1446_s17 + $0x78] sm:$0xff] %vm802_vm1, %v785_v11 }
 0x15e   : > { %890 = vst.msk [vmem:[%s1452_s21 + $0x58] sm:$0xf] %vm867_vm2, %v857_v16 }
 0x15f   : > { %883 = vst.msk [vmem:[%s1452_s21 + $0x3c] sm:$0xf] %vm867_vm2, %v850_v56  ;;  %v657_v25 = vpop.permute.xlu1 %656  ;;  %v703_v14 = vpop.permute.xlu0 %702 }
 0x160   : > { %v745_v29 = vmul.f32 %v657_v25, %v521_v45  ;;  %v768_v8 = vmul.f32 %v703_v14, %v544_v46 }
 0x162   : > { %v777_v13 = vadd.f32 %v745_v29, %v1410_v44  ;;  %v800_v15 = vadd.f32 %v768_v8, %v1418_v48 }
 0x164   : > { %810 = vst.msk [vmem:[%s1446_s17 + $0x38] sm:$0xff] %vm802_vm1, %v777_v13  ;;  %v842_v17 = vpack.c.bf16 %v777_v13, %v777_v13  ;;  %v865_v18 = vpack.c.bf16 %v800_v15, %v800_v15 }
 0x165   : > { %833 = vst.msk [vmem:[%s1446_s17 + $0xf0] sm:$0xff] %vm802_vm1, %v800_v15 }
 0x166   : > { %875 = vst.msk [vmem:[%s1452_s21 + $0x1c] sm:$0xf] %vm867_vm2, %v842_v17 }
 0x167   : > { %898 = vst.msk [vmem:[%s1452_s21 + $0x78] sm:$0xf] %vm867_vm2, %v865_v18  ;;  %v705_v40 = vpop.permute.xlu1 %704 }
 0x168   : > { %v769_v20 = vmul.f32 %v705_v40, %v545_v19 }
 0x16a   : > { %v801_v21 = vadd.f32 %v769_v20, %v1425_v62 }
 0x16c   : > { %834 = vst.msk [vmem:[%s1446_s17 + $0xf8] sm:$0xff] %vm802_vm1, %v801_v21  ;;  %v866_v44 = vpack.c.bf16 %v801_v21, %v801_v21 }
 0x16e   : > { %899 = vst.msk [vmem:[%s1452_s21 + $0x7c] sm:$0xf] %vm867_vm2, %v866_v44 }
 0x16f PF: > { %s16_s18 = sadd.s32 1, %s1141_s18  }
 0x170   : > { %p13_p4 = scmp.ge.s32.totalorder %s16_s18, 4  }
 0x172   :  { %15 = sbr.rel (!%p13_p4) target bundleno = 1 (0x1), region = 81 }

// kernel: vae_forward.3
= control target key start
LH: loop header
LB: loop body
LE: loop exit
PB: predicated region body
PF: predicated region fallthrough
CT: control target
= control target key end

     0   :  { %7 = vsyncpa [#allocation3], 0  ;;  %s7361_s0 = inlined_call_operand.vmem [shape: bf16[512,16], index: 0, kind: input, shape index: {}, may-alias: {0,1}]   ;;  %s7362_s1 = inlined_call_operand.vmem [shape: bf16[512,16], index: 1, kind: input, shape index: {}, may-alias: {0,1}]   ;;  %s7363_s2 = inlined_call_operand.hbm [shape: bf16[512,512], index: 2, kind: output, shape index: {}]  }
   0x1   :  { %9 = vsyncpa [#allocation3 + $0x1], 0  ;;  %s4801_s9 = smov 0   ;;  %s4803_s10 = smov 0  }
   0x2   :  { %s4805_s11 = smov 0   ;;  %s4807_s12 = smov 0  }
   0x3   :  { %s4809_s13 = smov 0   ;;  %s4811_s14 = smov 0  }
   0x4 LB: > { %s3686_s15 = sadd.s32 4294967295, %s4782_s14   ;;  %s3687_s16 = sadd.s32 4294967294, %s4782_s14   ;;  %s4782_s14 = sphi %s4811_s14, %s15_s14   ;;  %s4778_s13 = sphi %s4809_s13, %s7622_s13   ;;  %s4774_s12 = sphi %s4807_s12, %s7621_s12   ;;  %s4770_s11 = sphi %s4805_s11, %s7620_s11   ;;  %s4766_s10 = sphi %s4803_s10, %s7619_s10   ;;  %s4762_s9 = sphi %s4801_s9, %s7618_s9  }
   0x5   : > { %s27_s17 = sadd.s32 1, %s4778_s13  ;;  %s88_s18 = sadd.s32 1, %s4770_s11 }
   0x6   : > { %p29_p0 = scmp.ge.s32.totalorder %s27_s17, 2  ;;  %p98_p1 = scmp.ne.s32.totalorder %s4770_s11, %s4766_s10 }
   0x7   : > { %p99_p2 = scmp.eq.s32.totalorder %s3686_s15, 1  ;;  %p104_p3 = scmp.ne.s32.totalorder %s4766_s10, %s4762_s9 }
   0x8   : > { %s7624_s17 = smov (%p29_p0, %s27_s17), 0  ;;  %p105_p5 = scmp.eq.s32.totalorder %s3687_s16, 1 }
   0x9   : > { %p4841_p4 = por %p99_p2, %p98_p1  ;;  %s83_s20 = ssub.s32 %s4778_s13, %s7624_s17 }
   0xa   : > { %p3691_p6 = scmp.ge.s32.totalorder %s4782_s14, 1  ;;  %p86_p7 = scmp.eq.s32.totalorder %s83_s20, 0 }
   0xb   : > { %p4848_p8 = por %p105_p5, %p104_p3  ;;  %p141_p9 = scmp.lt.s32.totalorder %s4782_s14, 3 }
   0xc   : > { %s4854_s22 = scalar_select %p86_p7, %s4770_s11, %s88_s18  }
   0xd   : > { %p142_p10 = pnand %p3691_p6, %p141_p9 }
   0xe   : > { %s3693_s25 = sshll.u32 (!%p142_p10), %s4774_s12, 5  ;;  %s165_s16 = sand.u32 (!%p142_p10), 1, %s4766_s10  }
   0xf   : > { %145 = sbr.rel (%p142_p10) target bundleno = 766 (0x2fe), region = 28  ;;  %p169_p11 = scmp.lt.s32.totalorder (!%p142_p10), %s3693_s25, 63 }
  0x10   : > { %s5073_s18 = sshll.u32 (!%p142_p10), %s165_s16, 9  ;;  %s4134_s23 = sshll.u32 (!%p142_p10), %s4774_s12, 9 }
  0x11   : > { %s5101_s20 = scalar_lea.vmem (!%p142_p10), [#allocation2], %s5073_s18  ;;  %s3594_s26 = scalar_lea.hbm (!%p142_p10), %s7363_s2, %s4134_s23 }
  0x12   : > { %s3595_s12 = sshll.u32 (!%p142_p10), %s5101_s20, 4  ;;  %s3597_s27 = sshll.u32 (!%p142_p10), %s3594_s26, 4  ;;  %s3596_s12 = int_to_ptr.vmem [resolvable:$true] %s3595_s12  ;;  %s3598_s27 = int_to_ptr.hbm [resolvable:$true] %s3597_s27 }
  0x13   : > { %s3580_s28 = scalar_lea.sflag (!%p142_p10), [#allocation3], %s165_s16  ;;  %s4718_s29 = sshra.s32 (!%p142_p10), %s3598_s27, 4  ;;  %s4719_s29 = int_to_ptr.hbm [resolvable:$true] %s4718_s29 }
  0x14   : > { %v4108_v0 = vld [vmem:[%s7362_s1 + $0x38] sm:$0xff]  ;;  %vm518_vm0 = vcmask 130048   ;;  %v4107_v8 = vld [vmem:[%s7362_s1 + $0x30] sm:$0xff]  ;;  %v4106_v16 = vld [vmem:[%s7362_s1 + $0x28] sm:$0xff]  ;;  %s7626_s25 = smov (!%p169_p11, %s3693_s25), 63  ;;  %s4720_s30 = scalar_lea.hbm %s4719_s29, 512 }
  0x15   : > { %v4116_v1 = vld [vmem:[%s7362_s1 + $0x78] sm:$0xff]  ;;  %v589_v4 = vsel %vm518_vm0, %v4108_v0, 0  ;;  %v4115_v9 = vld [vmem:[%s7362_s1 + $0x70] sm:$0xff]  ;;  %v586_v12 = vsel %vm518_vm0, %v4107_v8, 0  ;;  %v4114_v17 = vld [vmem:[%s7362_s1 + $0x68] sm:$0xff]  ;;  %v583_v20 = vsel %vm518_vm0, %v4106_v16, 0  ;;  %p4721_p12 = scmp.ne.s32.totalorder %s4719_s29, %s4720_s30  ;;  %p4725_p1 = scmp.lt.s32.totalorder %s4719_s29, %s7363_s2 }
  0x16   : > { %v4124_v2 = vld [vmem:[%s7362_s1 + $0xb8] sm:$0xff]  ;;  %v613_v5 = vsel %vm518_vm0, %v4116_v1, 0  ;;  %663 = vmatpush.bf16.xpose.msra.mxu0 %v589_v4  ;;  %v4123_v10 = vld [vmem:[%s7362_s1 + $0xb0] sm:$0xff]  ;;  %v610_v13 = vsel %vm518_vm0, %v4115_v9, 0  ;;  %v4122_v18 = vld [vmem:[%s7362_s1 + $0xa8] sm:$0xff]  ;;  %v607_v21 = vsel %vm518_vm0, %v4114_v17, 0 }
  0x17   : > { %v4132_v3 = vld [vmem:[%s7362_s1 + $0xf8] sm:$0xff]  ;;  %v637_v6 = vsel %vm518_vm0, %v4124_v2, 0  ;;  %752 = vmatpush.bf16.xpose.msra.mxu1 %v613_v5  ;;  %v4131_v11 = vld [vmem:[%s7362_s1 + $0xf0] sm:$0xff]  ;;  %v634_v14 = vsel %vm518_vm0, %v4123_v10, 0  ;;  %v4130_v19 = vld [vmem:[%s7362_s1 + $0xe8] sm:$0xff]  ;;  %v631_v22 = vsel %vm518_vm0, %v4122_v18, 0  ;;  %p4722_p13 = pnand %p4721_p12, %p4841_p4 }
  0x18   : > { %v661_v7 = vsel %vm518_vm0, %v4132_v3, 0  ;;  %841 = vmatpush.bf16.xpose.msra.mxu2 %v637_v6  ;;  %v658_v15 = vsel %vm518_vm0, %v4131_v11, 0  ;;  %v655_v23 = vsel %vm518_vm0, %v4130_v19, 0  ;;  %v4105_v24 = vld [vmem:[%s7362_s1 + $0x20] sm:$0xff]  ;;  %v4104_v32 = vld [vmem:[%s7362_s1 + $0x18] sm:$0xff]  ;;  %v4103_v40 = vld [vmem:[%s7362_s1 + $0x10] sm:$0xff] }
  0x19   : > { %930 = vmatpush.bf16.xpose.msra.mxu3 %v661_v7  ;;  %v4113_v25 = vld [vmem:[%s7362_s1 + $0x60] sm:$0xff]  ;;  %v580_v28 = vsel %vm518_vm0, %v4105_v24, 0  ;;  %v4112_v33 = vld [vmem:[%s7362_s1 + $0x58] sm:$0xff]  ;;  %v577_v36 = vsel %vm518_vm0, %v4104_v32, 0  ;;  %v4111_v41 = vld [vmem:[%s7362_s1 + $0x50] sm:$0xff]  ;;  %v574_v44 = vsel %vm518_vm0, %v4103_v40, 0  ;;  %p4723_p0 = pneg %p4722_p13 }
  0x1a   : > { %v4121_v26 = vld [vmem:[%s7362_s1 + $0xa0] sm:$0xff]  ;;  %v604_v29 = vsel %vm518_vm0, %v4113_v25, 0  ;;  %v4120_v34 = vld [vmem:[%s7362_s1 + $0x98] sm:$0xff]  ;;  %v601_v37 = vsel %vm518_vm0, %v4112_v33, 0  ;;  %v4119_v42 = vld [vmem:[%s7362_s1 + $0x90] sm:$0xff]  ;;  %v598_v45 = vsel %vm518_vm0, %v4111_v41, 0 }
  0x1b   : > { %v4129_v27 = vld [vmem:[%s7362_s1 + $0xe0] sm:$0xff]  ;;  %v628_v30 = vsel %vm518_vm0, %v4121_v26, 0  ;;  %v4128_v35 = vld [vmem:[%s7362_s1 + $0xd8] sm:$0xff]  ;;  %v625_v38 = vsel %vm518_vm0, %v4120_v34, 0  ;;  %v4127_v43 = vld [vmem:[%s7362_s1 + $0xd0] sm:$0xff]  ;;  %v622_v46 = vsel %vm518_vm0, %v4119_v42, 0 }
  0x1c   : > { %v652_v31 = vsel %vm518_vm0, %v4129_v27, 0  ;;  %v649_v39 = vsel %vm518_vm0, %v4128_v35, 0  ;;  %v646_v47 = vsel %vm518_vm0, %v4127_v43, 0  ;;  %v4102_v48 = vld [vmem:[%s7362_s1 + $0x8] sm:$0xff]  ;;  %v4101_v56 = vld [vmem:[%s7362_s1] sm:$0xff]  ;;  %s3694_s6 = sshll.u32 %s7626_s25, 2 }
  0x1d   : > { %v4110_v49 = vld [vmem:[%s7362_s1 + $0x48] sm:$0xff]  ;;  %v571_v52 = vsel %vm518_vm0, %v4102_v48, 0  ;;  %v4109_v57 = vld [vmem:[%s7362_s1 + $0x40] sm:$0xff]  ;;  %v568_v60 = vsel %vm518_vm0, %v4101_v56, 0  ;;  %s4988_s15 = scalar_lea.vmem %s7361_s0, %s3694_s6  ;;  %s4724_s5 = scalar_lea.hbm %s7363_s2, 1024 }
  0x1e   : > { %664 = vmatpush.bf16.xpose.msra.mxu0 %v586_v12  ;;  %v4118_v50 = vld [vmem:[%s7362_s1 + $0x88] sm:$0xff]  ;;  %v595_v53 = vsel %vm518_vm0, %v4110_v49, 0  ;;  %v4117_v58 = vld [vmem:[%s7362_s1 + $0x80] sm:$0xff]  ;;  %v592_v61 = vsel %vm518_vm0, %v4109_v57, 0  ;;  %v4087_v2 = vld [vmem:[%s4988_s15 + $0x10] sm:$0xff]  ;;  %p4726_p2 = scmp.lt.s32.totalorder %s4724_s5, %s4720_s30 }
  0x1f   : > { %753 = vmatpush.bf16.xpose.msra.mxu1 %v610_v13  ;;  %v4126_v51 = vld [vmem:[%s7362_s1 + $0xc8] sm:$0xff]  ;;  %v619_v54 = vsel %vm518_vm0, %v4118_v50, 0  ;;  %v4125_v59 = vld [vmem:[%s7362_s1 + $0xc0] sm:$0xff]  ;;  %v616_v62 = vsel %vm518_vm0, %v4117_v58, 0  ;;  %v4088_v3 = vld [vmem:[%s4988_s15 + $0x18] sm:$0xff] }
  0x20   : > { %842 = vmatpush.bf16.xpose.msra.mxu2 %v634_v14  ;;  %v643_v55 = vsel %vm518_vm0, %v4126_v51, 0  ;;  %v640_v63 = vsel %vm518_vm0, %v4125_v59, 0  ;;  %v4085_v0 = vld [vmem:[%s4988_s15] sm:$0xff]  ;;  %v4086_v1 = vld [vmem:[%s4988_s15 + $0x8] sm:$0xff]  ;;  %v4091_v6 = vld [vmem:[%s4988_s15 + $0x30] sm:$0xff]  ;;  %p4727_p3 = por %p4726_p2, %p4725_p1 }
  0x21   : > { %931 = vmatpush.bf16.xpose.msra.mxu3 %v658_v15  ;;  %v4089_v4 = vld [vmem:[%s4988_s15 + $0x20] sm:$0xff]  ;;  %v4090_v5 = vld [vmem:[%s4988_s15 + $0x28] sm:$0xff]  ;;  %v4092_v7 = vld [vmem:[%s4988_s15 + $0x38] sm:$0xff] }
  0x22   : > { %v4093_v8 = vld [vmem:[%s4988_s15 + $0x40] sm:$0xff]  ;;  %v4094_v26 = vld [vmem:[%s4988_s15 + $0x48] sm:$0xff]  ;;  %p4728_p5 = pnand %p4727_p3, %p4723_p0 }
  0x26   : > { %665 = vmatpush.bf16.xpose.msra.mxu0 %v583_v20 }
  0x27   : > { %754 = vmatpush.bf16.xpose.msra.mxu1 %v607_v21 }
  0x28   : > { %843 = vmatpush.bf16.xpose.msra.mxu2 %v631_v22 }
  0x29   : > { %932 = vmatpush.bf16.xpose.msra.mxu3 %v655_v23 }
  0x2e   : > { %666 = vmatpush.bf16.xpose.msra.mxu0 %v580_v28 }
  0x2f   : > { %755 = vmatpush.bf16.xpose.msra.mxu1 %v604_v29 }
  0x30   : > { %844 = vmatpush.bf16.xpose.msra.mxu2 %v628_v30 }
  0x31   : > { %933 = vmatpush.bf16.xpose.msra.mxu3 %v652_v31 }
  0x36   : > { %667 = vmatpush.bf16.xpose.msra.mxu0 %v577_v36 }
  0x37   : > { %756 = vmatpush.bf16.xpose.msra.mxu1 %v601_v37 }
  0x38   : > { %845 = vmatpush.bf16.xpose.msra.mxu2 %v625_v38 }
  0x39   : > { %934 = vmatpush.bf16.xpose.msra.mxu3 %v649_v39 }
  0x3e   : > { %668 = vmatpush.bf16.xpose.msra.mxu0 %v574_v44 }
  0x3f   : > { %757 = vmatpush.bf16.xpose.msra.mxu1 %v598_v45 }
  0x40   : > { %846 = vmatpush.bf16.xpose.msra.mxu2 %v622_v46 }
  0x41   : > { %935 = vmatpush.bf16.xpose.msra.mxu3 %v646_v47 }
  0x46   : > { %669 = vmatpush.bf16.xpose.msra.mxu0 %v571_v52 }
  0x47   : > { %758 = vmatpush.bf16.xpose.msra.mxu1 %v595_v53 }
  0x48   : > { %847 = vmatpush.bf16.xpose.msra.mxu2 %v619_v54 }
  0x49   : > { %936 = vmatpush.bf16.xpose.msra.mxu3 %v643_v55 }
  0x4e   : > { %670 = vmatpush.bf16.xpose.msra.mxu0 %v568_v60 }
  0x4f   : > { %759 = vmatpush.bf16.xpose.msra.mxu1 %v592_v61 }
  0x50   : > { %848 = vmatpush.bf16.xpose.msra.mxu2 %v616_v62 }
  0x51   : > { %937 = vmatpush.bf16.xpose.msra.mxu3 %v640_v63 }
  0x55   : > { %3887 = vmatmul.msk.bf16.vlgmr.msra.gmra.mxu0 %vm518_vm0, %v4085_v0 }
  0x56   : > { %3903 = vmatmul.msk.bf16.vlgmr.msra.gmra.mxu1 %vm518_vm0, %v4085_v0 }
  0x57   : > { %3919 = vmatmul.msk.bf16.vlgmr.msra.gmra.mxu2 %vm518_vm0, %v4085_v0 }
  0x58   : > { %3935 = vmatmul.msk.bf16.vlgmr.msra.gmra.mxu3 %vm518_vm0, %v4085_v0 }
  0x65   : > { %3888 = vmatmul.msk.bf16.gmra.mxu0 %vm518_vm0, %v4086_v1 }
  0x66   : > { %3904 = vmatmul.msk.bf16.gmra.mxu1 %vm518_vm0, %v4086_v1 }
  0x67   : > { %3920 = vmatmul.msk.bf16.gmra.mxu2 %vm518_vm0, %v4086_v1 }
  0x68   : > { %3936 = vmatmul.msk.bf16.gmra.mxu3 %vm518_vm0, %v4086_v1 }
  0x75   : > { %3889 = vmatmul.msk.bf16.gmra.mxu0 %vm518_vm0, %v4087_v2 }
  0x76   : > { %3905 = vmatmul.msk.bf16.gmra.mxu1 %vm518_vm0, %v4087_v2 }
  0x77   : > { %3921 = vmatmul.msk.bf16.gmra.mxu2 %vm518_vm0, %v4087_v2 }
  0x78   : > { %3937 = vmatmul.msk.bf16.gmra.mxu3 %vm518_vm0, %v4087_v2 }
  0x85   : > { %3890 = vmatmul.msk.bf16.gmra.mxu0 %vm518_vm0, %v4088_v3 }
  0x86   : > { %3906 = vmatmul.msk.bf16.gmra.mxu1 %vm518_vm0, %v4088_v3 }
  0x87   : > { %3922 = vmatmul.msk.bf16.gmra.mxu2 %vm518_vm0, %v4088_v3 }
  0x88   : > { %3938 = vmatmul.msk.bf16.gmra.mxu3 %vm518_vm0, %v4088_v3 }
  0x95   : > { %3891 = vmatmul.msk.bf16.gmra.mxu0 %vm518_vm0, %v4089_v4 }
  0x96   : > { %3907 = vmatmul.msk.bf16.gmra.mxu1 %vm518_vm0, %v4089_v4 }
  0x97   : > { %3923 = vmatmul.msk.bf16.gmra.mxu2 %vm518_vm0, %v4089_v4 }
  0x98   : > { %3939 = vmatmul.msk.bf16.gmra.mxu3 %vm518_vm0, %v4089_v4 }
  0xa5   : > { %3892 = vmatmul.msk.bf16.gmra.mxu0 %vm518_vm0, %v4090_v5 }
  0xa6   : > { %3908 = vmatmul.msk.bf16.gmra.mxu1 %vm518_vm0, %v4090_v5 }
  0xa7   : > { %3924 = vmatmul.msk.bf16.gmra.mxu2 %vm518_vm0, %v4090_v5 }
  0xa8   : > { %3940 = vmatmul.msk.bf16.gmra.mxu3 %vm518_vm0, %v4090_v5 }
  0xb5   : > { %3893 = vmatmul.msk.bf16.gmra.mxu0 %vm518_vm0, %v4091_v6 }
  0xb6   : > { %3909 = vmatmul.msk.bf16.gmra.mxu1 %vm518_vm0, %v4091_v6 }
  0xb7   : > { %3925 = vmatmul.msk.bf16.gmra.mxu2 %vm518_vm0, %v4091_v6 }
  0xb8   : > { %3941 = vmatmul.msk.bf16.gmra.mxu3 %vm518_vm0, %v4091_v6 }
  0xc5   : > { %3894 = vmatmul.msk.bf16.gmra.mxu0 %vm518_vm0, %v4092_v7 }
  0xc6   : > { %3910 = vmatmul.msk.bf16.gmra.mxu1 %vm518_vm0, %v4092_v7 }
  0xc7   : > { %3926 = vmatmul.msk.bf16.gmra.mxu2 %vm518_vm0, %v4092_v7 }
  0xc8   : > { %3942 = vmatmul.msk.bf16.gmra.mxu3 %vm518_vm0, %v4092_v7 }
  0xd2   : > { %v672_v9 = vpop.f32.mrf.mxu0 }
  0xd3   : > { %v761_v10 = vpop.f32.mrf.mxu1  ;;  %v3951_v11 = vmul.f32 -1.442695, %v672_v9 }
  0xd4   : > { %v3952_v12 = vmul.f32 -1.442695, %v761_v10 }
  0xd5   : > { %4192 = vpow2.f32 %v3951_v11  ;;  %3895 = vmatmul.msk.bf16.gmra.mxu0 %vm518_vm0, %v4093_v8 }
  0xd6   : > { %3911 = vmatmul.msk.bf16.gmra.mxu1 %vm518_vm0, %v4093_v8  ;;  %4194 = vpow2.f32 %v3952_v12 }
  0xd7   : > { %3927 = vmatmul.msk.bf16.gmra.mxu2 %vm518_vm0, %v4093_v8 }
  0xd8   : > { %3943 = vmatmul.msk.bf16.gmra.mxu3 %vm518_vm0, %v4093_v8 }
  0xda   : > { %v850_v13 = vpop.f32.mrf.mxu2  ;;  %v674_v17 = vpop.f32.mrf.mxu0 }
  0xdb   : > { %v939_v14 = vpop.f32.mrf.mxu3  ;;  %v3953_v15 = vmul.f32 -1.442695, %v850_v13  ;;  %v763_v18 = vpop.f32.mrf.mxu1  ;;  %v3955_v22 = vmul.f32 -1.442695, %v674_v17 }
  0xdc   : > { %v3954_v16 = vmul.f32 -1.442695, %v939_v14  ;;  %v4193_v19 = vpop.eup %4192  ;;  %v3956_v24 = vmul.f32 -1.442695, %v763_v18 }
  0xdd   : > { %v4195_v20 = vpop.eup %4194  ;;  %v1403_v21 = vadd.f32 1.0, %v4193_v19  ;;  %4196 = vpow2.f32 %v3953_v15 }
  0xde   : > { %v5035_v23 = vadd.f32 1.0, %v4195_v20  ;;  %4198 = vpow2.f32 %v3954_v16 }
  0xdf   : > { %4200 = vrcp.f32 %v1403_v21  ;;  %v1540_v28 = vand.u32 2147483647, %v1403_v21  ;;  %v1542_v30 = vand.u32 2147483648, %v1403_v21  ;;  %vm1536_vm1 = vweird.f32 %v1403_v21 }
  0xe0   : > { %4202 = vrcp.f32 %v5035_v23  ;;  %v1555_v31 = vand.u32 2147483647, %v5035_v23  ;;  %v1557_v35 = vand.u32 2147483648, %v5035_v23  ;;  %vm1551_vm3 = vweird.f32 %v5035_v23 }
  0xe1   : > { %4204 = vpow2.f32 %v3955_v22  ;;  %vm5048_vm2 = vcmp.eq.f32.partialorder %v1540_v28, 8.507059e+37  ;;  %v1543_v47 = vor.u32 1.1754944e-38, %v1542_v30 }
  0xe2   : > { %4206 = vpow2.f32 %v3956_v24  ;;  %v852_v25 = vpop.f32.mrf.mxu2  ;;  %v677_v40 = vpop.f32.mrf.mxu0  ;;  %vm5056_vm4 = vcmp.eq.f32.partialorder %v1555_v31, 8.507059e+37  ;;  %v1558_v50 = vor.u32 1.1754944e-38, %v1557_v35 }
  0xe3   : > { %v4197_v27 = vpop.eup %4196  ;;  %v941_v33 = vpop.f32.mrf.mxu3  ;;  %v3957_v37 = vmul.f32 -1.442695, %v852_v25  ;;  %v3959_v51 = vmul.f32 -1.442695, %v677_v40 }
  0xe4   : > { %v4199_v29 = vpop.eup %4198  ;;  %v5040_v32 = vadd.f32 1.0, %v4197_v27  ;;  %v3958_v44 = vmul.f32 -1.442695, %v941_v33  ;;  %v766_v55 = vpop.f32.mrf.mxu1 }
  0xe5   : > { %v4201_v34 = vpop.eup %4200  ;;  %v5043_v36 = vadd.f32 1.0, %v4199_v29  ;;  %3896 = vmatmul.msk.bf16.gmra.mxu0 %vm518_vm0, %v4094_v26  ;;  %v5077_v0 = vmul.f32 -1.442695, %v766_v55 }
  0xe6   : > { %v4203_v38 = vpop.eup %4202  ;;  %v1532_v39 = vmul.f32 %v4201_v34, %v1403_v21  ;;  %4208 = vrcp.f32 %v5040_v32  ;;  %3912 = vmatmul.msk.bf16.gmra.mxu1 %vm518_vm0, %v4094_v26  ;;  %vm1537_vm5 = vweird.f32 %v4201_v34  ;;  %v1570_v57 = vand.u32 2147483647, %v5040_v32 }
  0xe7   : > { %v4205_v41 = vpop.eup %4204  ;;  %v1547_v43 = vmul.f32 %v4203_v38, %v5035_v23  ;;  %3928 = vmatmul.msk.bf16.gmra.mxu2 %vm518_vm0, %v4094_v26  ;;  %4210 = vrcp.f32 %v5043_v36  ;;  %vm1552_vm6 = vweird.f32 %v4203_v38  ;;  %v1572_v60 = vand.u32 2147483648, %v5040_v32  ;;  %vm1538_vm7 = vmor %vm1536_vm1, %vm1537_vm5 }
  0xe8   : > { %3944 = vmatmul.msk.bf16.gmra.mxu3 %vm518_vm0, %v4094_v26  ;;  %v4207_v45 = vpop.eup %4206  ;;  %v1533_v46 = vsub.f32 1.0, %v1532_v39  ;;  %4212 = vpow2.f32 %v3957_v37  ;;  %v5062_v53 = vadd.f32 1.0, %v4205_v41  ;;  %v1585_v61 = vand.u32 2147483647, %v5043_v36  ;;  %vm1553_vm9 = vmor %vm1551_vm3, %vm1552_vm6 }
  0xe9   : > { %v1548_v49 = vsub.f32 1.0, %v1547_v43  ;;  %v5064_v54 = vadd.f32 1.0, %v4207_v45  ;;  %4214 = vpow2.f32 %v3958_v44  ;;  %vm1566_vm8 = vweird.f32 %v5040_v32  ;;  %v4095_v43 = vld [vmem:[%s4988_s15 + $0x50] sm:$0xff] }
  0xea   : > { %v1534_v52 = vmul.f32 %v4201_v34, %v1533_v46  ;;  %4216 = vrcp.f32 %v5062_v53  ;;  %vm1581_vm10 = vweird.f32 %v5043_v36  ;;  %v1587_v3 = vand.u32 2147483648, %v5043_v36  ;;  %v855_v17 = vpop.f32.mrf.mxu2 }
  0xeb   : > { %v1549_v56 = vmul.f32 %v4203_v38, %v1548_v49  ;;  %4218 = vrcp.f32 %v5064_v54  ;;  %vm5090_vm11 = vcmp.eq.f32.partialorder %v1570_v57, 8.507059e+37  ;;  %v1573_v11 = vor.u32 1.1754944e-38, %v1572_v60  ;;  %v944_v42 = vpop.f32.mrf.mxu3 }
  0xec   : > { %v4209_v58 = vpop.eup %4208  ;;  %v1535_v59 = vadd.f32 %v4201_v34, %v1534_v52  ;;  %vm5094_vm12 = vcmp.eq.f32.partialorder %v1585_v61, 8.507059e+37  ;;  %v1588_v19 = vor.u32 1.1754944e-38, %v1587_v3  ;;  %4220 = vpow2.f32 %v3959_v51 }
  0xed   : > { %v1550_v62 = vadd.f32 %v4203_v38, %v1549_v56  ;;  %v1562_v63 = vmul.f32 %v4209_v58, %v5040_v32  ;;  %v4211_v1 = vpop.eup %4210  ;;  %vm1567_vm13 = vweird.f32 %v4209_v58  ;;  %vm1596_vm1 = vweird.f32 %v5062_v53 }
  0xee   : > { %v1539_v2 = vsel %vm1538_vm7, %v4201_v34, %v1535_v59  ;;  %v4213_v4 = vpop.eup %4212  ;;  %v1577_v8 = vmul.f32 %v4211_v1, %v5043_v36  ;;  %vm1582_vm14 = vweird.f32 %v4211_v1  ;;  %vm1568_vm15 = vmor %vm1566_vm8, %vm1567_vm13  ;;  %v1600_v26 = vand.u32 2147483647, %v5062_v53 }
  0xef   : > { %v1544_v5 = vsel %vm5048_vm2, %v1543_v47, %v1539_v2  ;;  %v1554_v6 = vsel %vm1553_vm9, %v4203_v38, %v1550_v62  ;;  %v1563_v7 = vsub.f32 1.0, %v1562_v63  ;;  %v4215_v13 = vpop.eup %4214  ;;  %v5098_v20 = vadd.f32 1.0, %v4213_v4  ;;  %vm1583_vm2 = vmor %vm1581_vm10, %vm1582_vm14  ;;  %v679_v62 = vpop.f32.mrf.mxu0 }
  0xf0   : > { %v1559_v9 = vsel %vm5056_vm4, %v1558_v50, %v1554_v6  ;;  %v1578_v16 = vsub.f32 1.0, %v1577_v8  ;;  %v4217_v18 = vpop.eup %4216  ;;  %v5105_v24 = vadd.f32 1.0, %v4215_v13  ;;  %v3961_v27 = vmul.f32 -1.442695, %v855_v17 }
  0xf1   : > { %v3451_v14 = vpack.c.bf16 %v1559_v9, %v1544_v5  ;;  %v1564_v15 = vmul.f32 %v4209_v58, %v1563_v7  ;;  %v1592_v23 = vmul.f32 %v4217_v18, %v5062_v53  ;;  %v4219_v25 = vpop.eup %4218  ;;  %4222 = vrcp.f32 %v5098_v20 }
  0xf2   : > { %v1579_v22 = vmul.f32 %v4211_v1, %v1578_v16  ;;  %v1607_v31 = vmul.f32 %v4219_v25, %v5064_v54  ;;  %vm1597_vm3 = vweird.f32 %v4217_v18  ;;  %v1602_v32 = vand.u32 2147483648, %v5062_v53  ;;  %v4221_v39 = vpop.eup %4220  ;;  %v857_v9 = vpop.f32.mrf.mxu2 }
  0xf3   : > { %3515 = vst [vmem:[%s5101_s20] sm:$0xff] %v3451_v14  ;;  %v1565_v21 = vadd.f32 %v4209_v58, %v1564_v15  ;;  %v1593_v30 = vsub.f32 1.0, %v1592_v23  ;;  %v1615_v34 = vand.u32 2147483647, %v5064_v54  ;;  %4224 = vrcp.f32 %v5105_v24  ;;  %vm1598_vm7 = vmor %vm1596_vm1, %vm1597_vm3  ;;  %v946_v17 = vpop.f32.mrf.mxu3 }
  0xf4   : > { %v1580_v29 = vadd.f32 %v4211_v1, %v1579_v22  ;;  %v1608_v38 = vsub.f32 1.0, %v1607_v31  ;;  %vm5124_vm4 = vcmp.eq.f32.partialorder %v1600_v26, 8.507059e+37  ;;  %vm1611_vm5 = vweird.f32 %v5064_v54 }
  0xf5   : > { %v1569_v28 = vsel %vm1568_vm15, %v4209_v58, %v1565_v21  ;;  %v1594_v37 = vmul.f32 %v4217_v18, %v1593_v30  ;;  %v1617_v36 = vand.u32 2147483648, %v5064_v54  ;;  %vm1612_vm6 = vweird.f32 %v4219_v25  ;;  %3897 = vmatmul.msk.bf16.gmra.mxu0 %vm518_vm0, %v4095_v43 }
  0xf6   : > { %v1574_v33 = vsel %vm5090_vm11, %v1573_v11, %v1569_v28  ;;  %v1584_v35 = vsel %vm1583_vm2, %v4211_v1, %v1580_v29  ;;  %v1609_v46 = vmul.f32 %v4219_v25, %v1608_v38  ;;  %v1603_v48 = vor.u32 1.1754944e-38, %v1602_v32  ;;  %3913 = vmatmul.msk.bf16.gmra.mxu1 %vm518_vm0, %v4095_v43  ;;  %vm1613_vm9 = vmor %vm1611_vm5, %vm1612_vm6  ;;  %v768_v1 = vpop.f32.mrf.mxu1 }
  0xf7   : > { %v1589_v40 = vsel %vm5094_vm12, %v1588_v19, %v1584_v35  ;;  %v1595_v45 = vadd.f32 %v4217_v18, %v1594_v37  ;;  %v5131_v47 = vpop.eup %4222  ;;  %v1630_v49 = vand.u32 2147483647, %v5098_v20  ;;  %v5137_v50 = vadd.f32 1.0, %v4221_v39  ;;  %3929 = vmatmul.msk.bf16.gmra.mxu2 %vm518_vm0, %v4095_v43 }
  0xf8   : > { %v3452_v44 = vpack.c.bf16 %v1589_v40, %v1574_v33  ;;  %4226 = vpow2.f32 %v5077_v0  ;;  %v1610_v52 = vadd.f32 %v4219_v25, %v1609_v46  ;;  %vm1616_vm8 = vcmp.eq.f32.partialorder %v1615_v34, 8.507059e+37  ;;  %3945 = vmatmul.msk.bf16.gmra.mxu3 %vm518_vm0, %v4095_v43  ;;  %v682_v40 = vpop.f32.mrf.mxu0 }
  0xf9   : > { %v1599_v51 = vsel %vm1598_vm7, %v4217_v18, %v1595_v45  ;;  %v1622_v55 = vmul.f32 %v5131_v47, %v5098_v20  ;;  %v1618_v56 = vor.u32 1.1754944e-38, %v1617_v36  ;;  %4228 = vrcp.f32 %v5137_v50  ;;  %v4225_v58 = vpop.eup %4224 }
  0xfa   : > { %3516 = vst [vmem:[%s5101_s20 + $0x8] sm:$0xff] %v3452_v44  ;;  %v1604_v53 = vsel %vm5124_vm4, %v1603_v48, %v1599_v51  ;;  %v3962_v57 = vmul.f32 -1.442695, %v944_v42  ;;  %v1614_v59 = vsel %vm1613_vm9, %v4219_v25, %v1610_v52  ;;  %vm1626_vm10 = vweird.f32 %v5098_v20  ;;  %v860_v48 = vpop.f32.mrf.mxu2 }
  0xfb   : > { %v1623_v60 = vsub.f32 1.0, %v1622_v55  ;;  %v1632_v61 = vand.u32 2147483648, %v5098_v20  ;;  %v1619_v63 = vsel %vm1616_vm8, %v1618_v56, %v1614_v59  ;;  %vm5155_vm11 = vcmp.eq.f32.partialorder %v1630_v49, 8.507059e+37 }
  0xfc   : > { %v1637_v54 = vmul.f32 %v4225_v58, %v5105_v24  ;;  %4230 = vpow2.f32 %v3961_v27  ;;  %v3453_v2 = vpack.c.bf16 %v1619_v63, %v1604_v53  ;;  %vm1627_vm12 = vweird.f32 %v5131_v47 }
  0xfd   : > { %v1624_v3 = vmul.f32 %v5131_v47, %v1623_v60  ;;  %v1645_v4 = vand.u32 2147483647, %v5105_v24  ;;  %v1647_v7 = vand.u32 2147483648, %v5105_v24  ;;  %4232 = vpow2.f32 %v3962_v57  ;;  %vm5173_vm14 = vmor %vm1626_vm10, %vm1627_vm12 }
  0xfe   : > { %v4227_v5 = vpop.eup %4226  ;;  %v1638_v6 = vsub.f32 1.0, %v1637_v54  ;;  %v3963_v8 = vmul.f32 -1.442695, %v679_v62  ;;  %3517 = vst [vmem:[%s5101_s20 + $0x10] sm:$0xff] %v3453_v2  ;;  %v1633_v11 = vor.u32 1.1754944e-38, %v1632_v61  ;;  %vm1641_vm13 = vweird.f32 %v5105_v24  ;;  %v771_v41 = vpop.f32.mrf.mxu1 }
  0xff   : > { %v1625_v10 = vadd.f32 %v5131_v47, %v1624_v3  ;;  %v5167_v12 = vadd.f32 1.0, %v4227_v5  ;;  %v5169_v13 = vpop.eup %4228  ;;  %vm1642_vm15 = vweird.f32 %v4225_v58  ;;  %v3964_v16 = vmul.f32 -1.442695, %v768_v1 }
 0x100   : > { %v1639_v15 = vmul.f32 %v4225_v58, %v1638_v6  ;;  %4234 = vpow2.f32 %v3963_v8  ;;  %vm5180_vm1 = vcmp.eq.f32.partialorder %v1645_v4, 8.507059e+37  ;;  %v1652_v20 = vmul.f32 %v5169_v13, %v5137_v50  ;;  %vm1643_vm3 = vmor %vm1641_vm13, %vm1642_vm15 }
 0x101   : > { %v1629_v18 = vsel %vm5173_vm14, %v5131_v47, %v1625_v10  ;;  %4236 = vrcp.f32 %v5167_v12  ;;  %v1648_v23 = vor.u32 1.1754944e-38, %v1647_v7  ;;  %vm1656_vm2 = vweird.f32 %v5137_v50 }
 0x102   : > { %v4231_v21 = vpop.eup %4230  ;;  %v1640_v22 = vadd.f32 %v4225_v58, %v1639_v15  ;;  %v3965_v25 = vmul.f32 -1.442695, %v857_v9  ;;  %v1634_v26 = vsel %vm5155_vm11, %v1633_v11, %v1629_v18  ;;  %v1653_v27 = vsub.f32 1.0, %v1652_v20 }
 0x103   : > { %v5192_v28 = vadd.f32 1.0, %v4231_v21  ;;  %v3966_v29 = vmul.f32 -1.442695, %v946_v17  ;;  %v4233_v30 = vpop.eup %4232  ;;  %v1660_v33 = vand.u32 2147483647, %v5137_v50  ;;  %v1662_v32 = vand.u32 2147483648, %v5137_v50 }
 0x104   : > { %v1644_v31 = vsel %vm1643_vm3, %v4225_v58, %v1640_v22  ;;  %4238 = vpow2.f32 %v3964_v16  ;;  %v1654_v35 = vmul.f32 %v5169_v13, %v1653_v27  ;;  %vm1657_vm4 = vweird.f32 %v5169_v13  ;;  %v862_v27 = vpop.f32.mrf.mxu2 }
 0x105   : > { %v1649_v34 = vsel %vm5180_vm1, %v1648_v23, %v1644_v31  ;;  %4240 = vrcp.f32 %v5192_v28  ;;  %v1675_v38 = vand.u32 2147483647, %v5167_v12  ;;  %v1677_v39 = vand.u32 2147483648, %v5167_v12  ;;  %vm5218_vm6 = vmor %vm1656_vm2, %vm1657_vm4 }
 0x106   : > { %v4235_v24 = vpop.eup %4234  ;;  %v3454_v37 = vpack.c.bf16 %v1649_v34, %v1634_v26  ;;  %4242 = vpow2.f32 %v3965_v25  ;;  %v1655_v42 = vadd.f32 %v5169_v13, %v1654_v35  ;;  %v5204_v43 = vadd.f32 1.0, %v4233_v30 }
 0x107   : > { %v4237_v36 = vpop.eup %4236  ;;  %v5206_v44 = vadd.f32 1.0, %v4235_v24  ;;  %4244 = vpow2.f32 %v3966_v29  ;;  %vm5209_vm5 = vcmp.eq.f32.partialorder %v1660_v33, 8.507059e+37  ;;  %v1663_v46 = vor.u32 1.1754944e-38, %v1662_v32 }
 0x108   : > { %3518 = vst [vmem:[%s5101_s20 + $0x18] sm:$0xff] %v3454_v37  ;;  %v1667_v47 = vmul.f32 %v4237_v36, %v5167_v12  ;;  %v1692_v51 = vand.u32 2147483648, %v5192_v28  ;;  %4246 = vrcp.f32 %v5204_v43  ;;  %v3967_v52 = vmul.f32 -1.442695, %v682_v40 }
 0x109   : > { %v5224_v55 = vmul.f32 -1.442695, %v771_v41  ;;  %v1659_v56 = vsel %vm5218_vm6, %v5169_v13, %v1655_v42  ;;  %v1690_v58 = vand.u32 2147483647, %v5192_v28  ;;  %4248 = vrcp.f32 %v5206_v44  ;;  %v949_v41 = vpop.f32.mrf.mxu3 }
 0x10a   : > { %v4239_v53 = vpop.eup %4238  ;;  %v1668_v57 = vsub.f32 1.0, %v1667_v47  ;;  %vm1671_vm7 = vweird.f32 %v5167_v12  ;;  %vm5234_vm8 = vcmp.eq.f32.partialorder %v1675_v38, 8.507059e+37  ;;  %v1678_v60 = vor.u32 1.1754944e-38, %v1677_v39 }
 0x10b   : > { %v5231_v50 = vpop.eup %4240  ;;  %v5238_v61 = vmul.f32 -1.442695, %v860_v48  ;;  %vm1672_vm9 = vweird.f32 %v4237_v36  ;;  %v1705_v54 = vand.u32 2147483647, %v5204_v43  ;;  %v1664_v2 = vsel %vm5209_vm5, %v1663_v46, %v1659_v56  ;;  %v4096_v56 = vld [vmem:[%s4988_s15 + $0x58] sm:$0xff] }
 0x10c   : > { %v4243_v62 = vpop.eup %4242  ;;  %v1669_v63 = vmul.f32 %v4237_v36, %v1668_v57  ;;  %v1682_v0 = vmul.f32 %v5231_v50, %v5192_v28  ;;  %vm1686_vm10 = vweird.f32 %v5192_v28  ;;  %v1693_v3 = vor.u32 1.1754944e-38, %v1692_v51  ;;  %vm1673_vm13 = vmor %vm1671_vm7, %vm1672_vm9  ;;  %3898 = vmatmul.msk.bf16.gmra.mxu0 %vm518_vm0, %v4096_v56  ;;  %3914 = vmatmul.msk.bf16.gmra.mxu1 %vm518_vm0, %v4096_v56 }
 0x10d   : > { %v4245_v1 = vpop.eup %4244  ;;  %v5246_v4 = vadd.f32 1.0, %v4239_v53  ;;  %vm5248_vm11 = vcmp.eq.f32.partialorder %v1690_v58, 8.507059e+37  ;;  %vm1701_vm12 = vweird.f32 %v5204_v43  ;;  %v1707_v8 = vand.u32 2147483648, %v5204_v43  ;;  %3930 = vmatmul.msk.bf16.gmra.mxu2 %vm518_vm0, %v4096_v56  ;;  %3946 = vmatmul.msk.bf16.gmra.mxu3 %vm518_vm0, %v4096_v56 }
 0x10e   : > { %v1670_v5 = vadd.f32 %v4237_v36, %v1669_v63  ;;  %v1683_v6 = vsub.f32 1.0, %v1682_v0  ;;  %4250 = vpow2.f32 %v3967_v52  ;;  %v4247_v9 = vpop.eup %4246  ;;  %vm1687_vm14 = vweird.f32 %v5231_v50 }
 0x10f   : > { %v1720_v10 = vand.u32 2147483647, %v5206_v44  ;;  %4252 = vrcp.f32 %v5246_v4  ;;  %v5260_v11 = vadd.f32 1.0, %v4243_v62  ;;  %v5262_v13 = vpop.eup %4248  ;;  %v1697_v16 = vmul.f32 %v4247_v9, %v5204_v43  ;;  %vm5284_vm1 = vmor %vm1686_vm10, %vm1687_vm14 }
 0x110   : > { %v1674_v14 = vsel %vm1673_vm13, %v4237_v36, %v1670_v5  ;;  %v1684_v15 = vmul.f32 %v5231_v50, %v1683_v6  ;;  %vm5266_vm15 = vcmp.eq.f32.partialorder %v1705_v54, 8.507059e+37  ;;  %v5270_v12 = vadd.f32 1.0, %v4245_v1  ;;  %v773_v6 = vpop.f32.mrf.mxu1 }
 0x111   : > { %v1679_v18 = vsel %vm5234_vm8, %v1678_v60, %v1674_v14  ;;  %v1712_v19 = vmul.f32 %v5262_v13, %v5206_v44  ;;  %v1722_v20 = vand.u32 2147483648, %v5206_v44  ;;  %v1735_v21 = vand.u32 2147483647, %v5246_v4 }
 0x112   : > { %v3455_v22 = vpack.c.bf16 %v1679_v18, %v1664_v2  ;;  %v1685_v23 = vadd.f32 %v5231_v50, %v1684_v15  ;;  %v1698_v25 = vsub.f32 1.0, %v1697_v16  ;;  %v1737_v26 = vand.u32 2147483648, %v5246_v4 }
 0x113   : > { %v1708_v29 = vor.u32 1.1754944e-38, %v1707_v8  ;;  %v1713_v30 = vsub.f32 1.0, %v1712_v19  ;;  %vm1716_vm2 = vweird.f32 %v5206_v44  ;;  %4254 = vrcp.f32 %v5260_v11  ;;  %v684_v44 = vpop.f32.mrf.mxu0 }
 0x114   : > { %v4251_v31 = vpop.eup %4250  ;;  %3519 = vst [vmem:[%s5101_s20 + $0x20] sm:$0xff] %v3455_v22  ;;  %v1689_v33 = vsel %vm5284_vm1, %v5231_v50, %v1685_v23  ;;  %v1699_v32 = vmul.f32 %v4247_v9, %v1698_v25  ;;  %vm1702_vm3 = vweird.f32 %v4247_v9  ;;  %vm5294_vm4 = vcmp.eq.f32.partialorder %v1720_v10, 8.507059e+37 }
 0x115   : > { %4256 = vrcp.f32 %v5270_v12  ;;  %v4253_v34 = vpop.eup %4252  ;;  %v1714_v35 = vmul.f32 %v5262_v13, %v1713_v30  ;;  %vm1717_vm5 = vweird.f32 %v5262_v13  ;;  %v1723_v24 = vor.u32 1.1754944e-38, %v1722_v20  ;;  %vm1703_vm8 = vmor %vm1701_vm12, %vm1702_vm3 }
 0x116   : > { %vm1731_vm6 = vweird.f32 %v5246_v4  ;;  %v1700_v37 = vadd.f32 %v4247_v9, %v1699_v32  ;;  %v1727_v38 = vmul.f32 %v4253_v34, %v5246_v4  ;;  %vm5303_vm7 = vcmp.eq.f32.partialorder %v1735_v21, 8.507059e+37  ;;  %vm5323_vm10 = vmor %vm1716_vm2, %vm1717_vm5 }
 0x117   : > { %v1738_v40 = vor.u32 1.1754944e-38, %v1737_v26  ;;  %v1694_v36 = vsel %vm5248_vm11, %v1693_v3, %v1689_v33  ;;  %v1715_v42 = vadd.f32 %v5262_v13, %v1714_v35  ;;  %v1750_v45 = vand.u32 2147483647, %v5260_v11 }
 0x118   : > { %v5313_v46 = vadd.f32 1.0, %v4251_v31  ;;  %v1704_v47 = vsel %vm1703_vm8, %v4247_v9, %v1700_v37  ;;  %v1728_v48 = vsub.f32 1.0, %v1727_v38  ;;  %vm1746_vm9 = vweird.f32 %v5260_v11 }
 0x119   : > { %4258 = vpow2.f32 %v5224_v55  ;;  %v4255_v49 = vpop.eup %4254  ;;  %v1709_v51 = vsel %vm5266_vm15, %v1708_v29, %v1704_v47  ;;  %vm1732_vm11 = vweird.f32 %v4253_v34  ;;  %v1752_v52 = vand.u32 2147483648, %v5260_v11 }
 0x11a   : > { %v3970_v53 = vmul.f32 -1.442695, %v949_v41  ;;  %v3456_v55 = vpack.c.bf16 %v1709_v51, %v1694_v36  ;;  %v1719_v58 = vsel %vm5323_vm10, %v5262_v13, %v1715_v42  ;;  %v1729_v50 = vmul.f32 %v4253_v34, %v1728_v48  ;;  %vm1733_vm14 = vmor %vm1731_vm6, %vm1732_vm11  ;;  %v951_v36 = vpop.f32.mrf.mxu3 }
 0x11b   : > { %v4257_v57 = vpop.eup %4256  ;;  %v1742_v59 = vmul.f32 %v4255_v49, %v5260_v11  ;;  %vm5333_vm12 = vcmp.eq.f32.partialorder %v1750_v45, 8.507059e+37  ;;  %vm1761_vm13 = vweird.f32 %v5270_v12  ;;  %4260 = vrcp.f32 %v5313_v46 }
 0x11c   : > { %v1757_v62 = vmul.f32 %v4257_v57, %v5270_v12  ;;  %3520 = vst [vmem:[%s5101_s20 + $0x28] sm:$0xff] %v3456_v55  ;;  %v1730_v63 = vadd.f32 %v4253_v34, %v1729_v50  ;;  %v1765_v54 = vand.u32 2147483647, %v5270_v12  ;;  %v1767_v1 = vand.u32 2147483648, %v5270_v12 }
 0x11d   : > { %v1743_v0 = vsub.f32 1.0, %v1742_v59  ;;  %v1724_v2 = vsel %vm5294_vm4, %v1723_v24, %v1719_v58  ;;  %4262 = vpow2.f32 %v5238_v61  ;;  %v3971_v5 = vmul.f32 -1.442695, %v684_v44 }
 0x11e   : > { %v1758_v3 = vsub.f32 1.0, %v1757_v62  ;;  %v1734_v8 = vsel %vm1733_vm14, %v4253_v34, %v1730_v63  ;;  %vm1747_vm15 = vweird.f32 %v4255_v49  ;;  %4264 = vpow2.f32 %v3970_v53 }
 0x11f   : > { %v4259_v7 = vpop.eup %4258  ;;  %v1744_v9 = vmul.f32 %v4255_v49, %v1743_v0  ;;  %v1739_v10 = vsel %vm5303_vm7, %v1738_v40, %v1734_v8  ;;  %vm1762_vm1 = vweird.f32 %v4257_v57  ;;  %4266 = vpow2.f32 %v3971_v5  ;;  %vm1748_vm2 = vmor %vm1746_vm9, %vm1747_vm15 }
 0x120   : > { %v1759_v13 = vmul.f32 %v4257_v57, %v1758_v3  ;;  %v5355_v14 = vadd.f32 1.0, %v4259_v7  ;;  %v3457_v4 = vpack.c.bf16 %v1739_v10, %v1724_v2  ;;  %v3972_v16 = vmul.f32 -1.442695, %v773_v6  ;;  %vm1763_vm4 = vmor %vm1761_vm13, %vm1762_vm1 }
 0x121   : > { %v1745_v15 = vadd.f32 %v4255_v49, %v1744_v9  ;;  %v5357_v61 = vpop.eup %4260  ;;  %v1753_v17 = vor.u32 1.1754944e-38, %v1752_v52  ;;  %vm1766_vm3 = vcmp.eq.f32.partialorder %v1765_v54, 8.507059e+37  ;;  %v1768_v20 = vor.u32 1.1754944e-38, %v1767_v1  ;;  %v687_v1 = vpop.f32.mrf.mxu0 }
 0x122   : > { %v1760_v18 = vadd.f32 %v4257_v57, %v1759_v13  ;;  %4268 = vrcp.f32 %v5355_v14  ;;  %3521 = vst [vmem:[%s5101_s20 + $0x30] sm:$0xff] %v3457_v4  ;;  %v1772_v21 = vmul.f32 %v5357_v61, %v5313_v46  ;;  %v1780_v22 = vand.u32 2147483647, %v5313_v46 }
 0x123   : > { %v1749_v19 = vsel %vm1748_vm2, %v4255_v49, %v1745_v15  ;;  %v4263_v23 = vpop.eup %4262  ;;  %v1782_v26 = vand.u32 2147483648, %v5313_v46  ;;  %4270 = vpow2.f32 %v3972_v16  ;;  %v1795_v32 = vand.u32 2147483647, %v5355_v14  ;;  %v776_v16 = vpop.f32.mrf.mxu1 }
 0x124   : > { %v1754_v11 = vsel %vm5333_vm12, %v1753_v17, %v1749_v19  ;;  %v1764_v25 = vsel %vm1763_vm4, %v4257_v57, %v1760_v18  ;;  %v4265_v29 = vpop.eup %4264  ;;  %v1773_v12 = vsub.f32 1.0, %v1772_v21  ;;  %v5371_v31 = vadd.f32 1.0, %v4263_v23 }
 0x125   : > { %v1769_v30 = vsel %vm1766_vm3, %v1768_v20, %v1764_v25  ;;  %v5374_v28 = vadd.f32 1.0, %v4265_v29  ;;  %v4267_v34 = vpop.eup %4266  ;;  %v3973_v24 = vmul.f32 -1.442695, %v862_v27  ;;  %vm1776_vm5 = vweird.f32 %v5313_v46  ;;  %v865_v20 = vpop.f32.mrf.mxu2 }
 0x126   : > { %v3458_v33 = vpack.c.bf16 %v1769_v30, %v1754_v11  ;;  %v1774_v35 = vmul.f32 %v5357_v61, %v1773_v12  ;;  %4272 = vrcp.f32 %v5371_v31  ;;  %vm5380_vm6 = vcmp.eq.f32.partialorder %v1780_v22, 8.507059e+37 }
 0x127   : > { %v1783_v39 = vor.u32 1.1754944e-38, %v1782_v26  ;;  %4274 = vrcp.f32 %v5374_v28  ;;  %vm1777_vm7 = vweird.f32 %v5357_v61  ;;  %vm1791_vm8 = vweird.f32 %v5355_v14 }
 0x128   : > { %v4269_v37 = vpop.eup %4268  ;;  %3522 = vst [vmem:[%s5101_s20 + $0x38] sm:$0xff] %v3458_v33  ;;  %v1775_v40 = vadd.f32 %v5357_v61, %v1774_v35  ;;  %vm5389_vm9 = vcmp.eq.f32.partialorder %v1795_v32, 8.507059e+37  ;;  %v1797_v47 = vand.u32 2147483648, %v5355_v14  ;;  %v1810_v48 = vand.u32 2147483647, %v5371_v31  ;;  %vm5402_vm10 = vmor %vm1776_vm5, %vm1777_vm7  ;;  %v954_v33 = vpop.f32.mrf.mxu3 }
 0x129   : > { %v1787_v41 = vmul.f32 %v4269_v37, %v5355_v14  ;;  %v4271_v42 = vpop.eup %4270  ;;  %v5395_v49 = vadd.f32 1.0, %v4267_v34  ;;  %v1812_v43 = vand.u32 2147483648, %v5371_v31  ;;  %4276 = vpow2.f32 %v3973_v24 }
 0x12a   : > { %v5398_v52 = vadd.f32 1.0, %v4271_v42  ;;  %v1825_v56 = vand.u32 2147483647, %v5374_v28  ;;  %v1827_v57 = vand.u32 2147483648, %v5374_v28  ;;  %v3974_v55 = vmul.f32 -1.442695, %v951_v36 }
 0x12b   : > { %v1788_v51 = vsub.f32 1.0, %v1787_v41  ;;  %4278 = vrcp.f32 %v5395_v49  ;;  %v1779_v50 = vsel %vm5402_vm10, %v5357_v61, %v1775_v40  ;;  %vm1792_vm11 = vweird.f32 %v4269_v37 }
 0x12c   : > { %v4273_v58 = vpop.eup %4272  ;;  %4280 = vrcp.f32 %v5398_v52  ;;  %v1798_v44 = vor.u32 1.1754944e-38, %v1797_v47  ;;  %vm1806_vm12 = vweird.f32 %v5371_v31  ;;  %vm1821_vm13 = vweird.f32 %v5374_v28  ;;  %vm1793_vm15 = vmor %vm1791_vm8, %vm1792_vm11  ;;  %v4097_v47 = vld [vmem:[%s4988_s15 + $0x60] sm:$0xff] }
 0x12d   : > { %v1789_v59 = vmul.f32 %v4269_v37, %v1788_v51  ;;  %v4275_v46 = vpop.eup %4274  ;;  %v1802_v60 = vmul.f32 %v4273_v58, %v5371_v31  ;;  %vm5416_vm14 = vcmp.eq.f32.partialorder %v1810_v48, 8.507059e+37  ;;  %v1813_v0 = vor.u32 1.1754944e-38, %v1812_v43  ;;  %3899 = vmatmul.msk.bf16.gmra.mxu0 %vm518_vm0, %v4097_v47  ;;  %3915 = vmatmul.msk.bf16.gmra.mxu1 %vm518_vm0, %v4097_v47 }
 0x12e   : > { %v1817_v54 = vmul.f32 %v4275_v46, %v5374_v28  ;;  %v1784_v2 = vsel %vm5380_vm6, %v1783_v39, %v1779_v50  ;;  %vm5425_vm1 = vcmp.eq.f32.partialorder %v1825_v56, 8.507059e+37  ;;  %v1828_v6 = vor.u32 1.1754944e-38, %v1827_v57  ;;  %v778_v57 = vpop.f32.mrf.mxu1  ;;  %3931 = vmatmul.msk.bf16.gmra.mxu2 %vm518_vm0, %v4097_v47  ;;  %3947 = vmatmul.msk.bf16.gmra.mxu3 %vm518_vm0, %v4097_v47 }
 0x12f   : > { %v1790_v62 = vadd.f32 %v4269_v37, %v1789_v59  ;;  %v1803_v3 = vsub.f32 1.0, %v1802_v60  ;;  %v4277_v7 = vpop.eup %4276  ;;  %vm1807_vm2 = vweird.f32 %v4273_v58  ;;  %vm1836_vm3 = vweird.f32 %v5395_v49 }
 0x130   : > { %v1818_v9 = vsub.f32 1.0, %v1817_v54  ;;  %4282 = vpow2.f32 %v3974_v55  ;;  %v5432_v4 = vadd.f32 1.0, %v4277_v7  ;;  %v3975_v15 = vmul.f32 -1.442695, %v687_v1  ;;  %vm1808_vm5 = vmor %vm1806_vm12, %vm1807_vm2  ;;  %v956_v5 = vpop.f32.mrf.mxu3 }
 0x131   : > { %v1794_v8 = vsel %vm1793_vm15, %v4269_v37, %v1790_v62  ;;  %v4279_v10 = vpop.eup %4278  ;;  %v1804_v14 = vmul.f32 %v4273_v58, %v1803_v3  ;;  %vm1822_vm4 = vweird.f32 %v4275_v46  ;;  %v1840_v22 = vand.u32 2147483647, %v5395_v49 }
 0x132   : > { %v1799_v13 = vsel %vm5389_vm9, %v1798_v44, %v1794_v8  ;;  %v4281_v61 = vpop.eup %4280  ;;  %v1819_v18 = vmul.f32 %v4275_v46, %v1818_v9  ;;  %v1832_v19 = vmul.f32 %v4279_v10, %v5395_v49  ;;  %4284 = vrcp.f32 %v5432_v4  ;;  %vm1823_vm6 = vmor %vm1821_vm13, %vm1822_vm4 }
 0x133   : > { %v3459_v17 = vpack.c.bf16 %v1799_v13, %v1784_v2  ;;  %v1805_v21 = vadd.f32 %v4273_v58, %v1804_v14  ;;  %v1847_v23 = vmul.f32 %v4281_v61, %v5398_v52  ;;  %v1842_v26 = vand.u32 2147483648, %v5395_v49  ;;  %v689_v49 = vpop.f32.mrf.mxu0 }
 0x134   : > { %v1820_v11 = vadd.f32 %v4275_v46, %v1819_v18  ;;  %v1833_v25 = vsub.f32 1.0, %v1832_v19  ;;  %v1855_v27 = vand.u32 2147483647, %v5398_v52  ;;  %v1857_v12 = vand.u32 2147483648, %v5398_v52 }
 0x135   : > { %3523 = vst [vmem:[%s5101_s20 + $0x40] sm:$0xff] %v3459_v17  ;;  %v1809_v29 = vsel %vm1808_vm5, %v4273_v58, %v1805_v21  ;;  %v1848_v30 = vsub.f32 1.0, %v1847_v23  ;;  %4286 = vpow2.f32 %v3975_v15  ;;  %vm1837_vm7 = vweird.f32 %v4279_v10 }
 0x136   : > { %v4283_v32 = vpop.eup %4282  ;;  %v1814_v31 = vsel %vm5416_vm14, %v1813_v0, %v1809_v29  ;;  %v1824_v34 = vsel %vm1823_vm6, %v4275_v46, %v1820_v11  ;;  %v1834_v35 = vmul.f32 %v4279_v10, %v1833_v25  ;;  %vm1852_vm8 = vweird.f32 %v4281_v61  ;;  %vm1838_vm10 = vmor %vm1836_vm3, %vm1837_vm7  ;;  %v867_v46 = vpop.f32.mrf.mxu2 }
 0x137   : > { %v1829_v24 = vsel %vm5425_vm1, %v1828_v6, %v1824_v34  ;;  %v1849_v37 = vmul.f32 %v4281_v61, %v1848_v30  ;;  %v5451_v28 = vadd.f32 1.0, %v4283_v32  ;;  %vm1851_vm9 = vweird.f32 %v5398_v52  ;;  %v781_v29 = vpop.f32.mrf.mxu1 }
 0x138   : > { %v3460_v38 = vpack.c.bf16 %v1829_v24, %v1814_v31  ;;  %v1835_v39 = vadd.f32 %v4279_v10, %v1834_v35  ;;  %v3976_v40 = vmul.f32 -1.442695, %v776_v16  ;;  %v5454_v41 = vpop.eup %4284  ;;  %v1843_v36 = vor.u32 1.1754944e-38, %v1842_v26  ;;  %vm1853_vm12 = vmor %vm1851_vm9, %vm1852_vm8 }
 0x139   : > { %v1850_v42 = vadd.f32 %v4281_v61, %v1849_v37  ;;  %4288 = vrcp.f32 %v5451_v28  ;;  %v3977_v45 = vmul.f32 -1.442695, %v865_v20  ;;  %vm1841_vm11 = vcmp.eq.f32.partialorder %v1840_v22, 8.507059e+37 }
 0x13a   : > { %3524 = vst [vmem:[%s5101_s20 + $0x48] sm:$0xff] %v3460_v38  ;;  %v1839_v48 = vsel %vm1838_vm10, %v4279_v10, %v1835_v39  ;;  %v1858_v51 = vor.u32 1.1754944e-38, %v1857_v12  ;;  %v1862_v43 = vmul.f32 %v5454_v41, %v5432_v4  ;;  %vm1856_vm13 = vcmp.eq.f32.partialorder %v1855_v27, 8.507059e+37 }
 0x13b   : > { %v4287_v52 = vpop.eup %4286  ;;  %v1844_v53 = vsel %vm1841_vm11, %v1843_v36, %v1839_v48  ;;  %v1854_v56 = vsel %vm1853_vm12, %v4281_v61, %v1850_v42  ;;  %4290 = vpow2.f32 %v3976_v40  ;;  %v1870_v50 = vand.u32 2147483647, %v5432_v4  ;;  %v692_v27 = vpop.f32.mrf.mxu0 }
 0x13c   : > { %v1859_v55 = vsel %vm1856_vm13, %v1858_v51, %v1854_v56  ;;  %v1863_v58 = vsub.f32 1.0, %v1862_v43  ;;  %v5467_v59 = vadd.f32 1.0, %v4287_v52  ;;  %v1872_v60 = vand.u32 2147483648, %v5432_v4 }
 0x13d   : > { %v3461_v44 = vpack.c.bf16 %v1859_v55, %v1844_v53  ;;  %4292 = vpow2.f32 %v3977_v45  ;;  %v3978_v62 = vmul.f32 -1.442695, %v954_v33  ;;  %vm1866_vm14 = vweird.f32 %v5432_v4 }
 0x13e   : > { %v1864_v63 = vmul.f32 %v5454_v41, %v1863_v58  ;;  %4294 = vrcp.f32 %v5467_v59  ;;  %v3979_v0 = vmul.f32 -1.442695, %v689_v49  ;;  %v1885_v1 = vand.u32 2147483647, %v5451_v28  ;;  %v870_v32 = vpop.f32.mrf.mxu2 }
 0x13f   : > { %v4289_v54 = vpop.eup %4288  ;;  %3525 = vst [vmem:[%s5101_s20 + $0x50] sm:$0xff] %v3461_v44  ;;  %v1887_v2 = vand.u32 2147483648, %v5451_v28  ;;  %4296 = vpow2.f32 %v3978_v62  ;;  %v3980_v3 = vmul.f32 -1.442695, %v778_v57  ;;  %vm1867_vm15 = vweird.f32 %v5454_v41 }
 0x140   : > { %v1865_v6 = vadd.f32 %v5454_v41, %v1864_v63  ;;  %vm5480_vm1 = vcmp.eq.f32.partialorder %v1870_v50, 8.507059e+37  ;;  %v1877_v8 = vmul.f32 %v4289_v54, %v5451_v28  ;;  %v1873_v10 = vor.u32 1.1754944e-38, %v1872_v60  ;;  %vm5491_vm3 = vmor %vm1866_vm14, %vm1867_vm15 }
 0x141   : > { %v4291_v9 = vpop.eup %4290  ;;  %vm1881_vm2 = vweird.f32 %v5451_v28  ;;  %v1902_v13 = vand.u32 2147483648, %v5467_v59  ;;  %v3981_v14 = vmul.f32 -1.442695, %v867_v46  ;;  %4298 = vpow2.f32 %v3979_v0 }
 0x142   : > { %v1878_v15 = vsub.f32 1.0, %v1877_v8  ;;  %v5487_v16 = vadd.f32 1.0, %v4291_v9  ;;  %v3982_v61 = vmul.f32 -1.442695, %v956_v5  ;;  %vm5495_vm4 = vcmp.eq.f32.partialorder %v1885_v1, 8.507059e+37 }
 0x143   : > { %v4293_v17 = vpop.eup %4292  ;;  %v1888_v20 = vor.u32 1.1754944e-38, %v1887_v2  ;;  %vm1896_vm5 = vweird.f32 %v5467_v59  ;;  %4300 = vpow2.f32 %v3980_v3  ;;  %v1869_v22 = vsel %vm5491_vm3, %v5454_v41, %v1865_v6 }
 0x144   : > { %v5500_v21 = vpop.eup %4294  ;;  %v1879_v23 = vmul.f32 %v4289_v54, %v1878_v15  ;;  %vm1882_vm6 = vweird.f32 %v4289_v54  ;;  %4302 = vrcp.f32 %v5487_v16  ;;  %v1900_v25 = vand.u32 2147483647, %v5467_v59 }
 0x145   : > { %v4297_v4 = vpop.eup %4296  ;;  %v1892_v11 = vmul.f32 %v5500_v21, %v5467_v59  ;;  %v5509_v26 = vadd.f32 1.0, %v4293_v17  ;;  %4304 = vpow2.f32 %v3981_v14  ;;  %v1903_v12 = vor.u32 1.1754944e-38, %v1902_v13  ;;  %vm1883_vm7 = vmor %vm1881_vm2, %vm1882_vm6 }
 0x146   : > { %v1880_v30 = vadd.f32 %v4289_v54, %v1879_v23  ;;  %v5511_v33 = vadd.f32 1.0, %v4297_v4  ;;  %4306 = vpow2.f32 %v3982_v61  ;;  %v1874_v31 = vsel %vm5480_vm1, %v1873_v10, %v1869_v22 }
 0x147   : > { %v1893_v34 = vsub.f32 1.0, %v1892_v11  ;;  %v1915_v35 = vand.u32 2147483647, %v5487_v16  ;;  %4308 = vrcp.f32 %v5509_v26  ;;  %v4299_v24 = vpop.eup %4298  ;;  %v3983_v38 = vmul.f32 -1.442695, %v692_v27 }
 0x148   : > { %v1884_v37 = vsel %vm1883_vm7, %v4289_v54, %v1880_v30  ;;  %4310 = vrcp.f32 %v5511_v33  ;;  %v5521_v39 = vmul.f32 -1.442695, %v781_v29  ;;  %vm5526_vm8 = vcmp.eq.f32.partialorder %v1900_v25, 8.507059e+37 }
 0x149   : > { %v4301_v40 = vpop.eup %4300  ;;  %v1889_v41 = vsel %vm5495_vm4, %v1888_v20, %v1884_v37  ;;  %v1894_v28 = vmul.f32 %v5500_v21, %v1893_v34  ;;  %v1917_v42 = vand.u32 2147483648, %v5487_v16  ;;  %v5531_v45 = vmul.f32 -1.442695, %v870_v32 }
 0x14a   : > { %v4303_v47 = vpop.eup %4302  ;;  %v3462_v48 = vpack.c.bf16 %v1889_v41, %v1874_v31  ;;  %vm1911_vm9 = vweird.f32 %v5487_v16  ;;  %v1930_v51 = vand.u32 2147483647, %v5509_v26  ;;  %v1932_v43 = vand.u32 2147483648, %v5509_v26 }
 0x14b   : > { %v4305_v52 = vpop.eup %4304  ;;  %v1895_v53 = vadd.f32 %v5500_v21, %v1894_v28  ;;  %vm1897_vm10 = vweird.f32 %v5500_v21  ;;  %v1907_v56 = vmul.f32 %v4303_v47, %v5487_v16  ;;  %vm5539_vm11 = vcmp.eq.f32.partialorder %v1915_v35, 8.507059e+37 }
 0x14c   : > { %v4307_v57 = vpop.eup %4306  ;;  %3526 = vst [vmem:[%s5101_s20 + $0x58] sm:$0xff] %v3462_v48  ;;  %v1945_v55 = vand.u32 2147483647, %v5511_v33  ;;  %v1947_v58 = vand.u32 2147483648, %v5511_v33  ;;  %v5546_v50 = vadd.f32 1.0, %v4299_v24  ;;  %v5548_v46 = vadd.f32 1.0, %v4301_v40  ;;  %vm5556_vm14 = vmor %vm1896_vm5, %vm1897_vm10 }
 0x14d   : > { %v4309_v44 = vpop.eup %4308  ;;  %v1908_v60 = vsub.f32 1.0, %v1907_v56  ;;  %v1918_v62 = vor.u32 1.1754944e-38, %v1917_v42  ;;  %vm1926_vm12 = vweird.f32 %v5509_v26  ;;  %vm1941_vm13 = vweird.f32 %v5511_v33 }
 0x14e   : > { %v4311_v63 = vpop.eup %4310  ;;  %vm1912_vm15 = vweird.f32 %v4303_v47  ;;  %v1922_v54 = vmul.f32 %v4309_v44, %v5509_v26  ;;  %vm5561_vm1 = vcmp.eq.f32.partialorder %v1930_v51, 8.507059e+37  ;;  %v1933_v2 = vor.u32 1.1754944e-38, %v1932_v43 }
 0x14f   : > { %4312 = vrcp.f32 %v5546_v50  ;;  %v1899_v3 = vsel %vm5556_vm14, %v5500_v21, %v1895_v53  ;;  %v1909_v5 = vmul.f32 %v4303_v47, %v1908_v60  ;;  %v1937_v59 = vmul.f32 %v4311_v63, %v5511_v33  ;;  %vm1913_vm3 = vmor %vm1911_vm9, %vm1912_vm15  ;;  %v694_v60 = vpop.f32.mrf.mxu0 }
 0x150   : > { %v5570_v6 = vadd.f32 1.0, %v4305_v52  ;;  %v1923_v7 = vsub.f32 1.0, %v1922_v54  ;;  %vm5572_vm2 = vcmp.eq.f32.partialorder %v1945_v55, 8.507059e+37  ;;  %v1948_v9 = vor.u32 1.1754944e-38, %v1947_v58  ;;  %v4098_v52 = vld [vmem:[%s4988_s15 + $0x68] sm:$0xff] }
 0x151   : > { %4314 = vrcp.f32 %v5548_v46  ;;  %v1910_v10 = vadd.f32 %v4303_v47, %v1909_v5  ;;  %v1938_v13 = vsub.f32 1.0, %v1937_v59  ;;  %v5577_v14 = vadd.f32 1.0, %v4307_v57  ;;  %3900 = vmatmul.msk.bf16.gmra.mxu0 %vm518_vm0, %v4098_v52  ;;  %3916 = vmatmul.msk.bf16.gmra.mxu1 %vm518_vm0, %v4098_v52 }
 0x152   : > { %4316 = vpow2.f32 %v3983_v38  ;;  %v1904_v15 = vsel %vm5526_vm8, %v1903_v12, %v1899_v3  ;;  %v1924_v61 = vmul.f32 %v4309_v44, %v1923_v7  ;;  %vm1927_vm4 = vweird.f32 %v4309_v44  ;;  %3932 = vmatmul.msk.bf16.gmra.mxu2 %vm518_vm0, %v4098_v52  ;;  %3948 = vmatmul.msk.bf16.gmra.mxu3 %vm518_vm0, %v4098_v52 }
 0x153   : > { %vm1942_vm5 = vweird.f32 %v4311_v63  ;;  %v1914_v17 = vsel %vm1913_vm3, %v4303_v47, %v1910_v10  ;;  %v1939_v18 = vmul.f32 %v4311_v63, %v1938_v13  ;;  %vm1956_vm6 = vweird.f32 %v5546_v50  ;;  %vm1928_vm7 = vmor %vm1926_vm12, %vm1927_vm4  ;;  %v783_v10 = vpop.f32.mrf.mxu1 }
 0x154   : > { %4318 = vrcp.f32 %v5570_v6  ;;  %v1919_v20 = vsel %vm5539_vm11, %v1918_v62, %v1914_v17  ;;  %v1925_v21 = vadd.f32 %v4309_v44, %v1924_v61  ;;  %v1960_v22 = vand.u32 2147483647, %v5546_v50  ;;  %vm1943_vm9 = vmor %vm1941_vm13, %vm1942_vm5 }
 0x155   : > { %v4313_v19 = vpop.eup %4312  ;;  %v1962_v16 = vand.u32 2147483648, %v5546_v50  ;;  %v3463_v23 = vpack.c.bf16 %v1919_v20, %v1904_v15  ;;  %v1940_v4 = vadd.f32 %v4311_v63, %v1939_v18  ;;  %vm1971_vm8 = vweird.f32 %v5548_v46 }
 0x156   : > { %v1952_v11 = vmul.f32 %v4313_v19, %v5546_v50  ;;  %v1929_v27 = vsel %vm1928_vm7, %v4309_v44, %v1925_v21  ;;  %v1975_v29 = vand.u32 2147483647, %v5548_v46  ;;  %v1977_v30 = vand.u32 2147483648, %v5548_v46  ;;  %v959_v44 = vpop.f32.mrf.mxu3 }
 0x157   : > { %v4315_v25 = vpop.eup %4314  ;;  %4320 = vrcp.f32 %v5577_v14  ;;  %3527 = vst [vmem:[%s5101_s20 + $0x60] sm:$0xff] %v3463_v23  ;;  %v1934_v26 = vsel %vm5561_vm1, %v1933_v2, %v1929_v27  ;;  %v1944_v32 = vsel %vm1943_vm9, %v4311_v63, %v1940_v4  ;;  %vm1957_vm10 = vweird.f32 %v4313_v19  ;;  %v872_v23 = vpop.f32.mrf.mxu2 }
 0x158   : > { %v4317_v12 = vpop.eup %4316  ;;  %v1953_v31 = vsub.f32 1.0, %v1952_v11  ;;  %v1967_v34 = vmul.f32 %v4315_v25, %v5548_v46  ;;  %v1949_v33 = vsel %vm5572_vm2, %v1948_v9, %v1944_v32  ;;  %vm5606_vm11 = vcmp.eq.f32.partialorder %v1960_v22, 8.507059e+37  ;;  %vm1958_vm14 = vmor %vm1956_vm6, %vm1957_vm10 }
 0x159   : > { %v1963_v24 = vor.u32 1.1754944e-38, %v1962_v16  ;;  %v3464_v38 = vpack.c.bf16 %v1949_v33, %v1934_v26  ;;  %v1990_v28 = vand.u32 2147483647, %v5570_v6  ;;  %vm1972_vm12 = vweird.f32 %v4315_v25 }
 0x15a   : > { %v5610_v37 = vpop.eup %4318  ;;  %v1954_v40 = vmul.f32 %v4313_v19, %v1953_v31  ;;  %v1968_v41 = vsub.f32 1.0, %v1967_v34  ;;  %vm5613_vm13 = vcmp.eq.f32.partialorder %v1975_v29, 8.507059e+37  ;;  %v1978_v42 = vor.u32 1.1754944e-38, %v1977_v30  ;;  %vm1973_vm2 = vmor %vm1971_vm8, %vm1972_vm12 }
 0x15b   : > { %v1982_v47 = vmul.f32 %v5610_v37, %v5570_v6  ;;  %3528 = vst [vmem:[%s5101_s20 + $0x68] sm:$0xff] %v3464_v38  ;;  %v5620_v43 = vadd.f32 1.0, %v4317_v12  ;;  %4322 = vpow2.f32 %v5521_v39  ;;  %vm1986_vm15 = vweird.f32 %v5570_v6  ;;  %v786_v58 = vpop.f32.mrf.mxu1 }
 0x15c   : > { %v1955_v48 = vadd.f32 %v4313_v19, %v1954_v40  ;;  %v1969_v51 = vmul.f32 %v4315_v25, %v1968_v41  ;;  %v1992_v49 = vand.u32 2147483648, %v5570_v6  ;;  %4324 = vpow2.f32 %v5531_v45 }
 0x15d   : > { %v4321_v53 = vpop.eup %4320  ;;  %v1983_v56 = vsub.f32 1.0, %v1982_v47  ;;  %vm5630_vm1 = vcmp.eq.f32.partialorder %v1990_v28, 8.507059e+37  ;;  %vm1987_vm3 = vweird.f32 %v5610_v37  ;;  %4326 = vrcp.f32 %v5620_v43 }
 0x15e   : > { %v1959_v57 = vsel %vm1958_vm14, %v4313_v19, %v1955_v48  ;;  %v1970_v55 = vadd.f32 %v4315_v25, %v1969_v51  ;;  %v1997_v39 = vmul.f32 %v4321_v53, %v5577_v14  ;;  %v2005_v0 = vand.u32 2147483647, %v5577_v14  ;;  %vm5654_vm4 = vmor %vm1986_vm15, %vm1987_vm3  ;;  %v961_v33 = vpop.f32.mrf.mxu3  ;;  %v697_v51 = vpop.f32.mrf.mxu0 }
 0x15f   : > { %v1964_v50 = vsel %vm5606_vm11, %v1963_v24, %v1959_v57  ;;  %v1984_v45 = vmul.f32 %v5610_v37, %v1983_v56  ;;  %v2007_v54 = vand.u32 2147483648, %v5577_v14  ;;  %v3986_v2 = vmul.f32 -1.442695, %v959_v44 }
 0x160   : > { %v1974_v62 = vsel %vm1973_vm2, %v4315_v25, %v1970_v55  ;;  %v1998_v63 = vsub.f32 1.0, %v1997_v39  ;;  %v3987_v3 = vmul.f32 -1.442695, %v694_v60  ;;  %v1993_v8 = vor.u32 1.1754944e-38, %v1992_v49 }
 0x161   : > { %v1979_v46 = vsel %vm5613_vm13, %v1978_v42, %v1974_v62  ;;  %v1985_v1 = vadd.f32 %v5610_v37, %v1984_v45  ;;  %v4323_v5 = vpop.eup %4322  ;;  %vm2002_vm5 = vweird.f32 %v4321_v53  ;;  %vm2001_vm6 = vweird.f32 %v5577_v14 }
 0x162   : > { %v3465_v59 = vpack.c.bf16 %v1979_v46, %v1964_v50  ;;  %v1999_v9 = vmul.f32 %v4321_v53, %v1998_v63  ;;  %v4325_v13 = vpop.eup %4324  ;;  %v5662_v61 = vadd.f32 1.0, %v4323_v5  ;;  %4328 = vpow2.f32 %v3986_v2  ;;  %vm2003_vm8 = vmor %vm2001_vm6, %vm2002_vm5 }
 0x163   : > { %v1989_v15 = vsel %vm5654_vm4, %v5610_v37, %v1985_v1  ;;  %vm2006_vm7 = vcmp.eq.f32.partialorder %v2005_v0, 8.507059e+37  ;;  %v5665_v17 = vadd.f32 1.0, %v4325_v13  ;;  %4330 = vpow2.f32 %v3987_v3  ;;  %v5667_v18 = vpop.eup %4326 }
 0x164   : > { %3529 = vst [vmem:[%s5101_s20 + $0x70] sm:$0xff] %v3465_v59  ;;  %v2000_v6 = vadd.f32 %v4321_v53, %v1999_v9  ;;  %v1994_v19 = vsel %vm5630_vm1, %v1993_v8, %v1989_v15  ;;  %v2008_v20 = vor.u32 1.1754944e-38, %v2007_v54  ;;  %4332 = vrcp.f32 %v5662_v61  ;;  %v875_v54 = vpop.f32.mrf.mxu2 }
 0x165   : > { %v3988_v14 = vmul.f32 -1.442695, %v783_v10  ;;  %v2012_v22 = vmul.f32 %v5667_v18, %v5620_v43  ;;  %v2020_v16 = vand.u32 2147483647, %v5620_v43  ;;  %4334 = vrcp.f32 %v5665_v17 }
 0x166   : > { %v2004_v21 = vsel %vm2003_vm8, %v4321_v53, %v2000_v6  ;;  %vm2016_vm9 = vweird.f32 %v5620_v43  ;;  %v2022_v29 = vand.u32 2147483648, %v5620_v43  ;;  %v3989_v30 = vmul.f32 -1.442695, %v872_v23 }
 0x167   : > { %v2009_v4 = vsel %vm2006_vm7, %v2008_v20, %v2004_v21  ;;  %v2013_v25 = vsub.f32 1.0, %v2012_v22  ;;  %4336 = vpow2.f32 %v3988_v14  ;;  %vm5680_vm10 = vcmp.eq.f32.partialorder %v2020_v16, 8.507059e+37 }
 0x168   : > { %v3466_v11 = vpack.c.bf16 %v2009_v4, %v1994_v19  ;;  %v4329_v27 = vpop.eup %4328  ;;  %v2035_v31 = vand.u32 2147483647, %v5662_v61  ;;  %vm2017_vm11 = vweird.f32 %v5667_v18  ;;  %v2037_v24 = vand.u32 2147483648, %v5662_v61  ;;  %v964_v19 = vpop.f32.mrf.mxu3 }
 0x169   : > { %v4331_v12 = vpop.eup %4330  ;;  %v2014_v26 = vmul.f32 %v5667_v18, %v2013_v25  ;;  %v5685_v34 = vadd.f32 1.0, %v4329_v27  ;;  %4338 = vpow2.f32 %v3989_v30  ;;  %v2052_v28 = vand.u32 2147483648, %v5665_v17  ;;  %vm5702_vm12 = vmor %vm2016_vm9, %vm2017_vm11 }
 0x16a   : > { %3530 = vst [vmem:[%s5101_s20 + $0x78] sm:$0xff] %v3466_v11  ;;  %v4333_v35 = vpop.eup %4332  ;;  %v5689_v37 = vadd.f32 1.0, %v4331_v12  ;;  %v2023_v36 = vor.u32 1.1754944e-38, %v2022_v29  ;;  %v2050_v47 = vand.u32 2147483647, %v5665_v17  ;;  %vm2031_vm13 = vweird.f32 %v5662_v61 }
 0x16b   : > { %v5691_v38 = vpop.eup %4334  ;;  %v2015_v40 = vadd.f32 %v5667_v18, %v2014_v26  ;;  %v2027_v41 = vmul.f32 %v4333_v35, %v5662_v61  ;;  %4340 = vrcp.f32 %v5685_v34  ;;  %v3990_v48 = vmul.f32 -1.442695, %v961_v33 }
 0x16c   : > { %v2042_v42 = vmul.f32 %v5691_v38, %v5665_v17  ;;  %vm5707_vm14 = vcmp.eq.f32.partialorder %v2035_v31, 8.507059e+37  ;;  %4342 = vrcp.f32 %v5689_v37  ;;  %v2038_v55 = vor.u32 1.1754944e-38, %v2037_v24 }
 0x16d   : > { %v2028_v53 = vsub.f32 1.0, %v2027_v41  ;;  %v4337_v49 = vpop.eup %4336  ;;  %v2019_v57 = vsel %vm5702_vm12, %v5667_v18, %v2015_v40  ;;  %vm2046_vm15 = vweird.f32 %v5665_v17  ;;  %vm2032_vm1 = vweird.f32 %v4333_v35  ;;  %v4099_v40 = vld [vmem:[%s4988_s15 + $0x70] sm:$0xff] }
 0x16e   : > { %v2043_v43 = vsub.f32 1.0, %v2042_v42  ;;  %v2053_v44 = vor.u32 1.1754944e-38, %v2052_v28  ;;  %v3991_v60 = vmul.f32 -1.442695, %v697_v51  ;;  %vm5717_vm2 = vcmp.eq.f32.partialorder %v2050_v47, 8.507059e+37  ;;  %vm2033_vm4 = vmor %vm2031_vm13, %vm2032_vm1  ;;  %3901 = vmatmul.msk.bf16.gmra.mxu0 %vm518_vm0, %v4099_v40  ;;  %3917 = vmatmul.msk.bf16.gmra.mxu1 %vm518_vm0, %v4099_v40 }
 0x16f   : > { %v2029_v39 = vmul.f32 %v4333_v35, %v2028_v53  ;;  %v4339_v50 = vpop.eup %4338  ;;  %v2065_v63 = vand.u32 2147483647, %v5685_v34  ;;  %v5722_v0 = vadd.f32 1.0, %v4337_v49  ;;  %4344 = vpow2.f32 %v3990_v48  ;;  %v788_v53 = vpop.f32.mrf.mxu1  ;;  %3933 = vmatmul.msk.bf16.gmra.mxu2 %vm518_vm0, %v4099_v40  ;;  %3949 = vmatmul.msk.bf16.gmra.mxu3 %vm518_vm0, %v4099_v40 }
 0x170   : > { %v2044_v45 = vmul.f32 %v5691_v38, %v2043_v43  ;;  %v2024_v1 = vsel %vm5680_vm10, %v2023_v36, %v2019_v57  ;;  %vm2047_vm3 = vweird.f32 %v5691_v38  ;;  %v3992_v3 = vmul.f32 -1.442695, %v786_v58  ;;  %v699_v36 = vpop.f32.mrf.mxu0  ;;  %v877_v57 = vpop.f32.mrf.mxu2 }
 0x171   : > { %v4341_v46 = vpop.eup %4340  ;;  %v2030_v2 = vadd.f32 %v4333_v35, %v2029_v39  ;;  %4346 = vrcp.f32 %v5722_v0  ;;  %v5733_v7 = vadd.f32 1.0, %v4339_v50  ;;  %vm2061_vm5 = vweird.f32 %v5685_v34  ;;  %vm5751_vm7 = vmor %vm2046_vm15, %vm2047_vm3 }
 0x172   : > { %v2045_v5 = vadd.f32 %v5691_v38, %v2044_v45  ;;  %v2057_v59 = vmul.f32 %v4341_v46, %v5685_v34  ;;  %v5735_v8 = vpop.eup %4342  ;;  %v2067_v10 = vand.u32 2147483648, %v5685_v34  ;;  %v3993_v13 = vmul.f32 -1.442695, %v875_v54 }
 0x173   : > { %v2034_v9 = vsel %vm2033_vm4, %v4333_v35, %v2030_v2  ;;  %vm5741_vm6 = vcmp.eq.f32.partialorder %v2065_v63, 8.507059e+37  ;;  %v2072_v18 = vmul.f32 %v5735_v8, %v5689_v37  ;;  %vm2062_vm8 = vweird.f32 %v4341_v46 }
 0x174   : > { %v2039_v15 = vsel %vm5707_vm14, %v2038_v55, %v2034_v9  ;;  %v2058_v61 = vsub.f32 1.0, %v2057_v59  ;;  %vm2076_vm9 = vweird.f32 %v5689_v37  ;;  %v2080_v21 = vand.u32 2147483647, %v5689_v37  ;;  %vm2063_vm10 = vmor %vm2061_vm5, %vm2062_vm8 }
 0x175   : > { %v3467_v20 = vpack.c.bf16 %v2039_v15, %v2024_v1  ;;  %v4345_v22 = vpop.eup %4344  ;;  %v2049_v16 = vsel %vm5751_vm7, %v5691_v38, %v2045_v5  ;;  %v2073_v4 = vsub.f32 1.0, %v2072_v18  ;;  %4348 = vrcp.f32 %v5733_v7 }
 0x176   : > { %v2059_v23 = vmul.f32 %v4341_v46, %v2058_v61  ;;  %v2068_v17 = vor.u32 1.1754944e-38, %v2067_v10  ;;  %v2082_v11 = vand.u32 2147483648, %v5689_v37  ;;  %v5763_v25 = vadd.f32 1.0, %v4345_v22 }
 0x177   : > { %3531 = vst [vmem:[%s5101_s20 + $0x80] sm:$0xff] %v3467_v20  ;;  %v3994_v27 = vmul.f32 -1.442695, %v964_v19  ;;  %v4347_v29 = vpop.eup %4346  ;;  %v2074_v12 = vmul.f32 %v5735_v8, %v2073_v4  ;;  %v2095_v26 = vand.u32 2147483647, %v5722_v0  ;;  %4350 = vpow2.f32 %v3991_v60  ;;  %v791_v4 = vpop.f32.mrf.mxu1 }
 0x178   : > { %v2060_v30 = vadd.f32 %v4341_v46, %v2059_v23  ;;  %v2054_v32 = vsel %vm5717_vm2, %v2053_v44, %v2049_v16  ;;  %vm2077_vm11 = vweird.f32 %v5735_v8  ;;  %vm5773_vm12 = vcmp.eq.f32.partialorder %v2080_v21, 8.507059e+37  ;;  %v702_v21 = vpop.f32.mrf.mxu0 }
 0x179   : > { %v2087_v33 = vmul.f32 %v4347_v29, %v5722_v0  ;;  %v2075_v24 = vadd.f32 %v5735_v8, %v2074_v12  ;;  %v2097_v38 = vand.u32 2147483648, %v5722_v0  ;;  %4352 = vrcp.f32 %v5763_v25  ;;  %vm5791_vm14 = vmor %vm2076_vm9, %vm2077_vm11 }
 0x17a   : > { %v2064_v35 = vsel %vm2063_vm10, %v4341_v46, %v2060_v30  ;;  %v2083_v41 = vor.u32 1.1754944e-38, %v2082_v11  ;;  %vm2091_vm13 = vweird.f32 %v5722_v0  ;;  %vm5795_vm15 = vcmp.eq.f32.partialorder %v2095_v26, 8.507059e+37 }
 0x17b   : > { %v2069_v34 = vsel %vm5741_vm6, %v2068_v17, %v2064_v35  ;;  %v2088_v28 = vsub.f32 1.0, %v2087_v33  ;;  %v5785_v42 = vpop.eup %4348  ;;  %v2110_v52 = vand.u32 2147483647, %v5733_v7  ;;  %4354 = vpow2.f32 %v3992_v3 }
 0x17c   : > { %v3468_v47 = vpack.c.bf16 %v2069_v34, %v2054_v32  ;;  %v2079_v37 = vsel %vm5791_vm14, %v5735_v8, %v2075_v24  ;;  %vm2092_vm1 = vweird.f32 %v4347_v29  ;;  %v2102_v49 = vmul.f32 %v5785_v42, %v5733_v7 }
 0x17d   : > { %v2089_v56 = vmul.f32 %v4347_v29, %v2088_v28  ;;  %v4351_v55 = vpop.eup %4350  ;;  %v2098_v43 = vor.u32 1.1754944e-38, %v2097_v38  ;;  %vm2106_vm2 = vweird.f32 %v5733_v7  ;;  %4356 = vpow2.f32 %v3993_v13  ;;  %vm2093_vm3 = vmor %vm2091_vm13, %vm2092_vm1 }
 0x17e   : > { %3532 = vst [vmem:[%s5101_s20 + $0x88] sm:$0xff] %v3468_v47  ;;  %v3995_v58 = vmul.f32 -1.442695, %v699_v36  ;;  %v2103_v44 = vsub.f32 1.0, %v2102_v49  ;;  %v5811_v60 = vadd.f32 1.0, %v4351_v55  ;;  %4358 = vpow2.f32 %v3994_v27 }
 0x17f   : > { %v2090_v39 = vadd.f32 %v4347_v29, %v2089_v56  ;;  %v4353_v50 = vpop.eup %4352  ;;  %v2084_v45 = vsel %vm5773_vm12, %v2083_v41, %v2079_v37  ;;  %vm5818_vm4 = vcmp.eq.f32.partialorder %v2110_v52, 8.507059e+37  ;;  %v2112_v63 = vand.u32 2147483648, %v5733_v7  ;;  %v966_v7 = vpop.f32.mrf.mxu3 }
 0x180   : > { %v3996_v54 = vmul.f32 -1.442695, %v788_v53  ;;  %v2104_v1 = vmul.f32 %v5785_v42, %v2103_v44  ;;  %vm2107_vm5 = vweird.f32 %v5785_v42  ;;  %v2117_v2 = vmul.f32 %v4353_v50, %v5763_v25 }
 0x181   : > { %v2094_v46 = vsel %vm2093_vm3, %v4347_v29, %v2090_v39  ;;  %v4355_v3 = vpop.eup %4354  ;;  %v2125_v5 = vand.u32 2147483647, %v5763_v25  ;;  %v2127_v59 = vand.u32 2147483648, %v5763_v25  ;;  %4360 = vrcp.f32 %v5811_v60  ;;  %vm5834_vm6 = vmor %vm2106_vm2, %vm2107_vm5  ;;  %v880_v29 = vpop.f32.mrf.mxu2 }
 0x182   : > { %v2099_v0 = vsel %vm5795_vm15, %v2098_v43, %v2094_v46  ;;  %v2105_v9 = vadd.f32 %v5785_v42, %v2104_v1  ;;  %v2118_v10 = vsub.f32 1.0, %v2117_v2  ;;  %4362 = vpow2.f32 %v3995_v58 }
 0x183   : > { %v3469_v8 = vpack.c.bf16 %v2099_v0, %v2084_v45  ;;  %v4357_v13 = vpop.eup %4356  ;;  %v2113_v61 = vor.u32 1.1754944e-38, %v2112_v63  ;;  %vm2121_vm7 = vweird.f32 %v5763_v25  ;;  %v5839_v6 = vadd.f32 1.0, %v4355_v3 }
 0x184   : > { %4364 = vpow2.f32 %v3996_v54  ;;  %v4359_v18 = vpop.eup %4358  ;;  %v2109_v19 = vsel %vm5834_vm6, %v5785_v42, %v2105_v9  ;;  %v2119_v20 = vmul.f32 %v4353_v50, %v2118_v10  ;;  %vm2122_vm8 = vweird.f32 %v4353_v50 }
 0x185   : > { %3533 = vst [vmem:[%s5101_s20 + $0x90] sm:$0xff] %v3469_v8  ;;  %v5845_v14 = vadd.f32 1.0, %v4357_v13  ;;  %vm5847_vm9 = vcmp.eq.f32.partialorder %v2125_v5, 8.507059e+37  ;;  %v2128_v16 = vor.u32 1.1754944e-38, %v2127_v59  ;;  %v2142_v23 = vand.u32 2147483648, %v5811_v60  ;;  %vm2123_vm10 = vmor %vm2121_vm7, %vm2122_vm8 }
 0x186   : > { %4366 = vrcp.f32 %v5839_v6  ;;  %v2120_v17 = vadd.f32 %v4353_v50, %v2119_v20  ;;  %v2140_v11 = vand.u32 2147483647, %v5811_v60  ;;  %v3997_v27 = vmul.f32 -1.442695, %v877_v57 }
 0x187   : > { %4368 = vrcp.f32 %v5845_v14  ;;  %v4361_v30 = vpop.eup %4360  ;;  %v2114_v12 = vsel %vm5818_vm4, %v2113_v61, %v2109_v19  ;;  %v5860_v26 = vadd.f32 1.0, %v4359_v18  ;;  %v3998_v32 = vmul.f32 -1.442695, %v966_v7 }
 0x188   : > { %v5862_v31 = vmul.f32 -1.442695, %v702_v21  ;;  %v4363_v33 = vpop.eup %4362  ;;  %v2124_v35 = vsel %vm2123_vm10, %v4353_v50, %v2120_v17  ;;  %v2132_v24 = vmul.f32 %v4361_v30, %v5811_v60  ;;  %vm2136_vm11 = vweird.f32 %v5811_v60 }
 0x189   : > { %v5866_v38 = vmul.f32 -1.442695, %v791_v4  ;;  %v2129_v34 = vsel %vm5847_vm9, %v2128_v16, %v2124_v35  ;;  %v2143_v25 = vor.u32 1.1754944e-38, %v2142_v23  ;;  %4370 = vrcp.f32 %v5860_v26  ;;  %v882_v62 = vpop.f32.mrf.mxu2 }
 0x18a   : > { %v4365_v40 = vpop.eup %4364  ;;  %v5871_v41 = vmul.f32 -1.442695, %v880_v29  ;;  %v3470_v28 = vpack.c.bf16 %v2129_v34, %v2114_v12  ;;  %v2133_v36 = vsub.f32 1.0, %v2132_v24  ;;  %vm5873_vm12 = vcmp.eq.f32.partialorder %v2140_v11, 8.507059e+37 }
 0x18b   : > { %v2155_v47 = vand.u32 2147483647, %v5839_v6  ;;  %v2157_v48 = vand.u32 2147483648, %v5839_v6  ;;  %v2170_v52 = vand.u32 2147483647, %v5845_v14  ;;  %v5880_v53 = vadd.f32 1.0, %v4363_v33  ;;  %v704_v33 = vpop.f32.mrf.mxu0 }
 0x18c   : > { %v4367_v51 = vpop.eup %4366  ;;  %v5882_v37 = vadd.f32 1.0, %v4365_v40  ;;  %4372 = vpow2.f32 %v3997_v27  ;;  %3534 = vst [vmem:[%s5101_s20 + $0x98] sm:$0xff] %v3470_v28  ;;  %v2134_v49 = vmul.f32 %v4361_v30, %v2133_v36  ;;  %vm2137_vm13 = vweird.f32 %v4361_v30 }
 0x18d   : > { %v4369_v56 = vpop.eup %4368  ;;  %v2147_v57 = vmul.f32 %v4367_v51, %v5839_v6  ;;  %vm2151_vm14 = vweird.f32 %v5839_v6  ;;  %vm2166_vm15 = vweird.f32 %v5845_v14  ;;  %v2172_v43 = vand.u32 2147483648, %v5845_v14  ;;  %vm5898_vm2 = vmor %vm2136_vm11, %vm2137_vm13 }
 0x18e   : > { %v2162_v55 = vmul.f32 %v4369_v56, %v5845_v14  ;;  %4374 = vrcp.f32 %v5880_v53  ;;  %v2135_v58 = vadd.f32 %v4361_v30, %v2134_v49  ;;  %vm5891_vm1 = vcmp.eq.f32.partialorder %v2155_v47, 8.507059e+37  ;;  %v969_v14 = vpop.f32.mrf.mxu3 }
 0x18f   : > { %v2148_v39 = vsub.f32 1.0, %v2147_v57  ;;  %v2185_v50 = vand.u32 2147483647, %v5860_v26  ;;  %v4371_v45 = vpop.eup %4370  ;;  %v2158_v63 = vor.u32 1.1754944e-38, %v2157_v48  ;;  %vm5902_vm3 = vcmp.eq.f32.partialorder %v2170_v52, 8.507059e+37  ;;  %v793_v52 = vpop.f32.mrf.mxu1 }
 0x190   : > { %v2163_v54 = vsub.f32 1.0, %v2162_v55  ;;  %4376 = vrcp.f32 %v5882_v37  ;;  %v2139_v1 = vsel %vm5898_vm2, %v4361_v30, %v2135_v58  ;;  %vm2152_vm4 = vweird.f32 %v4367_v51  ;;  %v4100_v55 = vld [vmem:[%s4988_s15 + $0x78] sm:$0xff] }
 0x191   : > { %v2149_v2 = vmul.f32 %v4367_v51, %v2148_v39  ;;  %v2177_v3 = vmul.f32 %v4371_v45, %v5860_v26  ;;  %vm2167_vm5 = vweird.f32 %v4369_v56  ;;  %v2173_v5 = vor.u32 1.1754944e-38, %v2172_v43  ;;  %vm2153_vm8 = vmor %vm2151_vm14, %vm2152_vm4  ;;  %3902 = vmatmul.msk.bf16.gmra.mxu0 %vm518_vm0, %v4100_v55  ;;  %3918 = vmatmul.msk.bf16.gmra.mxu1 %vm518_vm0, %v4100_v55 }
 0x192   : > { %v4373_v60 = vpop.eup %4372  ;;  %v2164_v0 = vmul.f32 %v4369_v56, %v2163_v54  ;;  %v2187_v59 = vand.u32 2147483648, %v5860_v26  ;;  %vm2181_vm6 = vweird.f32 %v5860_v26  ;;  %vm5912_vm7 = vcmp.eq.f32.partialorder %v2185_v50, 8.507059e+37  ;;  %vm2168_vm9 = vmor %vm2166_vm15, %vm2167_vm5  ;;  %3934 = vmatmul.msk.bf16.gmra.mxu2 %vm518_vm0, %v4100_v55  ;;  %3950 = vmatmul.msk.bf16.gmra.mxu3 %vm518_vm0, %v4100_v55 }
 0x193   : > { %v2150_v8 = vadd.f32 %v4367_v51, %v2149_v2  ;;  %v2178_v9 = vsub.f32 1.0, %v2177_v3  ;;  %v2144_v15 = vsel %vm5873_vm12, %v2143_v25, %v2139_v1  ;;  %v5920_v18 = vadd.f32 1.0, %v4373_v60 }
 0x194   : > { %v4375_v13 = vpop.eup %4374  ;;  %v2165_v61 = vadd.f32 %v4369_v56, %v2164_v0  ;;  %4378 = vpow2.f32 %v3998_v32  ;;  %vm2182_vm10 = vweird.f32 %v4371_v45  ;;  %v2188_v6 = vor.u32 1.1754944e-38, %v2187_v59  ;;  %v707_v59 = vpop.f32.mrf.mxu0 }
 0x195   : > { %v2154_v19 = vsel %vm2153_vm8, %v4367_v51, %v2150_v8  ;;  %v2179_v20 = vmul.f32 %v4371_v45, %v2178_v9  ;;  %v2192_v7 = vmul.f32 %v4375_v13, %v5880_v53  ;;  %vm2196_vm11 = vweird.f32 %v5880_v53  ;;  %vm2183_vm12 = vmor %vm2181_vm6, %vm2182_vm10 }
 0x196   : > { %v4377_v21 = vpop.eup %4376  ;;  %v2159_v22 = vsel %vm5891_vm1, %v2158_v63, %v2154_v19  ;;  %v2169_v16 = vsel %vm2168_vm9, %v4369_v56, %v2165_v61  ;;  %v2200_v11 = vand.u32 2147483647, %v5880_v53  ;;  %v2202_v29 = vand.u32 2147483648, %v5880_v53  ;;  %v971_v63 = vpop.f32.mrf.mxu3 }
 0x197   : > { %v3471_v23 = vpack.c.bf16 %v2159_v22, %v2144_v15  ;;  %v2180_v4 = vadd.f32 %v4371_v45, %v2179_v20  ;;  %v2193_v17 = vsub.f32 1.0, %v2192_v7  ;;  %v2174_v27 = vsel %vm5902_vm3, %v2173_v5, %v2169_v16 }
 0x198   : > { %v2207_v30 = vmul.f32 %v4377_v21, %v5882_v37  ;;  %4380 = vrcp.f32 %v5920_v18  ;;  %vm2197_vm13 = vweird.f32 %v4375_v13  ;;  %vm2211_vm14 = vweird.f32 %v5882_v37 }
 0x199   : > { %3535 = vst [vmem:[%s5101_s20 + $0xa0] sm:$0xff] %v3471_v23  ;;  %v2184_v12 = vsel %vm2183_vm12, %v4371_v45, %v2180_v4  ;;  %v2194_v32 = vmul.f32 %v4375_v13, %v2193_v17  ;;  %v2217_v40 = vand.u32 2147483648, %v5882_v37  ;;  %4382 = vpow2.f32 %v5862_v31  ;;  %vm5945_vm15 = vmor %vm2196_vm11, %vm2197_vm13  ;;  %v796_v23 = vpop.f32.mrf.mxu1 }
 0x19a   : > { %v4379_v35 = vpop.eup %4378  ;;  %v2189_v24 = vsel %vm5912_vm7, %v2188_v6, %v2184_v12  ;;  %v2208_v26 = vsub.f32 1.0, %v2207_v30  ;;  %v2215_v28 = vand.u32 2147483647, %v5882_v37  ;;  %v4002_v36 = vmul.f32 -1.442695, %v969_v14 }
 0x19b   : > { %v3472_v34 = vpack.c.bf16 %v2189_v24, %v2174_v27  ;;  %v2195_v25 = vadd.f32 %v4375_v13, %v2194_v32  ;;  %vm2212_vm1 = vweird.f32 %v4377_v21  ;;  %v5949_v48 = vadd.f32 1.0, %v4379_v35 }
 0x19c   : > { %v2209_v47 = vmul.f32 %v4377_v21, %v2208_v26  ;;  %4384 = vpow2.f32 %v5866_v38  ;;  %vm2201_vm2 = vcmp.eq.f32.partialorder %v2200_v11, 8.507059e+37  ;;  %v2203_v51 = vor.u32 1.1754944e-38, %v2202_v29  ;;  %vm2213_vm3 = vmor %vm2211_vm14, %vm2212_vm1 }
 0x19d   : > { %3536 = vst [vmem:[%s5101_s20 + $0xa8] sm:$0xff] %v3472_v34  ;;  %v2199_v31 = vsel %vm5945_vm15, %v4375_v13, %v2195_v25  ;;  %4386 = vpow2.f32 %v5871_v41  ;;  %v2218_v49 = vor.u32 1.1754944e-38, %v2217_v40  ;;  %v2230_v57 = vand.u32 2147483647, %v5920_v18 }
 0x19e   : > { %v5956_v53 = vpop.eup %4380  ;;  %v2210_v56 = vadd.f32 %v4377_v21, %v2209_v47  ;;  %4388 = vrcp.f32 %v5949_v48  ;;  %v2204_v43 = vsel %vm2201_vm2, %v2203_v51, %v2199_v31  ;;  %v2232_v41 = vand.u32 2147483648, %v5920_v18 }
 0x19f   : > { %v2222_v38 = vmul.f32 %v5956_v53, %v5920_v18  ;;  %v4003_v58 = vmul.f32 -1.442695, %v704_v33  ;;  %v4383_v39 = vpop.eup %4382  ;;  %vm2216_vm4 = vcmp.eq.f32.partialorder %v2215_v28, 8.507059e+37  ;;  %4390 = vpow2.f32 %v4002_v36 }
 0x1a0   : > { %v2214_v44 = vsel %vm2213_vm3, %v4377_v21, %v2210_v56  ;;  %vm2226_vm5 = vweird.f32 %v5920_v18  ;;  %v5972_v46 = vadd.f32 1.0, %v4383_v39  ;;  %v4004_v1 = vmul.f32 -1.442695, %v793_v52 }
 0x1a1   : > { %v2219_v50 = vsel %vm2216_vm4, %v2218_v49, %v2214_v44  ;;  %v2223_v45 = vsub.f32 1.0, %v2222_v38  ;;  %vm5975_vm6 = vcmp.eq.f32.partialorder %v2230_v57, 8.507059e+37  ;;  %v2233_v0 = vor.u32 1.1754944e-38, %v2232_v41 }
 0x1a2   : > { %v4385_v37 = vpop.eup %4384  ;;  %v3473_v54 = vpack.c.bf16 %v2219_v50, %v2204_v43  ;;  %4392 = vpow2.f32 %v4003_v58  ;;  %vm2241_vm0 = vweird.f32 %v5949_v48  ;;  %v4005_v9 = vmul.f32 -1.442695, %v882_v62 }
 0x1a3   : > { %v4387_v2 = vpop.eup %4386  ;;  %v2224_v3 = vmul.f32 %v5956_v53, %v2223_v45  ;;  %v5979_v5 = vadd.f32 1.0, %v4385_v37  ;;  %4394 = vrcp.f32 %v5972_v46  ;;  %v5984_v10 = vmul.f32 -1.442695, %v971_v63 }
 0x1a4   : > { %v4389_v8 = vpop.eup %4388  ;;  %3537 = vst [vmem:[%s5101_s20 + $0xb0] sm:$0xff] %v3473_v54  ;;  %vm2227_vm7 = vweird.f32 %v5956_v53  ;;  %v2245_v19 = vand.u32 2147483647, %v5949_v48  ;;  %v2247_v20 = vand.u32 2147483648, %v5949_v48  ;;  %v5992_v7 = vmul.f32 -1.442695, %v707_v59 }
 0x1a5   : > { %v2225_v13 = vadd.f32 %v5956_v53, %v2224_v3  ;;  %v2237_v15 = vmul.f32 %v4389_v8, %v5949_v48  ;;  %4396 = vrcp.f32 %v5979_v5  ;;  %v4391_v61 = vpop.eup %4390  ;;  %v2260_v22 = vand.u32 2147483647, %v5972_v46  ;;  %vm6000_vm8 = vmor %vm2226_vm5, %vm2227_vm7 }
 0x1a6   : > { %4398 = vpow2.f32 %v4004_v1  ;;  %v2262_v16 = vand.u32 2147483648, %v5972_v46  ;;  %v5996_v6 = vadd.f32 1.0, %v4387_v2  ;;  %vm2242_vm9 = vweird.f32 %v4389_v8 }
 0x1a7   : > { %v2238_v21 = vsub.f32 1.0, %v2237_v15  ;;  %v2275_v17 = vand.u32 2147483647, %v5979_v5  ;;  %v6005_v11 = vadd.f32 1.0, %v4391_v61  ;;  %4400 = vpow2.f32 %v4005_v9  ;;  %vm2243_vm13 = vmor %vm2241_vm0, %vm2242_vm9 }
 0x1a8   : > { %v4393_v14 = vpop.eup %4392  ;;  %v2229_v27 = vsel %vm6000_vm8, %v5956_v53, %v2225_v13  ;;  %v2277_v30 = vand.u32 2147483648, %v5979_v5  ;;  %4402 = vrcp.f32 %v5996_v6  ;;  %vm6012_vm10 = vcmp.eq.f32.partialorder %v2245_v19, 8.507059e+37  ;;  %v885_v19 = vpop.f32.mrf.mxu2 }
 0x1a9   : > { %v2239_v29 = vmul.f32 %v4389_v8, %v2238_v21  ;;  %v4395_v18 = vpop.eup %4394  ;;  %v2248_v32 = vor.u32 1.1754944e-38, %v2247_v20  ;;  %4404 = vrcp.f32 %v6005_v11  ;;  %v6017_v33 = vmul.f32 -1.442695, %v796_v23 }
 0x1aa   : > { %v2252_v26 = vmul.f32 %v4395_v18, %v5972_v46  ;;  %vm2256_vm11 = vweird.f32 %v5972_v46  ;;  %vm6021_vm12 = vcmp.eq.f32.partialorder %v2260_v22, 8.507059e+37  ;;  %v2234_v25 = vsel %vm5975_vm6, %v2233_v0, %v2229_v27 }
 0x1ab   : > { %v4397_v35 = vpop.eup %4396  ;;  %v2240_v24 = vadd.f32 %v4389_v8, %v2239_v29  ;;  %v2263_v28 = vor.u32 1.1754944e-38, %v2262_v16  ;;  %vm2271_vm14 = vweird.f32 %v5979_v5  ;;  %vm6032_vm15 = vcmp.eq.f32.partialorder %v2275_v17, 8.507059e+37  ;;  %v974_v16 = vpop.f32.mrf.mxu3 }
 0x1ac   : > { %v4399_v34 = vpop.eup %4398  ;;  %v2267_v36 = vmul.f32 %v4397_v35, %v5979_v5  ;;  %v2253_v47 = vsub.f32 1.0, %v2252_v26  ;;  %v2278_v51 = vor.u32 1.1754944e-38, %v2277_v30  ;;  %vm2286_vm1 = vweird.f32 %v5996_v6 }
 0x1ad   : > { %v2244_v42 = vsel %vm2243_vm13, %v4389_v8, %v2240_v24  ;;  %v4401_v52 = vpop.eup %4400  ;;  %v2290_v48 = vand.u32 2147483647, %v5996_v6  ;;  %v6040_v49 = vadd.f32 1.0, %v4393_v14  ;;  %vm2257_vm2 = vweird.f32 %v4395_v18  ;;  %v709_v24 = vpop.f32.mrf.mxu0 }
 0x1ae   : > { %v2249_v53 = vsel %vm6012_vm10, %v2248_v32, %v2244_v42  ;;  %v2268_v56 = vsub.f32 1.0, %v2267_v36  ;;  %v4403_v57 = vpop.eup %4402  ;;  %v2254_v43 = vmul.f32 %v4395_v18, %v2253_v47  ;;  %v6042_v38 = vadd.f32 1.0, %v4399_v34  ;;  %vm2258_vm5 = vmor %vm2256_vm11, %vm2257_vm2 }
 0x1af   : > { %v3474_v55 = vpack.c.bf16 %v2249_v53, %v2234_v25  ;;  %v4405_v41 = vpop.eup %4404  ;;  %vm2272_vm3 = vweird.f32 %v4397_v35  ;;  %v2282_v39 = vmul.f32 %v4403_v57, %v5996_v6  ;;  %4406 = vrcp.f32 %v6040_v49 }
 0x1b0   : > { %v2269_v58 = vmul.f32 %v4397_v35, %v2268_v56  ;;  %v2255_v44 = vadd.f32 %v4395_v18, %v2254_v43  ;;  %v2292_v50 = vand.u32 2147483648, %v5996_v6  ;;  %v2297_v45 = vmul.f32 %v4405_v41, %v6005_v11  ;;  %vm2273_vm6 = vmor %vm2271_vm14, %vm2272_vm3 }
 0x1b1   : > { %3538 = vst [vmem:[%s5101_s20 + $0xb8] sm:$0xff] %v3474_v55  ;;  %vm2301_vm4 = vweird.f32 %v6005_v11  ;;  %v2283_v63 = vsub.f32 1.0, %v2282_v39  ;;  %v2305_v37 = vand.u32 2147483647, %v6005_v11  ;;  %v6053_v54 = vadd.f32 1.0, %v4401_v52 }
 0x1b2   : > { %v2270_v62 = vadd.f32 %v4397_v35, %v2269_v58  ;;  %v2259_v1 = vsel %vm2258_vm5, %v4395_v18, %v2255_v44  ;;  %v2298_v2 = vsub.f32 1.0, %v2297_v45  ;;  %v2307_v3 = vand.u32 2147483648, %v6005_v11 }
 0x1b3   : > { %4408 = vrcp.f32 %v6042_v38  ;;  %v2264_v60 = vsel %vm6021_vm12, %v2263_v28, %v2259_v1  ;;  %v2284_v0 = vmul.f32 %v4403_v57, %v2283_v63  ;;  %vm2287_vm0 = vweird.f32 %v4403_v57  ;;  %v798_v28 = vpop.f32.mrf.mxu1  ;;  %v976_v39 = vpop.f32.mrf.mxu3 }
 0x1b4   : > { %v2274_v46 = vsel %vm2273_vm6, %v4397_v35, %v2270_v62  ;;  %vm6063_vm7 = vcmp.eq.f32.partialorder %v2290_v48, 8.507059e+37  ;;  %v2299_v5 = vmul.f32 %v4405_v41, %v2298_v2  ;;  %vm2302_vm8 = vweird.f32 %v4405_v41  ;;  %vm2288_vm9 = vmor %vm2286_vm1, %vm2287_vm0 }
 0x1b5   : > { %v2279_v59 = vsel %vm6032_vm15, %v2278_v51, %v2274_v46  ;;  %v4407_v9 = vpop.eup %4406  ;;  %v2285_v15 = vadd.f32 %v4403_v57, %v2284_v0  ;;  %v2293_v61 = vor.u32 1.1754944e-38, %v2292_v50  ;;  %4410 = vrcp.f32 %v6053_v54  ;;  %vm2303_vm11 = vmor %vm2301_vm4, %vm2302_vm8 }
 0x1b6   : > { %v3475_v13 = vpack.c.bf16 %v2279_v59, %v2264_v60  ;;  %v2300_v20 = vadd.f32 %v4405_v41, %v2299_v5  ;;  %vm2306_vm10 = vcmp.eq.f32.partialorder %v2305_v37, 8.507059e+37  ;;  %v2308_v21 = vor.u32 1.1754944e-38, %v2307_v3  ;;  %v712_v5 = vpop.f32.mrf.mxu0 }
 0x1b7   : > { %v2312_v22 = vmul.f32 %v4407_v9, %v6040_v49  ;;  %v2289_v23 = vsel %vm2288_vm9, %v4403_v57, %v2285_v15  ;;  %vm2316_vm12 = vweird.f32 %v6040_v49  ;;  %v2320_v4 = vand.u32 2147483647, %v6040_v49 }
 0x1b8   : > { %3539 = vst [vmem:[%s5101_s20 + $0xc0] sm:$0xff] %v3475_v13  ;;  %v2322_v17 = vand.u32 2147483648, %v6040_v49  ;;  %v2294_v14 = vsel %vm6063_vm7, %v2293_v61, %v2289_v23  ;;  %v2304_v27 = vsel %vm2303_vm11, %v4405_v41, %v2300_v20  ;;  %vm2331_vm13 = vweird.f32 %v6042_v38  ;;  %v887_v49 = vpop.f32.mrf.mxu2 }
 0x1b9   : > { %v4409_v6 = vpop.eup %4408  ;;  %v2313_v29 = vsub.f32 1.0, %v2312_v22  ;;  %v2309_v30 = vsel %vm2306_vm10, %v2308_v21, %v2304_v27  ;;  %v2335_v11 = vand.u32 2147483647, %v6042_v38  ;;  %v2337_v12 = vand.u32 2147483648, %v6042_v38 }
 0x1ba   : > { %v2327_v18 = vmul.f32 %v4409_v6, %v6042_v38  ;;  %v3476_v32 = vpack.c.bf16 %v2309_v30, %v2294_v14  ;;  %vm2317_vm14 = vweird.f32 %v4407_v9  ;;  %4412 = vpow2.f32 %v5984_v10 }
 0x1bb   : > { %v2314_v35 = vmul.f32 %v4407_v9, %v2313_v29  ;;  %v6085_v26 = vpop.eup %4410  ;;  %4414 = vpow2.f32 %v5992_v7  ;;  %v4009_v34 = vmul.f32 -1.442695, %v885_v19  ;;  %v4010_v25 = vmul.f32 -1.442695, %v974_v16  ;;  %vm6098_vm1 = vmor %vm2316_vm12, %vm2317_vm14 }
 0x1bc   : > { %v2328_v40 = vsub.f32 1.0, %v2327_v18  ;;  %3540 = vst [vmem:[%s5101_s20 + $0xc8] sm:$0xff] %v3476_v32  ;;  %vm6089_vm15 = vcmp.eq.f32.partialorder %v2320_v4, 8.507059e+37  ;;  %v2342_v47 = vmul.f32 %v6085_v26, %v6053_v54  ;;  %4416 = vpow2.f32 %v6017_v33 }
 0x1bd   : > { %v2315_v36 = vadd.f32 %v4407_v9, %v2314_v35  ;;  %vm2332_vm2 = vweird.f32 %v4409_v6  ;;  %4418 = vpow2.f32 %v4009_v34  ;;  %v4011_v31 = vmul.f32 -1.442695, %v709_v24 }
 0x1be   : > { %v2329_v7 = vmul.f32 %v4409_v6, %v2328_v40  ;;  %v2323_v52 = vor.u32 1.1754944e-38, %v2322_v17  ;;  %v2343_v53 = vsub.f32 1.0, %v2342_v47  ;;  %v4012_v56 = vmul.f32 -1.442695, %v798_v28  ;;  %vm2333_vm4 = vmor %vm2331_vm13, %vm2332_vm2 }
 0x1bf   : > { %v2319_v51 = vsel %vm6098_vm1, %v4407_v9, %v2315_v36  ;;  %vm6104_vm3 = vcmp.eq.f32.partialorder %v2335_v11, 8.507059e+37  ;;  %v2338_v33 = vor.u32 1.1754944e-38, %v2337_v12  ;;  %4420 = vpow2.f32 %v4010_v25  ;;  %v801_v9 = vpop.f32.mrf.mxu1 }
 0x1c0   : > { %v2330_v48 = vadd.f32 %v4409_v6, %v2329_v7  ;;  %v4413_v55 = vpop.eup %4412  ;;  %v2324_v43 = vsel %vm6089_vm15, %v2323_v52, %v2319_v51  ;;  %v2344_v41 = vmul.f32 %v6085_v26, %v2343_v53  ;;  %v2350_v58 = vand.u32 2147483647, %v6053_v54 }
 0x1c1   : > { %4422 = vpow2.f32 %v4011_v31  ;;  %v4415_v44 = vpop.eup %4414  ;;  %vm2347_vm5 = vweird.f32 %v6085_v26  ;;  %v2352_v45 = vand.u32 2147483648, %v6053_v54  ;;  %v6116_v62 = vadd.f32 1.0, %v4413_v55 }
 0x1c2   : > { %v2334_v50 = vsel %vm2333_vm4, %v4409_v6, %v2330_v48  ;;  %v4417_v63 = vpop.eup %4416  ;;  %v6120_v37 = vadd.f32 1.0, %v4415_v44  ;;  %4424 = vpow2.f32 %v4012_v56  ;;  %v4013_v1 = vmul.f32 -1.442695, %v887_v49 }
 0x1c3   : > { %v2339_v38 = vsel %vm6104_vm3, %v2338_v33, %v2334_v50  ;;  %v4419_v2 = vpop.eup %4418  ;;  %v2345_v60 = vadd.f32 %v6085_v26, %v2344_v41  ;;  %4426 = vrcp.f32 %v6116_v62  ;;  %v4014_v46 = vmul.f32 -1.442695, %v976_v39 }
 0x1c4   : > { %v3477_v3 = vpack.c.bf16 %v2339_v38, %v2324_v43  ;;  %4428 = vrcp.f32 %v6120_v37  ;;  %vm2346_vm6 = vweird.f32 %v6053_v54  ;;  %vm6127_vm0 = vcmp.eq.f32.partialorder %v2350_v58, 8.507059e+37 }
 0x1c5   : > { %v4421_v0 = vpop.eup %4420  ;;  %v2353_v8 = vor.u32 1.1754944e-38, %v2352_v45  ;;  %vm6133_vm7 = vmor %vm2346_vm6, %vm2347_vm5  ;;  %v2365_v61 = vand.u32 2147483647, %v6116_v62  ;;  %v6138_v19 = vadd.f32 1.0, %v4417_v63  ;;  %v6140_v20 = vadd.f32 1.0, %v4419_v2 }
 0x1c6   : > { %3541 = vst [vmem:[%s5101_s20 + $0xd0] sm:$0xff] %v3477_v3  ;;  %4430 = vpow2.f32 %v4013_v1  ;;  %v2349_v54 = vsel %vm6133_vm7, %v6085_v26, %v2345_v60  ;;  %v2367_v21 = vand.u32 2147483648, %v6116_v62  ;;  %v2382_v22 = vand.u32 2147483648, %v6120_v37 }
 0x1c7   : > { %v4423_v13 = vpop.eup %4422  ;;  %4432 = vpow2.f32 %v4014_v46  ;;  %v6148_v23 = vadd.f32 1.0, %v4421_v0  ;;  %v6150_v4 = vmul.f32 -1.442695, %v712_v5  ;;  %v6152_v17 = vmul.f32 -1.442695, %v801_v9 }
 0x1c8   : > { %v4425_v16 = vpop.eup %4424  ;;  %4434 = vrcp.f32 %v6138_v19  ;;  %vm2361_vm8 = vweird.f32 %v6116_v62  ;;  %v2380_v14 = vand.u32 2147483647, %v6120_v37  ;;  %v6157_v27 = vadd.f32 1.0, %v4423_v13 }
 0x1c9   : > { %v4427_v6 = vpop.eup %4426  ;;  %4436 = vrcp.f32 %v6140_v20  ;;  %v2354_v30 = vsel %vm6127_vm0, %v2353_v8, %v2349_v54  ;;  %vm6164_vm9 = vcmp.eq.f32.partialorder %v2365_v61, 8.507059e+37  ;;  %vm2376_vm10 = vweird.f32 %v6120_v37  ;;  %v890_v54 = vpop.f32.mrf.mxu2 }
 0x1ca   : > { %v6159_v29 = vpop.eup %4428  ;;  %v2357_v18 = vmul.f32 %v4427_v6, %v6116_v62  ;;  %v2368_v12 = vor.u32 1.1754944e-38, %v2367_v21  ;;  %v2383_v35 = vor.u32 1.1754944e-38, %v2382_v22  ;;  %v2395_v24 = vand.u32 2147483647, %v6138_v19 }
 0x1cb   : > { %v2372_v32 = vmul.f32 %v6159_v29, %v6120_v37  ;;  %v2397_v34 = vand.u32 2147483648, %v6138_v19  ;;  %v2412_v25 = vand.u32 2147483648, %v6140_v20  ;;  %4438 = vrcp.f32 %v6148_v23 }
 0x1cc   : > { %v4431_v26 = vpop.eup %4430  ;;  %v2358_v40 = vsub.f32 1.0, %v2357_v18  ;;  %vm6177_vm11 = vcmp.eq.f32.partialorder %v2380_v14, 8.507059e+37  ;;  %v2410_v47 = vand.u32 2147483647, %v6140_v20  ;;  %4440 = vrcp.f32 %v6157_v27 }
 0x1cd   : > { %v6175_v28 = vpop.eup %4432  ;;  %v2373_v36 = vsub.f32 1.0, %v2372_v32  ;;  %v6183_v10 = vadd.f32 1.0, %v4425_v16  ;;  %vm2362_vm12 = vweird.f32 %v4427_v6  ;;  %vm2391_vm13 = vweird.f32 %v6138_v19 }
 0x1ce   : > { %v4435_v7 = vpop.eup %4434  ;;  %v2359_v31 = vmul.f32 %v4427_v6, %v2358_v40  ;;  %vm2406_vm14 = vweird.f32 %v6140_v20  ;;  %vm2377_vm15 = vweird.f32 %v6159_v29  ;;  %vm6190_vm1 = vcmp.eq.f32.partialorder %v2395_v24, 8.507059e+37  ;;  %vm2363_vm2 = vmor %vm2361_vm8, %vm2362_vm12 }
 0x1cf   : > { %v4437_v51 = vpop.eup %4436  ;;  %v2374_v52 = vmul.f32 %v6159_v29, %v2373_v36  ;;  %v2387_v53 = vmul.f32 %v4435_v7, %v6138_v19  ;;  %v2398_v57 = vor.u32 1.1754944e-38, %v2397_v34  ;;  %v2413_v49 = vor.u32 1.1754944e-38, %v2412_v25  ;;  %vm6209_vm5 = vmor %vm2376_vm10, %vm2377_vm15  ;;  %v979_v34 = vpop.f32.mrf.mxu3 }
 0x1d0   : > { %v2360_v48 = vadd.f32 %v4427_v6, %v2359_v31  ;;  %v2402_v33 = vmul.f32 %v4437_v51, %v6140_v20  ;;  %vm6198_vm3 = vcmp.eq.f32.partialorder %v2410_v47, 8.507059e+37  ;;  %vm2421_vm4 = vweird.f32 %v6148_v23  ;;  %v714_v47 = vpop.f32.mrf.mxu0 }
 0x1d1   : > { %v2375_v55 = vadd.f32 %v6159_v29, %v2374_v52  ;;  %v2388_v43 = vsub.f32 1.0, %v2387_v53  ;;  %v2425_v58 = vand.u32 2147483647, %v6148_v23  ;;  %4442 = vrcp.f32 %v6183_v10  ;;  %v4439_v39 = vpop.eup %4438  ;;  %v803_v53 = vpop.f32.mrf.mxu1 }
 0x1d2   : > { %v2364_v44 = vsel %vm2363_vm2, %v4427_v6, %v2360_v48  ;;  %vm2392_vm6 = vweird.f32 %v4435_v7  ;;  %v2403_v45 = vsub.f32 1.0, %v2402_v33  ;;  %v2427_v62 = vand.u32 2147483648, %v6148_v23  ;;  %v4441_v63 = vpop.eup %4440 }
 0x1d3   : > { %v2369_v38 = vsel %vm6164_vm9, %v2368_v12, %v2364_v44  ;;  %v2379_v1 = vsel %vm6209_vm5, %v6159_v29, %v2375_v55  ;;  %v2389_v2 = vmul.f32 %v4435_v7, %v2388_v43  ;;  %v2417_v37 = vmul.f32 %v4439_v39, %v6148_v23  ;;  %vm2393_vm8 = vmor %vm2391_vm13, %vm2392_vm6 }
 0x1d4   : > { %vm2436_vm0 = vweird.f32 %v6157_v27  ;;  %v3478_v3 = vpack.c.bf16 %v2369_v38, %v2354_v30  ;;  %v2404_v60 = vmul.f32 %v4437_v51, %v2403_v45  ;;  %vm2407_vm7 = vweird.f32 %v4437_v51 }
 0x1d5   : > { %v2440_v46 = vand.u32 2147483647, %v6157_v27  ;;  %v2390_v0 = vadd.f32 %v4435_v7, %v2389_v2  ;;  %v2418_v59 = vsub.f32 1.0, %v2417_v37  ;;  %v2432_v8 = vmul.f32 %v4441_v63, %v6157_v27  ;;  %vm2408_vm9 = vmor %vm2406_vm14, %vm2407_vm7 }
 0x1d6   : > { %v2442_v5 = vand.u32 2147483648, %v6157_v27  ;;  %3542 = vst [vmem:[%s5101_s20 + $0xd8] sm:$0xff] %v3478_v3  ;;  %v2384_v9 = vsel %vm6177_vm11, %v2383_v35, %v2379_v1  ;;  %v2405_v13 = vadd.f32 %v4437_v51, %v2404_v60  ;;  %v2428_v15 = vor.u32 1.1754944e-38, %v2427_v62 }
 0x1d7   : > { %v6230_v61 = vadd.f32 1.0, %v4431_v26  ;;  %v4443_v21 = vpop.eup %4442  ;;  %v2394_v22 = vsel %vm2393_vm8, %v4435_v7, %v2390_v0  ;;  %v2419_v16 = vmul.f32 %v4439_v39, %v2418_v59  ;;  %vm2422_vm10 = vweird.f32 %v4439_v39 }
 0x1d8   : > { %v2433_v6 = vsub.f32 1.0, %v2432_v8  ;;  %v2399_v14 = vsel %vm6190_vm1, %v2398_v57, %v2394_v22  ;;  %v2409_v19 = vsel %vm2408_vm9, %v4437_v51, %v2405_v13  ;;  %v2447_v29 = vmul.f32 %v4443_v21, %v6183_v10  ;;  %vm2423_vm12 = vmor %vm2421_vm4, %vm2422_vm10  ;;  %v892_v57 = vpop.f32.mrf.mxu2  ;;  %v717_v59 = vpop.f32.mrf.mxu0 }
 0x1d9   : > { %v6239_v30 = vadd.f32 1.0, %v6175_v28  ;;  %v3479_v18 = vpack.c.bf16 %v2399_v14, %v2384_v9  ;;  %v2420_v11 = vadd.f32 %v4439_v39, %v2419_v16  ;;  %vm2437_vm11 = vweird.f32 %v4441_v63 }
 0x1da   : > { %v2434_v12 = vmul.f32 %v4441_v63, %v2433_v6  ;;  %v2414_v20 = vsel %vm6198_vm3, %v2413_v49, %v2409_v19  ;;  %v2448_v32 = vsub.f32 1.0, %v2447_v29  ;;  %v2457_v35 = vand.u32 2147483648, %v6183_v10  ;;  %vm2438_vm14 = vmor %vm2436_vm0, %vm2437_vm11 }
 0x1db   : > { %4444 = vrcp.f32 %v6230_v61  ;;  %3543 = vst [vmem:[%s5101_s20 + $0xe0] sm:$0xff] %v3479_v18  ;;  %v2424_v24 = vsel %vm2423_vm12, %v4439_v39, %v2420_v11  ;;  %vm2426_vm13 = vcmp.eq.f32.partialorder %v2425_v58, 8.507059e+37  ;;  %v2455_v40 = vand.u32 2147483647, %v6183_v10 }
 0x1dc   : > { %v2435_v26 = vadd.f32 %v4441_v63, %v2434_v12  ;;  %v2429_v25 = vsel %vm2426_vm13, %v2428_v15, %v2424_v24  ;;  %v2449_v28 = vmul.f32 %v4443_v21, %v2448_v32  ;;  %vm2452_vm15 = vweird.f32 %v4443_v21 }
 0x1dd   : > { %4446 = vrcp.f32 %v6239_v30  ;;  %v3480_v23 = vpack.c.bf16 %v2429_v25, %v2414_v20  ;;  %v2443_v42 = vor.u32 1.1754944e-38, %v2442_v5  ;;  %vm2441_vm1 = vcmp.eq.f32.partialorder %v2440_v46, 8.507059e+37 }
 0x1de   : > { %v2439_v36 = vsel %vm2438_vm14, %v4441_v63, %v2435_v26  ;;  %v2450_v7 = vadd.f32 %v4443_v21, %v2449_v28  ;;  %vm2451_vm2 = vweird.f32 %v6183_v10  ;;  %v2458_v31 = vor.u32 1.1754944e-38, %v2457_v35  ;;  %v981_v63 = vpop.f32.mrf.mxu3 }
 0x1df   : > { %3544 = vst [vmem:[%s5101_s20 + $0xe8] sm:$0xff] %v3480_v23  ;;  %v2444_v51 = vsel %vm2441_vm1, %v2443_v42, %v2439_v36  ;;  %vm2453_vm3 = vmor %vm2451_vm2, %vm2452_vm15  ;;  %4448 = vpow2.f32 %v6150_v4  ;;  %v4017_v27 = vmul.f32 -1.442695, %v890_v54  ;;  %v4018_v52 = vmul.f32 -1.442695, %v979_v34  ;;  %v806_v54 = vpop.f32.mrf.mxu1 }
 0x1e0   : > { %v2454_v48 = vsel %vm2453_vm3, %v4443_v21, %v2450_v7  ;;  %vm2456_vm4 = vcmp.eq.f32.partialorder %v2455_v40, 8.507059e+37  ;;  %4450 = vpow2.f32 %v6152_v17  ;;  %v4019_v43 = vmul.f32 -1.442695, %v714_v47  ;;  %v895_v6 = vpop.f32.mrf.mxu2 }
 0x1e1   : > { %v4445_v56 = vpop.eup %4444  ;;  %v2459_v33 = vsel %vm2456_vm4, %v2458_v31, %v2454_v48  ;;  %4452 = vpow2.f32 %v4017_v27  ;;  %v4020_v41 = vmul.f32 -1.442695, %v803_v53  ;;  %vm2466_vm5 = vweird.f32 %v6230_v61 }
 0x1e2   : > { %v2462_v49 = vmul.f32 %v4445_v56, %v6230_v61  ;;  %v3481_v55 = vpack.c.bf16 %v2459_v33, %v2444_v51  ;;  %4454 = vpow2.f32 %v4018_v52  ;;  %v2470_v39 = vand.u32 2147483647, %v6230_v61 }
 0x1e3   : > { %v4447_v10 = vpop.eup %4446  ;;  %v2472_v17 = vand.u32 2147483648, %v6230_v61  ;;  %vm2481_vm6 = vweird.f32 %v6239_v30  ;;  %4456 = vpow2.f32 %v4019_v43  ;;  %vm2467_vm0 = vweird.f32 %v4445_v56 }
 0x1e4   : > { %v2463_v4 = vsub.f32 1.0, %v2462_v49  ;;  %v2477_v58 = vmul.f32 %v4447_v10, %v6239_v30  ;;  %3545 = vst [vmem:[%s5101_s20 + $0xf0] sm:$0xff] %v3481_v55  ;;  %v2485_v62 = vand.u32 2147483647, %v6239_v30  ;;  %v2487_v1 = vand.u32 2147483648, %v6239_v30  ;;  %vm2468_vm8 = vmor %vm2466_vm5, %vm2467_vm0 }
 0x1e5   : > { %v4449_v44 = vpop.eup %4448  ;;  %4458 = vpow2.f32 %v4020_v41  ;;  %v4021_v37 = vmul.f32 -1.442695, %v892_v57  ;;  %vm2482_vm7 = vweird.f32 %v4447_v10  ;;  %vm2471_vm9 = vcmp.eq.f32.partialorder %v2470_v39, 8.507059e+37 }
 0x1e6   : > { %v2464_v50 = vmul.f32 %v4445_v56, %v2463_v4  ;;  %v2478_v45 = vsub.f32 1.0, %v2477_v58  ;;  %v4451_v38 = vpop.eup %4450  ;;  %v6265_v2 = vadd.f32 1.0, %v4449_v44  ;;  %v2473_v5 = vor.u32 1.1754944e-38, %v2472_v17  ;;  %vm2483_vm11 = vmor %vm2481_vm6, %vm2482_vm7 }
 0x1e7   : > { %v4453_v3 = vpop.eup %4452  ;;  %v6267_v0 = vadd.f32 1.0, %v4451_v38  ;;  %v4022_v9 = vmul.f32 -1.442695, %v981_v63  ;;  %vm2486_vm10 = vcmp.eq.f32.partialorder %v2485_v62, 8.507059e+37  ;;  %v2488_v16 = vor.u32 1.1754944e-38, %v2487_v1 }
 0x1e8   : > { %v2465_v60 = vadd.f32 %v4445_v56, %v2464_v50  ;;  %v2479_v46 = vmul.f32 %v4447_v10, %v2478_v45  ;;  %v4455_v8 = vpop.eup %4454  ;;  %4460 = vrcp.f32 %v6265_v2  ;;  %v6277_v61 = vmul.f32 -1.442695, %v717_v59 }
 0x1e9   : > { %4462 = vrcp.f32 %v6267_v0  ;;  %v4457_v21 = vpop.eup %4456  ;;  %v2500_v19 = vand.u32 2147483647, %v6265_v2  ;;  %v6280_v29 = vadd.f32 1.0, %v4453_v3  ;;  %v6282_v18 = vadd.f32 1.0, %v4455_v8 }
 0x1ea   : > { %v2469_v13 = vsel %vm2468_vm8, %v4445_v56, %v2465_v60  ;;  %v2480_v15 = vadd.f32 %v4447_v10, %v2479_v46  ;;  %4464 = vpow2.f32 %v4021_v37  ;;  %v2502_v20 = vand.u32 2147483648, %v6265_v2 }
 0x1eb   : > { %v2474_v22 = vsel %vm2471_vm9, %v2473_v5, %v2469_v13  ;;  %v4459_v11 = vpop.eup %4458  ;;  %4466 = vpow2.f32 %v4022_v9  ;;  %v6285_v30 = vmul.f32 -1.442695, %v806_v54  ;;  %v6288_v35 = vadd.f32 1.0, %v4457_v21  ;;  %v984_v13 = vpop.f32.mrf.mxu3 }
 0x1ec   : > { %v2484_v14 = vsel %vm2483_vm11, %v4447_v10, %v2480_v15  ;;  %4468 = vrcp.f32 %v6280_v29  ;;  %v6290_v24 = vmul.f32 -1.442695, %v895_v6  ;;  %vm2496_vm12 = vweird.f32 %v6265_v2 }
 0x1ed   : > { %v2489_v12 = vsel %vm2486_vm10, %v2488_v16, %v2484_v14  ;;  %v2515_v40 = vand.u32 2147483647, %v6267_v0  ;;  %v2517_v34 = vand.u32 2147483648, %v6267_v0  ;;  %4470 = vrcp.f32 %v6282_v18 }
 0x1ee   : > { %v3482_v32 = vpack.c.bf16 %v2489_v12, %v2474_v22  ;;  %v4461_v26 = vpop.eup %4460  ;;  %vm6298_vm13 = vcmp.eq.f32.partialorder %v2500_v19, 8.507059e+37  ;;  %vm2511_vm14 = vweird.f32 %v6267_v0  ;;  %v6303_v36 = vadd.f32 1.0, %v4459_v11 }
 0x1ef   : > { %v4463_v25 = vpop.eup %4462  ;;  %v2492_v28 = vmul.f32 %v4461_v26, %v6265_v2  ;;  %v2503_v47 = vor.u32 1.1754944e-38, %v2502_v20  ;;  %v2530_v31 = vand.u32 2147483647, %v6280_v29  ;;  %v2532_v51 = vand.u32 2147483648, %v6280_v29 }
 0x1f0   : > { %3546 = vst [vmem:[%s5101_s20 + $0xf8] sm:$0xff] %v3482_v32  ;;  %v4465_v42 = vpop.eup %4464  ;;  %v2507_v7 = vmul.f32 %v4463_v25, %v6267_v0  ;;  %v2545_v52 = vand.u32 2147483647, %v6282_v18  ;;  %v2547_v53 = vand.u32 2147483648, %v6282_v18  ;;  %4472 = vrcp.f32 %v6288_v35 }
 0x1f1   : > { %v2493_v27 = vsub.f32 1.0, %v2492_v28  ;;  %v4467_v56 = vpop.eup %4466  ;;  %vm6311_vm15 = vcmp.eq.f32.partialorder %v2515_v40, 8.507059e+37  ;;  %v2518_v33 = vor.u32 1.1754944e-38, %v2517_v34  ;;  %vm2526_vm1 = vweird.f32 %v6280_v29 }
 0x1f2   : > { %v2508_v48 = vsub.f32 1.0, %v2507_v7  ;;  %v4469_v49 = vpop.eup %4468  ;;  %vm2497_vm2 = vweird.f32 %v4461_v26  ;;  %vm2512_vm3 = vweird.f32 %v4463_v25  ;;  %vm2541_vm4 = vweird.f32 %v6282_v18 }
 0x1f3   : > { %v2494_v10 = vmul.f32 %v4461_v26, %v2493_v27  ;;  %4474 = vrcp.f32 %v6303_v36  ;;  %v4471_v55 = vpop.eup %4470  ;;  %v2522_v41 = vmul.f32 %v4469_v49, %v6280_v29  ;;  %vm6319_vm5 = vcmp.eq.f32.partialorder %v2530_v31, 8.507059e+37  ;;  %vm2498_vm0 = vmor %vm2496_vm12, %vm2497_vm2 }
 0x1f4   : > { %v2509_v43 = vmul.f32 %v4463_v25, %v2508_v48  ;;  %v2533_v58 = vor.u32 1.1754944e-38, %v2532_v51  ;;  %v2537_v17 = vmul.f32 %v4471_v55, %v6282_v18  ;;  %vm6324_vm6 = vcmp.eq.f32.partialorder %v2545_v52, 8.507059e+37  ;;  %vm2513_vm8 = vmor %vm2511_vm14, %vm2512_vm3  ;;  %v719_v18 = vpop.f32.mrf.mxu0 }
 0x1f5   : > { %v2495_v39 = vadd.f32 %v4461_v26, %v2494_v10  ;;  %v2548_v50 = vor.u32 1.1754944e-38, %v2547_v53  ;;  %v2523_v62 = vsub.f32 1.0, %v2522_v41  ;;  %vm2556_vm7 = vweird.f32 %v6288_v35 }
 0x1f6   : > { %v2510_v45 = vadd.f32 %v4463_v25, %v2509_v43  ;;  %v2560_v63 = vand.u32 2147483647, %v6288_v35  ;;  %v4473_v38 = vpop.eup %4472  ;;  %vm2527_vm9 = vweird.f32 %v4469_v49  ;;  %v2538_v37 = vsub.f32 1.0, %v2537_v17 }
 0x1f7   : > { %v2499_v1 = vsel %vm2498_vm0, %v4461_v26, %v2495_v39  ;;  %v6335_v3 = vadd.f32 1.0, %v4465_v42  ;;  %v2524_v46 = vmul.f32 %v4469_v49, %v2523_v62  ;;  %v2552_v59 = vmul.f32 %v4473_v38, %v6288_v35  ;;  %vm2528_vm11 = vmor %vm2526_vm1, %vm2527_vm9 }
 0x1f8   : > { %v2504_v2 = vsel %vm6298_vm13, %v2503_v47, %v2499_v1  ;;  %v2514_v60 = vsel %vm2513_vm8, %v4463_v25, %v2510_v45  ;;  %v2539_v9 = vmul.f32 %v4471_v55, %v2538_v37  ;;  %vm2542_vm10 = vweird.f32 %v4471_v55 }
 0x1f9   : > { %v4475_v8 = vpop.eup %4474  ;;  %v2519_v5 = vsel %vm6311_vm15, %v2518_v33, %v2514_v60  ;;  %v6342_v0 = vadd.f32 1.0, %v4467_v56  ;;  %v2525_v54 = vadd.f32 %v4469_v49, %v2524_v46  ;;  %v2553_v21 = vsub.f32 1.0, %v2552_v59  ;;  %vm2543_vm12 = vmor %vm2541_vm4, %vm2542_vm10  ;;  %v897_v56 = vpop.f32.mrf.mxu2 }
 0x1fa   : > { %v3483_v15 = vpack.c.bf16 %v2519_v5, %v2504_v2  ;;  %v2567_v22 = vmul.f32 %v4475_v8, %v6303_v36  ;;  %v2540_v16 = vadd.f32 %v4471_v55, %v2539_v9  ;;  %v2562_v6 = vand.u32 2147483648, %v6288_v35  ;;  %v808_v35 = vpop.f32.mrf.mxu1 }
 0x1fb   : > { %v2575_v14 = vand.u32 2147483647, %v6303_v36  ;;  %4476 = vrcp.f32 %v6335_v3  ;;  %v2529_v19 = vsel %vm2528_vm11, %v4469_v49, %v2525_v54  ;;  %v2554_v11 = vmul.f32 %v4473_v38, %v2553_v21 }
 0x1fc   : > { %3547 = vst [vmem:[%s5101_s20 + $0x100] sm:$0xff] %v3483_v15  ;;  %vm2557_vm13 = vweird.f32 %v4473_v38  ;;  %v2568_v12 = vsub.f32 1.0, %v2567_v22  ;;  %v2534_v20 = vsel %vm6319_vm5, %v2533_v58, %v2529_v19  ;;  %v2544_v29 = vsel %vm2543_vm12, %v4471_v55, %v2540_v16 }
 0x1fd   : > { %v2577_v32 = vand.u32 2147483648, %v6303_v36  ;;  %4478 = vrcp.f32 %v6342_v0  ;;  %v2549_v26 = vsel %vm6324_vm6, %v2548_v50, %v2544_v29  ;;  %v2555_v40 = vadd.f32 %v4473_v38, %v2554_v11  ;;  %vm2558_vm15 = vmor %vm2556_vm7, %vm2557_vm13 }
 0x1fe   : > { %v2569_v34 = vmul.f32 %v4475_v8, %v2568_v12  ;;  %vm2572_vm14 = vweird.f32 %v4475_v8  ;;  %v3484_v25 = vpack.c.bf16 %v2549_v26, %v2534_v20  ;;  %v2563_v28 = vor.u32 1.1754944e-38, %v2562_v6 }
 0x1ff   : > { %vm2571_vm1 = vweird.f32 %v6303_v36  ;;  %v4026_v23 = vmul.f32 -1.442695, %v984_v13  ;;  %v2559_v42 = vsel %vm2558_vm15, %v4473_v38, %v2555_v40  ;;  %vm2561_vm2 = vcmp.eq.f32.partialorder %v2560_v63, 8.507059e+37  ;;  %v722_v38 = vpop.f32.mrf.mxu0 }
 0x200   : > { %v2570_v47 = vadd.f32 %v4475_v8, %v2569_v34  ;;  %4480 = vpow2.f32 %v6277_v61  ;;  %3548 = vst [vmem:[%s5101_s20 + $0x108] sm:$0xff] %v3484_v25  ;;  %v2564_v31 = vsel %vm2561_vm2, %v2563_v28, %v2559_v42  ;;  %vm2573_vm3 = vmor %vm2571_vm1, %vm2572_vm14  ;;  %v2578_v51 = vor.u32 1.1754944e-38, %v2577_v32  ;;  %v986_v61 = vpop.f32.mrf.mxu3 }
 0x201   : > { %v4477_v7 = vpop.eup %4476  ;;  %v2590_v27 = vand.u32 2147483647, %v6335_v3  ;;  %4482 = vpow2.f32 %v6285_v30  ;;  %vm2576_vm4 = vcmp.eq.f32.partialorder %v2575_v14, 8.507059e+37  ;;  %v4027_v53 = vmul.f32 -1.442695, %v719_v18  ;;  %v900_v21 = vpop.f32.mrf.mxu2 }
 0x202   : > { %v2574_v52 = vsel %vm2573_vm3, %v4475_v8, %v2570_v47  ;;  %v2582_v36 = vmul.f32 %v4477_v7, %v6335_v3  ;;  %4484 = vpow2.f32 %v6290_v24  ;;  %vm2586_vm5 = vweird.f32 %v6335_v3  ;;  %v811_v9 = vpop.f32.mrf.mxu1 }
 0x203   : > { %v4479_v48 = vpop.eup %4478  ;;  %v2579_v57 = vsel %vm2576_vm4, %v2578_v51, %v2574_v52  ;;  %vm6371_vm6 = vcmp.eq.f32.partialorder %v2590_v27, 8.507059e+37  ;;  %v2592_v55 = vand.u32 2147483648, %v6335_v3  ;;  %v2605_v43 = vand.u32 2147483647, %v6342_v0 }
 0x204   : > { %v3485_v33 = vpack.c.bf16 %v2579_v57, %v2564_v31  ;;  %v2583_v49 = vsub.f32 1.0, %v2582_v36  ;;  %v2597_v10 = vmul.f32 %v4479_v48, %v6342_v0  ;;  %4486 = vpow2.f32 %v4026_v23 }
 0x205   : > { %vm2587_vm0 = vweird.f32 %v4477_v7  ;;  %4488 = vpow2.f32 %v4027_v53  ;;  %v2607_v39 = vand.u32 2147483648, %v6342_v0  ;;  %v4028_v44 = vmul.f32 -1.442695, %v808_v35 }
 0x206   : > { %v4481_v41 = vpop.eup %4480  ;;  %3549 = vst [vmem:[%s5101_s20 + $0x110] sm:$0xff] %v3485_v33  ;;  %v2584_v4 = vmul.f32 %v4477_v7, %v2583_v49  ;;  %v2598_v24 = vsub.f32 1.0, %v2597_v10  ;;  %v4029_v50 = vmul.f32 -1.442695, %v897_v56  ;;  %vm2602_vm7 = vweird.f32 %v4479_v48  ;;  %vm2588_vm8 = vmor %vm2586_vm5, %vm2587_vm0 }
 0x207   : > { %v4483_v58 = vpop.eup %4482  ;;  %v6379_v17 = vadd.f32 1.0, %v4481_v41  ;;  %v2593_v37 = vor.u32 1.1754944e-38, %v2592_v55  ;;  %vm2601_vm9 = vweird.f32 %v6342_v0  ;;  %v4030_v2 = vmul.f32 -1.442695, %v986_v61 }
 0x208   : > { %v2585_v45 = vadd.f32 %v4477_v7, %v2584_v4  ;;  %v2599_v62 = vmul.f32 %v4479_v48, %v2598_v24  ;;  %v6381_v63 = vadd.f32 1.0, %v4483_v58  ;;  %v4485_v1 = vpop.eup %4484  ;;  %vm2606_vm10 = vcmp.eq.f32.partialorder %v2605_v43, 8.507059e+37  ;;  %vm2603_vm11 = vmor %vm2601_vm9, %vm2602_vm7  ;;  %v989_v14 = vpop.f32.mrf.mxu3 }
 0x209   : > { %4490 = vrcp.f32 %v6379_v17  ;;  %v2608_v5 = vor.u32 1.1754944e-38, %v2607_v39  ;;  %v6391_v3 = vmul.f32 -1.442695, %v722_v38  ;;  %v6393_v15 = vadd.f32 1.0, %v4485_v1 }
 0x20a   : > { %v2589_v60 = vsel %vm2588_vm8, %v4477_v7, %v2585_v45  ;;  %v2600_v46 = vadd.f32 %v4479_v48, %v2599_v62  ;;  %4492 = vrcp.f32 %v6381_v63  ;;  %v4487_v59 = vpop.eup %4486  ;;  %v2620_v16 = vand.u32 2147483647, %v6379_v17 }
 0x20b   : > { %v2594_v8 = vsel %vm6371_vm6, %v2593_v37, %v2589_v60  ;;  %4494 = vpow2.f32 %v4028_v44  ;;  %v4489_v0 = vpop.eup %4488  ;;  %v6395_v54 = vadd.f32 1.0, %v4487_v59  ;;  %v2622_v6 = vand.u32 2147483648, %v6379_v17 }
 0x20c   : > { %v2604_v13 = vsel %vm2603_vm11, %v4479_v48, %v2600_v46  ;;  %4496 = vpow2.f32 %v4029_v50  ;;  %v6400_v11 = vadd.f32 1.0, %v4489_v0  ;;  %v6402_v12 = vmul.f32 -1.442695, %v811_v9 }
 0x20d   : > { %v2609_v22 = vsel %vm2606_vm10, %v2608_v5, %v2604_v13  ;;  %4498 = vpow2.f32 %v4030_v2  ;;  %v2635_v29 = vand.u32 2147483647, %v6381_v63  ;;  %v2637_v32 = vand.u32 2147483648, %v6381_v63 }
 0x20e   : > { %v3486_v19 = vpack.c.bf16 %v2609_v22, %v2594_v8  ;;  %4500 = vrcp.f32 %v6393_v15  ;;  %v6407_v26 = vmul.f32 -1.442695, %v900_v21  ;;  %vm2616_vm12 = vweird.f32 %v6379_v17 }
 0x20f   : > { %v4491_v20 = vpop.eup %4490  ;;  %4502 = vrcp.f32 %v6395_v54  ;;  %vm2631_vm13 = vweird.f32 %v6381_v63  ;;  %v6413_v18 = vmul.f32 -1.442695, %v989_v14  ;;  %vm6415_vm14 = vcmp.eq.f32.partialorder %v2620_v16, 8.507059e+37 }
 0x210   : > { %v4493_v40 = vpop.eup %4492  ;;  %3550 = vst [vmem:[%s5101_s20 + $0x118] sm:$0xff] %v3486_v19  ;;  %v2612_v34 = vmul.f32 %v4491_v20, %v6379_v17  ;;  %v2623_v23 = vor.u32 1.1754944e-38, %v2622_v6  ;;  %v2650_v47 = vand.u32 2147483647, %v6393_v15  ;;  %v2652_v51 = vand.u32 2147483648, %v6393_v15 }
 0x211   : > { %v4495_v25 = vpop.eup %4494  ;;  %v2627_v42 = vmul.f32 %v4493_v40, %v6381_v63  ;;  %v2665_v27 = vand.u32 2147483647, %v6395_v54  ;;  %4504 = vrcp.f32 %v6400_v11  ;;  %vm6424_vm15 = vcmp.eq.f32.partialorder %v2635_v29, 8.507059e+37 }
 0x212   : > { %v4497_v7 = vpop.eup %4496  ;;  %v2613_v31 = vsub.f32 1.0, %v2612_v34  ;;  %v2638_v53 = vor.u32 1.1754944e-38, %v2637_v32  ;;  %vm2646_vm1 = vweird.f32 %v6393_v15  ;;  %vm2617_vm2 = vweird.f32 %v4491_v20  ;;  %v724_v32 = vpop.f32.mrf.mxu0 }
 0x213   : > { %v4499_v35 = vpop.eup %4498  ;;  %v2628_v52 = vsub.f32 1.0, %v2627_v42  ;;  %vm2661_vm3 = vweird.f32 %v6395_v54  ;;  %v2667_v57 = vand.u32 2147483648, %v6395_v54  ;;  %v6431_v61 = vadd.f32 1.0, %v4495_v25  ;;  %vm2618_vm0 = vmor %vm2616_vm12, %vm2617_vm2 }
 0x214   : > { %v4501_v56 = vpop.eup %4500  ;;  %v2614_v48 = vmul.f32 %v4491_v20, %v2613_v31  ;;  %vm2632_vm4 = vweird.f32 %v4493_v40  ;;  %vm6434_vm5 = vcmp.eq.f32.partialorder %v2650_v47, 8.507059e+37  ;;  %v2653_v43 = vor.u32 1.1754944e-38, %v2652_v51  ;;  %v813_v51 = vpop.f32.mrf.mxu1 }
 0x215   : > { %v4503_v33 = vpop.eup %4502  ;;  %v2629_v49 = vmul.f32 %v4493_v40, %v2628_v52  ;;  %v2642_v10 = vmul.f32 %v4501_v56, %v6393_v15  ;;  %vm6439_vm6 = vcmp.eq.f32.partialorder %v2665_v27, 8.507059e+37  ;;  %4506 = vrcp.f32 %v6431_v61  ;;  %vm2633_vm7 = vmor %vm2631_vm13, %vm2632_vm4 }
 0x216   : > { %v2615_v55 = vadd.f32 %v4491_v20, %v2614_v48  ;;  %v2657_v41 = vmul.f32 %v4503_v33, %v6395_v54  ;;  %v6446_v39 = vadd.f32 1.0, %v4497_v7  ;;  %vm2647_vm8 = vweird.f32 %v4501_v56 }
 0x217   : > { %v2630_v24 = vadd.f32 %v4493_v40, %v2629_v49  ;;  %v2643_v58 = vsub.f32 1.0, %v2642_v10  ;;  %v6448_v44 = vpop.eup %4504  ;;  %v6452_v62 = vadd.f32 1.0, %v4499_v35  ;;  %vm2662_vm9 = vweird.f32 %v4503_v33  ;;  %vm2648_vm10 = vmor %vm2646_vm1, %vm2647_vm8 }
 0x218   : > { %v2619_v50 = vsel %vm2618_vm0, %v4491_v20, %v2615_v55  ;;  %v2658_v45 = vsub.f32 1.0, %v2657_v41  ;;  %v2672_v37 = vmul.f32 %v6448_v44, %v6400_v11  ;;  %v2668_v63 = vor.u32 1.1754944e-38, %v2667_v57  ;;  %vm2663_vm12 = vmor %vm2661_vm3, %vm2662_vm9 }
 0x219   : > { %v2624_v17 = vsel %vm6415_vm14, %v2623_v23, %v2619_v50  ;;  %v2634_v38 = vsel %vm2633_vm7, %v4493_v40, %v2630_v24  ;;  %v2644_v1 = vmul.f32 %v4501_v56, %v2643_v58  ;;  %v2680_v5 = vand.u32 2147483647, %v6400_v11 }
 0x21a   : > { %v2639_v2 = vsel %vm6424_vm15, %v2638_v53, %v2634_v38  ;;  %v2659_v60 = vmul.f32 %v4503_v33, %v2658_v45  ;;  %v2673_v8 = vsub.f32 1.0, %v2672_v37  ;;  %vm2676_vm11 = vweird.f32 %v6400_v11 }
 0x21b   : > { %v3487_v46 = vpack.c.bf16 %v2639_v2, %v2624_v17  ;;  %v2645_v59 = vadd.f32 %v4501_v56, %v2644_v1  ;;  %v2682_v0 = vand.u32 2147483648, %v6400_v11  ;;  %4508 = vrcp.f32 %v6446_v39  ;;  %v4507_v13 = vpop.eup %4506 }
 0x21c   : > { %v2660_v9 = vadd.f32 %v4503_v33, %v2659_v60  ;;  %v2674_v22 = vmul.f32 %v6448_v44, %v2673_v8  ;;  %v2695_v16 = vand.u32 2147483647, %v6431_v61  ;;  %4510 = vrcp.f32 %v6452_v62 }
 0x21d   : > { %3551 = vst [vmem:[%s5101_s20 + $0x120] sm:$0xff] %v3487_v46  ;;  %v2649_v21 = vsel %vm2648_vm10, %v4501_v56, %v2645_v59  ;;  %vm2677_vm13 = vweird.f32 %v6448_v44  ;;  %v2687_v14 = vmul.f32 %v4507_v13, %v6431_v61  ;;  %vm6480_vm14 = vcmp.eq.f32.partialorder %v2680_v5, 8.507059e+37 }
 0x21e   : > { %v2654_v15 = vsel %vm6434_vm5, %v2653_v43, %v2649_v21  ;;  %v2664_v6 = vsel %vm2663_vm12, %v4503_v33, %v2660_v9  ;;  %v2675_v54 = vadd.f32 %v6448_v44, %v2674_v22  ;;  %v2697_v29 = vand.u32 2147483648, %v6431_v61  ;;  %vm6488_vm15 = vmor %vm2676_vm11, %vm2677_vm13  ;;  %v816_v9 = vpop.f32.mrf.mxu1 }
 0x21f   : > { %v2669_v19 = vsel %vm6439_vm6, %v2668_v63, %v2664_v6  ;;  %v2683_v34 = vor.u32 1.1754944e-38, %v2682_v0  ;;  %v2688_v25 = vsub.f32 1.0, %v2687_v14  ;;  %v2712_v28 = vand.u32 2147483648, %v6446_v39 }
 0x220   : > { %v3488_v40 = vpack.c.bf16 %v2669_v19, %v2654_v15  ;;  %vm2691_vm1 = vweird.f32 %v6431_v61  ;;  %vm2692_vm2 = vweird.f32 %v4507_v13  ;;  %vm6493_vm3 = vcmp.eq.f32.partialorder %v2695_v16, 8.507059e+37  ;;  %v991_v61 = vpop.f32.mrf.mxu3 }
 0x221   : > { %4512 = vpow2.f32 %v6391_v3  ;;  %v4509_v47 = vpop.eup %4508  ;;  %v2679_v7 = vsel %vm6488_vm15, %v6448_v44, %v2675_v54  ;;  %v2689_v11 = vmul.f32 %v4507_v13, %v2688_v25  ;;  %v4035_v31 = vmul.f32 -1.442695, %v724_v32  ;;  %v902_v3 = vpop.f32.mrf.mxu2  ;;  %vm2693_vm5 = vmor %vm2691_vm1, %vm2692_vm2 }
 0x222   : > { %3552 = vst [vmem:[%s5101_s20 + $0x128] sm:$0xff] %v3488_v40  ;;  %4514 = vpow2.f32 %v6402_v12  ;;  %v4511_v27 = vpop.eup %4510  ;;  %v2698_v35 = vor.u32 1.1754944e-38, %v2697_v29  ;;  %v2702_v52 = vmul.f32 %v4509_v47, %v6446_v39  ;;  %vm2706_vm4 = vweird.f32 %v6446_v39 }
 0x223   : > { %v2710_v36 = vand.u32 2147483647, %v6446_v39  ;;  %v2690_v53 = vadd.f32 %v4507_v13, %v2689_v11  ;;  %v2713_v56 = vor.u32 1.1754944e-38, %v2712_v28  ;;  %v2717_v48 = vmul.f32 %v4511_v27, %v6452_v62  ;;  %v727_v39 = vpop.f32.mrf.mxu0 }
 0x224   : > { %4516 = vpow2.f32 %v6407_v26  ;;  %v2684_v12 = vsel %vm6480_vm14, %v2683_v34, %v2679_v7  ;;  %v2703_v57 = vsub.f32 1.0, %v2702_v52  ;;  %v4036_v33 = vmul.f32 -1.442695, %v813_v51 }
 0x225   : > { %4518 = vpow2.f32 %v6413_v18  ;;  %v2694_v49 = vsel %vm2693_vm5, %v4507_v13, %v2690_v53  ;;  %v2718_v10 = vsub.f32 1.0, %v2717_v48  ;;  %v2725_v30 = vand.u32 2147483647, %v6452_v62 }
 0x226   : > { %4520 = vpow2.f32 %v4035_v31  ;;  %v2699_v26 = vsel %vm6493_vm3, %v2698_v35, %v2694_v49  ;;  %v2704_v43 = vmul.f32 %v4509_v47, %v2703_v57  ;;  %vm2707_vm6 = vweird.f32 %v4509_v47 }
 0x227   : > { %v4513_v55 = vpop.eup %4512  ;;  %v2727_v41 = vand.u32 2147483648, %v6452_v62  ;;  %v3489_v24 = vpack.c.bf16 %v2699_v26, %v2684_v12  ;;  %v2719_v58 = vmul.f32 %v4511_v27, %v2718_v10  ;;  %vm2722_vm0 = vweird.f32 %v4511_v27  ;;  %vm2708_vm7 = vmor %vm2706_vm4, %vm2707_vm6 }
 0x228   : > { %v4515_v4 = vpop.eup %4514  ;;  %v6518_v18 = vadd.f32 1.0, %v4513_v55  ;;  %v2705_v44 = vadd.f32 %v4509_v47, %v2704_v43  ;;  %4522 = vpow2.f32 %v4036_v33  ;;  %v4037_v45 = vmul.f32 -1.442695, %v902_v3 }
 0x229   : > { %v6520_v50 = vadd.f32 1.0, %v4515_v4  ;;  %3553 = vst [vmem:[%s5101_s20 + $0x130] sm:$0xff] %v3489_v24  ;;  %v2720_v38 = vadd.f32 %v4511_v27, %v2719_v58  ;;  %vm2721_vm8 = vweird.f32 %v6452_v62  ;;  %v4038_v1 = vmul.f32 -1.442695, %v991_v61  ;;  %v905_v0 = vpop.f32.mrf.mxu2 }
 0x22a   : > { %v4517_v17 = vpop.eup %4516  ;;  %4524 = vrcp.f32 %v6518_v18  ;;  %v2709_v2 = vsel %vm2708_vm7, %v4509_v47, %v2705_v44  ;;  %vm2711_vm9 = vcmp.eq.f32.partialorder %v2710_v36, 8.507059e+37  ;;  %vm2723_vm10 = vmor %vm2721_vm8, %vm2722_vm0  ;;  %v2728_v60 = vor.u32 1.1754944e-38, %v2727_v41 }
 0x22b   : > { %v4519_v37 = vpop.eup %4518  ;;  %4526 = vrcp.f32 %v6520_v50  ;;  %v2714_v46 = vsel %vm2711_vm9, %v2713_v56, %v2709_v2  ;;  %v2724_v59 = vsel %vm2723_vm10, %v4511_v27, %v2720_v38  ;;  %vm2726_vm11 = vcmp.eq.f32.partialorder %v2725_v30, 8.507059e+37 }
 0x22c   : > { %v4521_v63 = vpop.eup %4520  ;;  %v2729_v8 = vsel %vm2726_vm11, %v2728_v60, %v2724_v59  ;;  %v2740_v62 = vand.u32 2147483647, %v6518_v18  ;;  %v6530_v5 = vadd.f32 1.0, %v4517_v17  ;;  %4528 = vpow2.f32 %v4037_v45 }
 0x22d   : > { %v3490_v13 = vpack.c.bf16 %v2729_v8, %v2714_v46  ;;  %v2742_v21 = vand.u32 2147483648, %v6518_v18  ;;  %v6533_v22 = vadd.f32 1.0, %v4519_v37  ;;  %4530 = vpow2.f32 %v4038_v1 }
 0x22e   : > { %v4523_v16 = vpop.eup %4522  ;;  %v2755_v15 = vand.u32 2147483647, %v6520_v50  ;;  %4532 = vrcp.f32 %v6530_v5  ;;  %v6537_v6 = vadd.f32 1.0, %v4521_v63  ;;  %v4039_v14 = vmul.f32 -1.442695, %v727_v39 }
 0x22f   : > { %3554 = vst [vmem:[%s5101_s20 + $0x138] sm:$0xff] %v3490_v13  ;;  %v2757_v54 = vand.u32 2147483648, %v6520_v50  ;;  %4534 = vrcp.f32 %v6533_v22  ;;  %v6542_v20 = vmul.f32 -1.442695, %v816_v9  ;;  %v6544_v29 = vmul.f32 -1.442695, %v905_v0 }
 0x230   : > { %v4525_v19 = vpop.eup %4524  ;;  %vm2736_vm12 = vweird.f32 %v6518_v18  ;;  %vm6548_vm13 = vcmp.eq.f32.partialorder %v2740_v62, 8.507059e+37  ;;  %vm2751_vm14 = vweird.f32 %v6520_v50  ;;  %v2743_v25 = vor.u32 1.1754944e-38, %v2742_v21 }
 0x231   : > { %v4527_v32 = vpop.eup %4526  ;;  %v2732_v40 = vmul.f32 %v4525_v19, %v6518_v18  ;;  %v2770_v23 = vand.u32 2147483647, %v6530_v5  ;;  %v2772_v42 = vand.u32 2147483648, %v6530_v5  ;;  %vm6556_vm15 = vcmp.eq.f32.partialorder %v2755_v15, 8.507059e+37 }
 0x232   : > { %v2747_v28 = vmul.f32 %v4527_v32, %v6520_v50  ;;  %v4529_v47 = vpop.eup %4528  ;;  %v2785_v31 = vand.u32 2147483647, %v6533_v22  ;;  %4536 = vrcp.f32 %v6537_v6  ;;  %v2758_v35 = vor.u32 1.1754944e-38, %v2757_v54 }
 0x233   : > { %v2733_v7 = vsub.f32 1.0, %v2732_v40  ;;  %v4531_v51 = vpop.eup %4530  ;;  %vm2766_vm1 = vweird.f32 %v6530_v5  ;;  %v6563_v52 = vadd.f32 1.0, %v4523_v16  ;;  %vm2737_vm2 = vweird.f32 %v4525_v19 }
 0x234   : > { %v2748_v27 = vsub.f32 1.0, %v2747_v28  ;;  %v4533_v36 = vpop.eup %4532  ;;  %vm2781_vm3 = vweird.f32 %v6533_v22  ;;  %v2787_v53 = vand.u32 2147483648, %v6533_v22  ;;  %vm2752_vm4 = vweird.f32 %v4527_v32  ;;  %vm2738_vm0 = vmor %vm2736_vm12, %vm2737_vm2 }
 0x235   : > { %v2734_v3 = vmul.f32 %v4525_v19, %v2733_v7  ;;  %v4535_v56 = vpop.eup %4534  ;;  %v2762_v12 = vmul.f32 %v4533_v36, %v6530_v5  ;;  %vm6568_vm5 = vcmp.eq.f32.partialorder %v2770_v23, 8.507059e+37  ;;  %v2773_v33 = vor.u32 1.1754944e-38, %v2772_v42  ;;  %vm2753_vm7 = vmor %vm2751_vm14, %vm2752_vm4 }
 0x236   : > { %v2749_v48 = vmul.f32 %v4527_v32, %v2748_v27  ;;  %v2777_v10 = vmul.f32 %v4535_v56, %v6533_v22  ;;  %vm6573_vm6 = vcmp.eq.f32.partialorder %v2785_v31, 8.507059e+37  ;;  %v2800_v55 = vand.u32 2147483647, %v6537_v6 }
 0x237   : > { %v2735_v49 = vadd.f32 %v4525_v19, %v2734_v3  ;;  %v6578_v26 = vadd.f32 1.0, %v4529_v47  ;;  %v2763_v41 = vsub.f32 1.0, %v2762_v12  ;;  %4538 = vrcp.f32 %v6563_v52  ;;  %v994_v47 = vpop.f32.mrf.mxu3 }
 0x238   : > { %v2750_v43 = vadd.f32 %v4527_v32, %v2749_v48  ;;  %v6583_v61 = vadd.f32 1.0, %v4531_v51  ;;  %v6585_v4 = vpop.eup %4536  ;;  %vm2767_vm8 = vweird.f32 %v4533_v36  ;;  %v2778_v58 = vsub.f32 1.0, %v2777_v10 }
 0x239   : > { %v2739_v24 = vsel %vm2738_vm0, %v4525_v19, %v2735_v49  ;;  %4540 = vpow2.f32 %v4039_v14  ;;  %v2764_v45 = vmul.f32 %v4533_v36, %v2763_v41  ;;  %v2792_v17 = vmul.f32 %v6585_v4, %v6537_v6  ;;  %vm2768_vm10 = vmor %vm2766_vm1, %vm2767_vm8 }
 0x23a   : > { %v2744_v18 = vsel %vm6548_vm13, %v2743_v25, %v2739_v24  ;;  %v2754_v44 = vsel %vm2753_vm7, %v4527_v32, %v2750_v43  ;;  %v2779_v1 = vmul.f32 %v4535_v56, %v2778_v58  ;;  %vm2782_vm9 = vweird.f32 %v4535_v56 }
 0x23b   : > { %v2759_v38 = vsel %vm6556_vm15, %v2758_v35, %v2754_v44  ;;  %v2788_v37 = vor.u32 1.1754944e-38, %v2787_v53  ;;  %v2765_v2 = vadd.f32 %v4533_v36, %v2764_v45  ;;  %v2793_v60 = vsub.f32 1.0, %v2792_v17  ;;  %vm2783_vm13 = vmor %vm2781_vm3, %vm2782_vm9 }
 0x23c   : > { %v3491_v50 = vpack.c.bf16 %v2759_v38, %v2744_v18  ;;  %v2802_v63 = vand.u32 2147483648, %v6537_v6  ;;  %v2780_v46 = vadd.f32 %v4535_v56, %v2779_v1  ;;  %vm2796_vm11 = vweird.f32 %v6537_v6 }
 0x23d   : > { %vm6601_vm12 = vcmp.eq.f32.partialorder %v2800_v55, 8.507059e+37  ;;  %4542 = vrcp.f32 %v6578_v26  ;;  %v4539_v39 = vpop.eup %4538  ;;  %v2769_v8 = vsel %vm2768_vm10, %v4533_v36, %v2765_v2  ;;  %v2794_v62 = vmul.f32 %v6585_v4, %v2793_v60 }
 0x23e   : > { %3555 = vst [vmem:[%s5101_s20 + $0x140] sm:$0xff] %v3491_v50  ;;  %v2815_v5 = vand.u32 2147483647, %v6563_v52  ;;  %4544 = vrcp.f32 %v6583_v61  ;;  %v2774_v0 = vsel %vm6568_vm5, %v2773_v33, %v2769_v8  ;;  %v2784_v13 = vsel %vm2783_vm13, %v4535_v56, %v2780_v46  ;;  %v907_v8 = vpop.f32.mrf.mxu2 }
 0x23f   : > { %v4541_v9 = vpop.eup %4540  ;;  %vm2797_vm14 = vweird.f32 %v6585_v4  ;;  %v2807_v21 = vmul.f32 %v4539_v39, %v6563_v52  ;;  %v2789_v22 = vsel %vm6573_vm6, %v2788_v37, %v2784_v13  ;;  %v2795_v16 = vadd.f32 %v6585_v4, %v2794_v62 }
 0x240   : > { %v2803_v15 = vor.u32 1.1754944e-38, %v2802_v63  ;;  %v2817_v14 = vand.u32 2147483648, %v6563_v52  ;;  %v3492_v19 = vpack.c.bf16 %v2789_v22, %v2774_v0  ;;  %v2830_v32 = vand.u32 2147483647, %v6578_v26  ;;  %vm6624_vm15 = vmor %vm2796_vm11, %vm2797_vm14  ;;  %v996_v0 = vpop.f32.mrf.mxu3 }
 0x241   : > { %v2808_v54 = vsub.f32 1.0, %v2807_v21  ;;  %v2832_v40 = vand.u32 2147483648, %v6578_v26  ;;  %vm2811_vm1 = vweird.f32 %v6563_v52  ;;  %vm6629_vm2 = vcmp.eq.f32.partialorder %v2815_v5, 8.507059e+37 }
 0x242   : > { %v6633_v28 = vadd.f32 1.0, %v4541_v9  ;;  %4546 = vpow2.f32 %v6542_v20  ;;  %3556 = vst [vmem:[%s5101_s20 + $0x148] sm:$0xff] %v3492_v19  ;;  %v2799_v6 = vsel %vm6624_vm15, %v6585_v4, %v2795_v16  ;;  %vm2812_vm3 = vweird.f32 %v4539_v39  ;;  %v729_v20 = vpop.f32.mrf.mxu0  ;;  %v818_v4 = vpop.f32.mrf.mxu1 }
 0x243   : > { %v4543_v23 = vpop.eup %4542  ;;  %v2809_v42 = vmul.f32 %v4539_v39, %v2808_v54  ;;  %4548 = vpow2.f32 %v6544_v29  ;;  %v2818_v11 = vor.u32 1.1754944e-38, %v2817_v14  ;;  %vm2826_vm4 = vweird.f32 %v6578_v26  ;;  %vm2813_vm6 = vmor %vm2811_vm1, %vm2812_vm3 }
 0x244   : > { %v4545_v7 = vpop.eup %4544  ;;  %v2822_v31 = vmul.f32 %v4543_v23, %v6578_v26  ;;  %4550 = vrcp.f32 %v6633_v28  ;;  %vm6644_vm5 = vcmp.eq.f32.partialorder %v2830_v32, 8.507059e+37  ;;  %v2833_v35 = vor.u32 1.1754944e-38, %v2832_v40 }
 0x245   : > { %v2810_v51 = vadd.f32 %v4539_v39, %v2809_v42  ;;  %v2837_v36 = vmul.f32 %v4545_v7, %v6583_v61  ;;  %v2804_v29 = vsel %vm6601_vm12, %v2803_v15, %v2799_v6  ;;  %v2845_v53 = vand.u32 2147483647, %v6583_v61 }
 0x246   : > { %v2823_v3 = vsub.f32 1.0, %v2822_v31  ;;  %v4042_v56 = vmul.f32 -1.442695, %v994_v47  ;;  %v2847_v57 = vand.u32 2147483648, %v6583_v61  ;;  %v4043_v33 = vmul.f32 -1.442695, %v729_v20 }
 0x247   : > { %v2814_v48 = vsel %vm2813_vm6, %v4539_v39, %v2810_v51  ;;  %v2838_v12 = vsub.f32 1.0, %v2837_v36  ;;  %vm2827_vm0 = vweird.f32 %v4543_v23  ;;  %vm2842_vm7 = vweird.f32 %v4545_v7 }
 0x248   : > { %v4547_v49 = vpop.eup %4546  ;;  %v2819_v10 = vsel %vm6629_vm2, %v2818_v11, %v2814_v48  ;;  %v2824_v30 = vmul.f32 %v4543_v23, %v2823_v3  ;;  %4552 = vpow2.f32 %v4042_v56  ;;  %vm2841_vm8 = vweird.f32 %v6583_v61  ;;  %vm2828_vm9 = vmor %vm2826_vm4, %vm2827_vm0 }
 0x249   : > { %v4549_v55 = vpop.eup %4548  ;;  %v3493_v52 = vpack.c.bf16 %v2819_v10, %v2804_v29  ;;  %v2839_v43 = vmul.f32 %v4545_v7, %v2838_v12  ;;  %v6657_v41 = vadd.f32 1.0, %v4547_v49  ;;  %4554 = vpow2.f32 %v4043_v33  ;;  %vm2843_vm10 = vmor %vm2841_vm8, %vm2842_vm7 }
 0x24a   : > { %v6659_v24 = vpop.eup %4550  ;;  %v2825_v58 = vadd.f32 %v4543_v23, %v2824_v30  ;;  %v6662_v18 = vadd.f32 1.0, %v4549_v55  ;;  %v2860_v17 = vand.u32 2147483647, %v6633_v28  ;;  %vm2846_vm11 = vcmp.eq.f32.partialorder %v2845_v53, 8.507059e+37  ;;  %v732_v14 = vpop.f32.mrf.mxu0 }
 0x24b   : > { %3557 = vst [vmem:[%s5101_s20 + $0x150] sm:$0xff] %v3493_v52  ;;  %v2840_v44 = vadd.f32 %v4545_v7, %v2839_v43  ;;  %v2852_v45 = vmul.f32 %v6659_v24, %v6633_v28  ;;  %4556 = vrcp.f32 %v6657_v41  ;;  %v2848_v61 = vor.u32 1.1754944e-38, %v2847_v57 }
 0x24c   : > { %v2829_v38 = vsel %vm2828_vm9, %v4543_v23, %v2825_v58  ;;  %v4044_v1 = vmul.f32 -1.442695, %v818_v4  ;;  %4558 = vrcp.f32 %v6662_v18  ;;  %v2862_v60 = vand.u32 2147483648, %v6633_v28 }
 0x24d   : > { %v2834_v37 = vsel %vm6644_vm5, %v2833_v35, %v2829_v38  ;;  %v2844_v50 = vsel %vm2843_vm10, %v4545_v7, %v2840_v44  ;;  %v2853_v26 = vsub.f32 1.0, %v2852_v45  ;;  %vm2856_vm12 = vweird.f32 %v6633_v28  ;;  %v821_v35 = vpop.f32.mrf.mxu1 }
 0x24e   : > { %v2849_v2 = vsel %vm2846_vm11, %v2848_v61, %v2844_v50  ;;  %v4553_v63 = vpop.eup %4552  ;;  %vm6678_vm13 = vcmp.eq.f32.partialorder %v2860_v17, 8.507059e+37  ;;  %vm2857_vm14 = vweird.f32 %v6659_v24  ;;  %v2875_v5 = vand.u32 2147483647, %v6657_v41 }
 0x24f   : > { %v3494_v46 = vpack.c.bf16 %v2849_v2, %v2834_v37  ;;  %v2854_v59 = vmul.f32 %v6659_v24, %v2853_v26  ;;  %v4555_v62 = vpop.eup %4554  ;;  %v6684_v9 = vadd.f32 1.0, %v4553_v63  ;;  %4560 = vpow2.f32 %v4044_v1  ;;  %vm6703_vm1 = vmor %vm2856_vm12, %vm2857_vm14 }
 0x250   : > { %v2877_v22 = vand.u32 2147483648, %v6657_v41  ;;  %v2892_v16 = vand.u32 2147483648, %v6662_v18  ;;  %v6690_v15 = vadd.f32 1.0, %v4555_v62  ;;  %v2863_v19 = vor.u32 1.1754944e-38, %v2862_v60 }
 0x251   : > { %v4557_v13 = vpop.eup %4556  ;;  %3558 = vst [vmem:[%s5101_s20 + $0x158] sm:$0xff] %v3494_v46  ;;  %v2855_v21 = vadd.f32 %v6659_v24, %v2854_v59  ;;  %4562 = vrcp.f32 %v6684_v9  ;;  %v4045_v32 = vmul.f32 -1.442695, %v907_v8  ;;  %vm2871_vm15 = vweird.f32 %v6657_v41 }
 0x252   : > { %v2867_v54 = vmul.f32 %v4557_v13, %v6657_v41  ;;  %v6694_v40 = vpop.eup %4558  ;;  %v2890_v34 = vand.u32 2147483647, %v6662_v18  ;;  %4564 = vrcp.f32 %v6690_v15  ;;  %v4046_v25 = vmul.f32 -1.442695, %v996_v0  ;;  %v910_v0 = vpop.f32.mrf.mxu2 }
 0x253   : > { %vm6707_vm2 = vcmp.eq.f32.partialorder %v2875_v5, 8.507059e+37  ;;  %v2882_v47 = vmul.f32 %v6694_v40, %v6662_v18  ;;  %v4047_v7 = vmul.f32 -1.442695, %v732_v14  ;;  %v2859_v11 = vsel %vm6703_vm1, %v6659_v24, %v2855_v21 }
 0x254   : > { %v2868_v6 = vsub.f32 1.0, %v2867_v54  ;;  %v2878_v31 = vor.u32 1.1754944e-38, %v2877_v22  ;;  %vm2886_vm3 = vweird.f32 %v6662_v18  ;;  %v2893_v28 = vor.u32 1.1754944e-38, %v2892_v16  ;;  %v999_v54 = vpop.f32.mrf.mxu3 }
 0x255   : > { %v4561_v20 = vpop.eup %4560  ;;  %vm2872_vm4 = vweird.f32 %v4557_v13  ;;  %v2883_v27 = vsub.f32 1.0, %v2882_v47  ;;  %4566 = vpow2.f32 %v4045_v32  ;;  %vm6717_vm5 = vcmp.eq.f32.partialorder %v2890_v34, 8.507059e+37  ;;  %v734_v32 = vpop.f32.mrf.mxu0 }
 0x256   : > { %v2869_v51 = vmul.f32 %v4557_v13, %v2868_v6  ;;  %v2905_v29 = vand.u32 2147483647, %v6684_v9  ;;  %v2907_v3 = vand.u32 2147483648, %v6684_v9  ;;  %v6723_v53 = vadd.f32 1.0, %v4561_v20  ;;  %vm2873_vm6 = vmor %vm2871_vm15, %vm2872_vm4 }
 0x257   : > { %4568 = vpow2.f32 %v4046_v25  ;;  %v4563_v56 = vpop.eup %4562  ;;  %v2864_v48 = vsel %vm6678_vm13, %v2863_v19, %v2859_v11  ;;  %v2884_v57 = vmul.f32 %v6694_v40, %v2883_v27  ;;  %vm2887_vm0 = vweird.f32 %v6694_v40 }
 0x258   : > { %v2870_v12 = vadd.f32 %v4557_v13, %v2869_v51  ;;  %4570 = vpow2.f32 %v4047_v7  ;;  %v6728_v33 = vpop.eup %4564  ;;  %v2897_v49 = vmul.f32 %v4563_v56, %v6684_v9  ;;  %v4048_v10 = vmul.f32 -1.442695, %v821_v35  ;;  %vm6749_vm9 = vmor %vm2886_vm3, %vm2887_vm0 }
 0x259   : > { %4572 = vrcp.f32 %v6723_v53  ;;  %v2885_v55 = vadd.f32 %v6694_v40, %v2884_v57  ;;  %vm2901_vm7 = vweird.f32 %v6684_v9  ;;  %v2912_v52 = vmul.f32 %v6728_v33, %v6690_v15 }
 0x25a   : > { %v2874_v30 = vsel %vm2873_vm6, %v4557_v13, %v2870_v12  ;;  %v2898_v41 = vsub.f32 1.0, %v2897_v49  ;;  %vm6742_vm8 = vcmp.eq.f32.partialorder %v2905_v29, 8.507059e+37  ;;  %v2920_v24 = vand.u32 2147483647, %v6690_v15 }
 0x25b   : > { %v2879_v43 = vsel %vm6707_vm2, %v2878_v31, %v2874_v30  ;;  %v4567_v58 = vpop.eup %4566  ;;  %v2908_v17 = vor.u32 1.1754944e-38, %v2907_v3  ;;  %v2913_v38 = vsub.f32 1.0, %v2912_v52  ;;  %v2922_v61 = vand.u32 2147483648, %v6690_v15  ;;  %v912_v52 = vpop.f32.mrf.mxu2 }
 0x25c   : > { %v3495_v44 = vpack.c.bf16 %v2879_v43, %v2864_v48  ;;  %v2889_v37 = vsel %vm6749_vm9, %v6694_v40, %v2885_v55  ;;  %v2899_v50 = vmul.f32 %v4563_v56, %v2898_v41  ;;  %vm2902_vm10 = vweird.f32 %v4563_v56 }
 0x25d   : > { %v4569_v1 = vpop.eup %4568  ;;  %4574 = vpow2.f32 %v4048_v10  ;;  %v2914_v18 = vmul.f32 %v6728_v33, %v2913_v38  ;;  %vm2916_vm11 = vweird.f32 %v6690_v15  ;;  %v6760_v2 = vadd.f32 1.0, %v4567_v58  ;;  %vm2903_vm14 = vmor %vm2901_vm7, %vm2902_vm10 }
 0x25e   : > { %v4571_v26 = vpop.eup %4570  ;;  %3559 = vst [vmem:[%s5101_s20 + $0x160] sm:$0xff] %v3495_v44  ;;  %v6762_v60 = vadd.f32 1.0, %v4569_v1  ;;  %v2900_v46 = vadd.f32 %v4563_v56, %v2899_v50  ;;  %vm2917_vm12 = vweird.f32 %v6728_v33  ;;  %vm6765_vm13 = vcmp.eq.f32.partialorder %v2920_v24, 8.507059e+37 }
 0x25f   : > { %v4573_v63 = vpop.eup %4572  ;;  %v2935_v39 = vand.u32 2147483647, %v6723_v53  ;;  %v2894_v8 = vsel %vm6717_vm5, %v2893_v28, %v2889_v37  ;;  %v2915_v62 = vadd.f32 %v6728_v33, %v2914_v18  ;;  %4576 = vrcp.f32 %v6760_v2  ;;  %vm6784_vm15 = vmor %vm2916_vm11, %vm2917_vm12 }
 0x260   : > { %v2927_v5 = vmul.f32 %v4573_v63, %v6723_v53  ;;  %v2904_v13 = vsel %vm2903_vm14, %v4563_v56, %v2900_v46  ;;  %v2923_v21 = vor.u32 1.1754944e-38, %v2922_v61  ;;  %v2937_v22 = vand.u32 2147483648, %v6723_v53 }
 0x261   : > { %v6778_v16 = vadd.f32 1.0, %v4571_v26  ;;  %v2909_v14 = vsel %vm6742_vm8, %v2908_v17, %v2904_v13  ;;  %vm2931_vm1 = vweird.f32 %v6723_v53  ;;  %4578 = vrcp.f32 %v6762_v60  ;;  %v823_v53 = vpop.f32.mrf.mxu1  ;;  %v1001_v26 = vpop.f32.mrf.mxu3 }
 0x262   : > { %v2928_v19 = vsub.f32 1.0, %v2927_v5  ;;  %v3496_v34 = vpack.c.bf16 %v2909_v14, %v2894_v8  ;;  %v2919_v25 = vsel %vm6784_vm15, %v6728_v33, %v2915_v62  ;;  %v2950_v15 = vand.u32 2147483647, %v6760_v2 }
 0x263   : > { %v4575_v40 = vpop.eup %4574  ;;  %v2952_v23 = vand.u32 2147483648, %v6760_v2  ;;  %vm2932_vm2 = vweird.f32 %v4573_v63  ;;  %vm6795_vm3 = vcmp.eq.f32.partialorder %v2935_v39, 8.507059e+37  ;;  %v4049_v47 = vmul.f32 -1.442695, %v910_v0  ;;  %v737_v39 = vpop.f32.mrf.mxu0 }
 0x264   : > { %v2929_v6 = vmul.f32 %v4573_v63, %v2928_v19  ;;  %3560 = vst [vmem:[%s5101_s20 + $0x168] sm:$0xff] %v3496_v34  ;;  %v2938_v7 = vor.u32 1.1754944e-38, %v2937_v22  ;;  %4580 = vrcp.f32 %v6778_v16  ;;  %v4050_v11 = vmul.f32 -1.442695, %v999_v54  ;;  %vm2933_vm5 = vmor %vm2931_vm1, %vm2932_vm2 }
 0x265   : > { %v4051_v31 = vmul.f32 -1.442695, %v734_v32  ;;  %v4577_v28 = vpop.eup %4576  ;;  %v2924_v20 = vsel %vm6765_vm13, %v2923_v21, %v2919_v25  ;;  %vm2946_vm4 = vweird.f32 %v6760_v2  ;;  %v6804_v27 = vadd.f32 1.0, %v4575_v40 }
 0x266   : > { %v2930_v51 = vadd.f32 %v4573_v63, %v2929_v6  ;;  %v2942_v35 = vmul.f32 %v4577_v28, %v6760_v2  ;;  %vm6809_vm6 = vcmp.eq.f32.partialorder %v2950_v15, 8.507059e+37  ;;  %v2953_v29 = vor.u32 1.1754944e-38, %v2952_v23 }
 0x267   : > { %vm2961_vm0 = vweird.f32 %v6762_v60  ;;  %v2965_v3 = vand.u32 2147483647, %v6762_v60  ;;  %v4579_v56 = vpop.eup %4578  ;;  %v2967_v12 = vand.u32 2147483648, %v6762_v60  ;;  %vm2976_vm7 = vweird.f32 %v6778_v16 }
 0x268   : > { %v2934_v48 = vsel %vm2933_vm5, %v4573_v63, %v2930_v51  ;;  %4582 = vrcp.f32 %v6804_v27  ;;  %v2943_v33 = vsub.f32 1.0, %v2942_v35  ;;  %v2957_v49 = vmul.f32 %v4579_v56, %v6762_v60 }
 0x269   : > { %v2939_v57 = vsel %vm6795_vm3, %v2938_v7, %v2934_v48  ;;  %v2980_v10 = vand.u32 2147483647, %v6778_v16  ;;  %vm2947_vm8 = vweird.f32 %v4577_v28  ;;  %v2982_v55 = vand.u32 2147483648, %v6778_v16 }
 0x26a   : > { %v3497_v30 = vpack.c.bf16 %v2939_v57, %v2924_v20  ;;  %4584 = vpow2.f32 %v4049_v47  ;;  %v4581_v43 = vpop.eup %4580  ;;  %v2944_v41 = vmul.f32 %v4577_v28, %v2943_v33  ;;  %v2958_v4 = vsub.f32 1.0, %v2957_v49  ;;  %vm2948_vm11 = vmor %vm2946_vm4, %vm2947_vm8  ;;  %v826_v20 = vpop.f32.mrf.mxu1 }
 0x26b   : > { %4586 = vpow2.f32 %v4050_v11  ;;  %v4052_v24 = vmul.f32 -1.442695, %v823_v53  ;;  %vm2962_vm9 = vweird.f32 %v4579_v56  ;;  %vm6824_vm10 = vcmp.eq.f32.partialorder %v2965_v3, 8.507059e+37 }
 0x26c   : > { %3561 = vst [vmem:[%s5101_s20 + $0x170] sm:$0xff] %v3497_v30  ;;  %v2968_v44 = vor.u32 1.1754944e-38, %v2967_v12  ;;  %v2972_v45 = vmul.f32 %v4581_v43, %v6778_v16  ;;  %v2945_v17 = vadd.f32 %v4577_v28, %v2944_v41  ;;  %v2959_v38 = vmul.f32 %v4579_v56, %v2958_v4  ;;  %vm2963_vm13 = vmor %vm2961_vm0, %vm2962_vm9 }
 0x26d   : > { %4588 = vpow2.f32 %v4051_v31  ;;  %v4053_v61 = vmul.f32 -1.442695, %v912_v52  ;;  %vm2991_vm12 = vweird.f32 %v6804_v27  ;;  %v2995_v50 = vand.u32 2147483647, %v6804_v27 }
 0x26e   : > { %v4583_v1 = vpop.eup %4582  ;;  %v2973_v37 = vsub.f32 1.0, %v2972_v45  ;;  %4590 = vpow2.f32 %v4052_v24  ;;  %v2949_v18 = vsel %vm2948_vm11, %v4577_v28, %v2945_v17  ;;  %v2960_v63 = vadd.f32 %v4579_v56, %v2959_v38  ;;  %v915_v45 = vpop.f32.mrf.mxu2 }
 0x26f   : > { %v2987_v46 = vmul.f32 %v4583_v1, %v6804_v27  ;;  %v2997_v59 = vand.u32 2147483648, %v6804_v27  ;;  %v2954_v62 = vsel %vm6809_vm6, %v2953_v29, %v2949_v18  ;;  %vm2977_vm14 = vweird.f32 %v4581_v43 }
 0x270   : > { %v4585_v8 = vpop.eup %4584  ;;  %v2974_v2 = vmul.f32 %v4581_v43, %v2973_v37  ;;  %4592 = vpow2.f32 %v4053_v61  ;;  %v2964_v0 = vsel %vm2963_vm13, %v4579_v56, %v2960_v63  ;;  %v4054_v22 = vmul.f32 -1.442695, %v1001_v26  ;;  %vm2978_vm15 = vmor %vm2976_vm7, %vm2977_vm14  ;;  %v1004_v37 = vpop.f32.mrf.mxu3 }
 0x271   : > { %v4587_v5 = vpop.eup %4586  ;;  %v2988_v13 = vsub.f32 1.0, %v2987_v46  ;;  %v6841_v21 = vadd.f32 1.0, %v4585_v8  ;;  %v2969_v14 = vsel %vm6824_vm10, %v2968_v44, %v2964_v0  ;;  %v4055_v54 = vmul.f32 -1.442695, %v737_v39 }
 0x272   : > { %v2975_v9 = vadd.f32 %v4581_v43, %v2974_v2  ;;  %v6845_v19 = vadd.f32 1.0, %v4587_v5  ;;  %v3498_v60 = vpack.c.bf16 %v2969_v14, %v2954_v62  ;;  %vm2992_vm1 = vweird.f32 %v4583_v1 }
 0x273   : > { %v4589_v32 = vpop.eup %4588  ;;  %v2989_v40 = vmul.f32 %v4583_v1, %v2988_v13  ;;  %4594 = vrcp.f32 %v6841_v21  ;;  %v2983_v15 = vor.u32 1.1754944e-38, %v2982_v55  ;;  %vm2981_vm2 = vcmp.eq.f32.partialorder %v2980_v10, 8.507059e+37  ;;  %vm2993_vm4 = vmor %vm2991_vm12, %vm2992_vm1  ;;  %v828_v13 = vpop.f32.mrf.mxu1 }
 0x274   : > { %v4591_v34 = vpop.eup %4590  ;;  %v2979_v25 = vsel %vm2978_vm15, %v4581_v43, %v2975_v9  ;;  %4596 = vrcp.f32 %v6845_v19  ;;  %3562 = vst [vmem:[%s5101_s20 + $0x178] sm:$0xff] %v3498_v60  ;;  %vm2996_vm3 = vcmp.eq.f32.partialorder %v2995_v50, 8.507059e+37  ;;  %v2998_v16 = vor.u32 1.1754944e-38, %v2997_v59  ;;  %v739_v50 = vpop.f32.mrf.mxu0 }
 0x275   : > { %v2990_v23 = vadd.f32 %v4583_v1, %v2989_v40  ;;  %4598 = vpow2.f32 %v4054_v22  ;;  %v2984_v42 = vsel %vm2981_vm2, %v2983_v15, %v2979_v25  ;;  %v6854_v47 = vadd.f32 1.0, %v4589_v32 }
 0x276   : > { %v4593_v6 = vpop.eup %4592  ;;  %4600 = vpow2.f32 %v4055_v54  ;;  %v3010_v11 = vand.u32 2147483647, %v6841_v21  ;;  %v3012_v31 = vand.u32 2147483648, %v6841_v21  ;;  %v6858_v28 = vadd.f32 1.0, %v4591_v34 }
 0x277   : > { %v2994_v7 = vsel %vm2993_vm4, %v4583_v1, %v2990_v23  ;;  %4602 = vrcp.f32 %v6854_v47  ;;  %v6861_v35 = vadd.f32 1.0, %v4593_v6  ;;  %v3025_v29 = vand.u32 2147483647, %v6845_v19 }
 0x278   : > { %v2999_v51 = vsel %vm2996_vm3, %v2998_v16, %v2994_v7  ;;  %v3027_v3 = vand.u32 2147483648, %v6845_v19  ;;  %4604 = vrcp.f32 %v6858_v28  ;;  %vm3006_vm5 = vweird.f32 %v6841_v21 }
 0x279   : > { %v4595_v27 = vpop.eup %4594  ;;  %v3499_v36 = vpack.c.bf16 %v2999_v51, %v2984_v42  ;;  %v6868_v12 = vmul.f32 -1.442695, %v826_v20  ;;  %vm6871_vm6 = vcmp.eq.f32.partialorder %v3010_v11, 8.507059e+37  ;;  %v3013_v33 = vor.u32 1.1754944e-38, %v3012_v31  ;;  %v917_v20 = vpop.f32.mrf.mxu2 }
 0x27a   : > { %v4597_v56 = vpop.eup %4596  ;;  %v3002_v48 = vmul.f32 %v4595_v27, %v6841_v21  ;;  %vm3021_vm0 = vweird.f32 %v6845_v19  ;;  %v3040_v55 = vand.u32 2147483647, %v6854_v47  ;;  %v3042_v52 = vand.u32 2147483648, %v6854_v47 }
 0x27b   : > { %v4599_v53 = vpop.eup %4598  ;;  %3563 = vst [vmem:[%s5101_s20 + $0x180] sm:$0xff] %v3499_v36  ;;  %v3017_v49 = vmul.f32 %v4597_v56, %v6845_v19  ;;  %4606 = vrcp.f32 %v6861_v35  ;;  %vm6880_vm7 = vcmp.eq.f32.partialorder %v3025_v29, 8.507059e+37  ;;  %v3028_v4 = vor.u32 1.1754944e-38, %v3027_v3  ;;  %v1006_v29 = vpop.f32.mrf.mxu3 }
 0x27c   : > { %v4601_v10 = vpop.eup %4600  ;;  %v3003_v30 = vsub.f32 1.0, %v3002_v48  ;;  %vm3036_vm8 = vweird.f32 %v6854_v47  ;;  %vm3007_vm9 = vweird.f32 %v4595_v27  ;;  %vm3051_vm10 = vweird.f32 %v6858_v28  ;;  %v742_v3 = vpop.f32.mrf.mxu0 }
 0x27d   : > { %v3018_v43 = vsub.f32 1.0, %v3017_v49  ;;  %v4603_v24 = vpop.eup %4602  ;;  %v6886_v44 = vadd.f32 1.0, %v4599_v53  ;;  %vm3022_vm11 = vweird.f32 %v4597_v56  ;;  %v3055_v1 = vand.u32 2147483647, %v6858_v28  ;;  %vm3008_vm13 = vmor %vm3006_vm5, %vm3007_vm9 }
 0x27e   : > { %v3004_v58 = vmul.f32 %v4595_v27, %v3003_v30  ;;  %v4605_v17 = vpop.eup %4604  ;;  %v3032_v61 = vmul.f32 %v4603_v24, %v6854_v47  ;;  %vm6890_vm12 = vcmp.eq.f32.partialorder %v3040_v55, 8.507059e+37  ;;  %v3043_v63 = vor.u32 1.1754944e-38, %v3042_v52  ;;  %vm3023_vm14 = vmor %vm3021_vm0, %vm3022_vm11 }
 0x27f   : > { %v3019_v38 = vmul.f32 %v4597_v56, %v3018_v43  ;;  %v3047_v46 = vmul.f32 %v4605_v17, %v6858_v28  ;;  %v3057_v8 = vand.u32 2147483648, %v6858_v28  ;;  %4608 = vrcp.f32 %v6886_v44 }
 0x280   : > { %v3005_v26 = vadd.f32 %v4595_v27, %v3004_v58  ;;  %v3033_v39 = vsub.f32 1.0, %v3032_v61  ;;  %vm3037_vm15 = vweird.f32 %v4603_v24  ;;  %v6905_v0 = vadd.f32 1.0, %v4601_v10 }
 0x281   : > { %v3020_v59 = vadd.f32 %v4597_v56, %v3019_v38  ;;  %v6900_v62 = vpop.eup %4606  ;;  %v3048_v5 = vsub.f32 1.0, %v3047_v46  ;;  %vm3052_vm1 = vweird.f32 %v4605_v17  ;;  %vm6913_vm2 = vcmp.eq.f32.partialorder %v3055_v1, 8.507059e+37  ;;  %vm3038_vm3 = vmor %vm3036_vm8, %vm3037_vm15 }
 0x282   : > { %v3009_v2 = vsel %vm3008_vm13, %v4595_v27, %v3005_v26  ;;  %v3034_v14 = vmul.f32 %v4603_v24, %v3033_v39  ;;  %v3062_v9 = vmul.f32 %v6900_v62, %v6861_v35  ;;  %v3070_v25 = vand.u32 2147483647, %v6861_v35  ;;  %vm3053_vm5 = vmor %vm3051_vm10, %vm3052_vm1  ;;  %v920_v39 = vpop.f32.mrf.mxu2 }
 0x283   : > { %v3014_v21 = vsel %vm6871_vm6, %v3013_v33, %v3009_v2  ;;  %v3024_v22 = vsel %vm3023_vm14, %v4597_v56, %v3020_v59  ;;  %v3049_v32 = vmul.f32 %v4605_v17, %v3048_v5  ;;  %vm3066_vm4 = vweird.f32 %v6861_v35 }
 0x284   : > { %v3029_v54 = vsel %vm6880_vm7, %v3028_v4, %v3024_v22  ;;  %v3035_v40 = vadd.f32 %v4603_v24, %v3034_v14  ;;  %v3063_v34 = vsub.f32 1.0, %v3062_v9  ;;  %v3072_v23 = vand.u32 2147483648, %v6861_v35  ;;  %v831_v35 = vpop.f32.mrf.mxu1  ;;  %v744_v22 = vpop.f32.mrf.mxu0 }
 0x285   : > { %v3500_v60 = vpack.c.bf16 %v3029_v54, %v3014_v21  ;;  %v3050_v15 = vadd.f32 %v4605_v17, %v3049_v32  ;;  %4610 = vrcp.f32 %v6905_v0  ;;  %v4609_v6 = vpop.eup %4608  ;;  %v3058_v16 = vor.u32 1.1754944e-38, %v3057_v8  ;;  %v1009_v21 = vpop.f32.mrf.mxu3 }
 0x286   : > { %v3039_v42 = vsel %vm3038_vm3, %v4603_v24, %v3035_v40  ;;  %v3064_v7 = vmul.f32 %v6900_v62, %v3063_v34  ;;  %4612 = vpow2.f32 %v6868_v12  ;;  %vm3067_vm6 = vweird.f32 %v6900_v62 }
 0x287   : > { %3564 = vst [vmem:[%s5101_s20 + $0x188] sm:$0xff] %v3500_v60  ;;  %v3044_v47 = vsel %vm6890_vm12, %v3043_v63, %v3039_v42  ;;  %v3054_v11 = vsel %vm3053_vm5, %v4605_v17, %v3050_v15  ;;  %v3077_v31 = vmul.f32 %v4609_v6, %v6886_v44  ;;  %vm6936_vm0 = vcmp.eq.f32.partialorder %v3070_v25, 8.507059e+37  ;;  %vm6943_vm7 = vmor %vm3066_vm4, %vm3067_vm6 }
 0x288   : > { %v3059_v51 = vsel %vm6913_vm2, %v3058_v16, %v3054_v11  ;;  %v3065_v28 = vadd.f32 %v6900_v62, %v3064_v7  ;;  %v3085_v36 = vand.u32 2147483647, %v6886_v44  ;;  %v4057_v12 = vmul.f32 -1.442695, %v915_v45 }
 0x289   : > { %v3501_v56 = vpack.c.bf16 %v3059_v51, %v3044_v47  ;;  %v3078_v48 = vsub.f32 1.0, %v3077_v31  ;;  %v4058_v53 = vmul.f32 -1.442695, %v1004_v37  ;;  %v3073_v33 = vor.u32 1.1754944e-38, %v3072_v23 }
 0x28a   : > { %v3087_v49 = vand.u32 2147483648, %v6886_v44  ;;  %v4059_v10 = vmul.f32 -1.442695, %v739_v50  ;;  %v4060_v30 = vmul.f32 -1.442695, %v828_v13  ;;  %v3069_v52 = vsel %vm6943_vm7, %v6900_v62, %v3065_v28 }
 0x28b   : > { %v6948_v55 = vpop.eup %4610  ;;  %3565 = vst [vmem:[%s5101_s20 + $0x190] sm:$0xff] %v3501_v56  ;;  %v3079_v43 = vmul.f32 %v4609_v6, %v3078_v48  ;;  %vm3082_vm8 = vweird.f32 %v4609_v6  ;;  %4614 = vpow2.f32 %v4057_v12  ;;  %vm3081_vm9 = vweird.f32 %v6886_v44 }
 0x28c   : > { %v4613_v41 = vpop.eup %4612  ;;  %v3092_v4 = vmul.f32 %v6948_v55, %v6905_v0  ;;  %4616 = vpow2.f32 %v4058_v53  ;;  %v4061_v24 = vmul.f32 -1.442695, %v917_v20  ;;  %vm3086_vm10 = vcmp.eq.f32.partialorder %v3085_v36, 8.507059e+37  ;;  %vm3083_vm11 = vmor %vm3081_vm9, %vm3082_vm8 }
 0x28d   : > { %v3080_v58 = vadd.f32 %v4609_v6, %v3079_v43  ;;  %v6957_v45 = vadd.f32 1.0, %v4613_v41  ;;  %4618 = vpow2.f32 %v4059_v10  ;;  %v3074_v17 = vsel %vm6936_vm0, %v3073_v33, %v3069_v52 }
 0x28e   : > { %v3088_v38 = vor.u32 1.1754944e-38, %v3087_v49  ;;  %v3093_v61 = vsub.f32 1.0, %v3092_v4  ;;  %4620 = vpow2.f32 %v4060_v30  ;;  %v3100_v44 = vand.u32 2147483647, %v6905_v0 }
 0x28f   : > { %v3084_v1 = vsel %vm3083_vm11, %v4609_v6, %v3080_v58  ;;  %4622 = vrcp.f32 %v6957_v45  ;;  %v4062_v37 = vmul.f32 -1.442695, %v1006_v29  ;;  %v3102_v18 = vand.u32 2147483648, %v6905_v0  ;;  %v833_v6 = vpop.f32.mrf.mxu1 }
 0x290   : > { %v3089_v50 = vsel %vm3086_vm10, %v3088_v38, %v3084_v1  ;;  %v3094_v26 = vmul.f32 %v6948_v55, %v3093_v61  ;;  %4624 = vpow2.f32 %v4061_v24  ;;  %vm3096_vm12 = vweird.f32 %v6905_v0 }
 0x291   : > { %v4615_v63 = vpop.eup %4614  ;;  %v3502_v46 = vpack.c.bf16 %v3089_v50, %v3074_v17  ;;  %vm3097_vm13 = vweird.f32 %v6948_v55  ;;  %v4063_v59 = vmul.f32 -1.442695, %v742_v3  ;;  %v3115_v2 = vand.u32 2147483647, %v6957_v45 }
 0x292   : > { %v4617_v8 = vpop.eup %4616  ;;  %v3095_v62 = vadd.f32 %v6948_v55, %v3094_v26  ;;  %v3117_v5 = vand.u32 2147483648, %v6957_v45  ;;  %v6970_v13 = vadd.f32 1.0, %v4615_v63  ;;  %vm6973_vm14 = vcmp.eq.f32.partialorder %v3100_v44, 8.507059e+37  ;;  %vm6986_vm15 = vmor %vm3096_vm12, %vm3097_vm13 }
 0x293   : > { %v4619_v14 = vpop.eup %4618  ;;  %3566 = vst [vmem:[%s5101_s20 + $0x198] sm:$0xff] %v3502_v46  ;;  %v6977_v54 = vadd.f32 1.0, %v4617_v8  ;;  %4626 = vpow2.f32 %v4062_v37  ;;  %v3103_v19 = vor.u32 1.1754944e-38, %v3102_v18  ;;  %v4064_v60 = vmul.f32 -1.442695, %v831_v35 }
 0x294   : > { %v4621_v32 = vpop.eup %4620  ;;  %4628 = vrcp.f32 %v6970_v13  ;;  %v6980_v40 = vmul.f32 -1.442695, %v920_v39  ;;  %vm3111_vm1 = vweird.f32 %v6957_v45  ;;  %v6992_v15 = vmul.f32 -1.442695, %v1009_v21 }
 0x295   : > { %v4623_v34 = vpop.eup %4622  ;;  %4630 = vrcp.f32 %v6977_v54  ;;  %v6994_v23 = vmul.f32 -1.442695, %v744_v22  ;;  %v3099_v16 = vsel %vm6986_vm15, %v6948_v55, %v3095_v62  ;;  %vm7000_vm2 = vcmp.eq.f32.partialorder %v3115_v2, 8.507059e+37 }
 0x296   : > { %v4625_v42 = vpop.eup %4624  ;;  %v3107_v0 = vmul.f32 %v4623_v34, %v6957_v45  ;;  %v3118_v47 = vor.u32 1.1754944e-38, %v3117_v5  ;;  %4632 = vpow2.f32 %v4063_v59  ;;  %v3130_v11 = vand.u32 2147483647, %v6970_v13 }
 0x297   : > { %v3132_v31 = vand.u32 2147483648, %v6970_v13  ;;  %v7006_v20 = vadd.f32 1.0, %v4619_v14  ;;  %v7008_v51 = vadd.f32 1.0, %v4621_v32  ;;  %v3145_v27 = vand.u32 2147483647, %v6977_v54 }
 0x298   : > { %v3108_v28 = vsub.f32 1.0, %v3107_v0  ;;  %4634 = vpow2.f32 %v4064_v60  ;;  %v7011_v36 = vmul.f32 -1.442695, %v833_v6  ;;  %vm3126_vm3 = vweird.f32 %v6970_v13 }
 0x299   : > { %v4627_v29 = vpop.eup %4626  ;;  %v3147_v3 = vand.u32 2147483648, %v6977_v54  ;;  %4636 = vrcp.f32 %v7006_v20  ;;  %v7016_v56 = vadd.f32 1.0, %v4625_v42  ;;  %v3104_v12 = vsel %vm6973_vm14, %v3103_v19, %v3099_v16 }
 0x29a   : > { %v4629_v48 = vpop.eup %4628  ;;  %v3109_v53 = vmul.f32 %v4623_v34, %v3108_v28  ;;  %vm3112_vm4 = vweird.f32 %v4623_v34  ;;  %4638 = vrcp.f32 %v7008_v51  ;;  %vm7022_vm5 = vcmp.eq.f32.partialorder %v3130_v11, 8.507059e+37 }
 0x29b   : > { %v4631_v57 = vpop.eup %4630  ;;  %v3122_v33 = vmul.f32 %v4629_v48, %v6970_v13  ;;  %v3133_v10 = vor.u32 1.1754944e-38, %v3132_v31  ;;  %vm3141_vm6 = vweird.f32 %v6977_v54  ;;  %vm7028_vm0 = vcmp.eq.f32.partialorder %v3145_v27, 8.507059e+37  ;;  %vm3113_vm7 = vmor %vm3111_vm1, %vm3112_vm4 }
 0x29c   : > { %v4633_v30 = vpop.eup %4632  ;;  %v3110_v55 = vadd.f32 %v4623_v34, %v3109_v53  ;;  %v3137_v52 = vmul.f32 %v4631_v57, %v6977_v54  ;;  %v7032_v35 = vadd.f32 1.0, %v4627_v29  ;;  %v3148_v4 = vor.u32 1.1754944e-38, %v3147_v3 }
 0x29d   : > { %v3123_v41 = vsub.f32 1.0, %v3122_v33  ;;  %v3160_v24 = vand.u32 2147483647, %v7006_v20  ;;  %4640 = vrcp.f32 %v7016_v56  ;;  %vm3156_vm8 = vweird.f32 %v7006_v20 }
 0x29e   : > { %v4635_v58 = vpop.eup %4634  ;;  %v3114_v17 = vsel %vm3113_vm7, %v4623_v34, %v3110_v55  ;;  %v3138_v38 = vsub.f32 1.0, %v3137_v52  ;;  %v3162_v61 = vand.u32 2147483648, %v7006_v20  ;;  %vm3127_vm9 = vweird.f32 %v4629_v48  ;;  %v922_v55 = vpop.f32.mrf.mxu2 }
 0x29f   : > { %v4637_v1 = vpop.eup %4636  ;;  %v3119_v44 = vsel %vm7000_vm2, %v3118_v47, %v3114_v17  ;;  %v3124_v45 = vmul.f32 %v4629_v48, %v3123_v41  ;;  %vm3171_vm10 = vweird.f32 %v7008_v51  ;;  %vm3142_vm11 = vweird.f32 %v4631_v57  ;;  %vm3128_vm13 = vmor %vm3126_vm3, %vm3127_vm9 }
 0x2a0   : > { %v4639_v37 = vpop.eup %4638  ;;  %v3503_v50 = vpack.c.bf16 %v3119_v44, %v3104_v12  ;;  %v3139_v26 = vmul.f32 %v4631_v57, %v3138_v38  ;;  %v3152_v18 = vmul.f32 %v4637_v1, %v7006_v20  ;;  %vm7044_vm12 = vcmp.eq.f32.partialorder %v3160_v24, 8.507059e+37  ;;  %vm3143_vm14 = vmor %vm3141_vm6, %vm3142_vm11 }
 0x2a1   : > { %v3125_v63 = vadd.f32 %v4629_v48, %v3124_v45  ;;  %v3167_v59 = vmul.f32 %v4639_v37, %v7008_v51  ;;  %v3175_v39 = vand.u32 2147483647, %v7008_v51  ;;  %v3163_v2 = vor.u32 1.1754944e-38, %v3162_v61 }
 0x2a2   : > { %3567 = vst [vmem:[%s5101_s20 + $0x1a0] sm:$0xff] %v3503_v50  ;;  %v3140_v8 = vadd.f32 %v4631_v57, %v3139_v26  ;;  %v3153_v62 = vsub.f32 1.0, %v3152_v18  ;;  %4642 = vrcp.f32 %v7032_v35  ;;  %vm3157_vm15 = vweird.f32 %v4637_v1 }
 0x2a3   : > { %v7054_v5 = vpop.eup %4640  ;;  %v3129_v21 = vsel %vm3128_vm13, %v4629_v48, %v3125_v63  ;;  %v3168_v22 = vsub.f32 1.0, %v3167_v59  ;;  %v3177_v14 = vand.u32 2147483648, %v7008_v51  ;;  %vm3172_vm1 = vweird.f32 %v4639_v37  ;;  %vm3158_vm3 = vmor %vm3156_vm8, %vm3157_vm15 }
 0x2a4   : > { %v3134_v9 = vsel %vm7022_vm5, %v3133_v10, %v3129_v21  ;;  %v3144_v13 = vsel %vm3143_vm14, %v4631_v57, %v3140_v8  ;;  %v3154_v32 = vmul.f32 %v4637_v1, %v3153_v62  ;;  %v3182_v19 = vmul.f32 %v7054_v5, %v7016_v56  ;;  %vm3173_vm4 = vmor %vm3171_vm10, %vm3172_vm1 }
 0x2a5   : > { %v3149_v60 = vsel %vm7028_vm0, %v3148_v4, %v3144_v13  ;;  %v3169_v34 = vmul.f32 %v4639_v37, %v3168_v22  ;;  %vm7065_vm2 = vcmp.eq.f32.partialorder %v3175_v39, 8.507059e+37  ;;  %v3190_v16 = vand.u32 2147483647, %v7016_v56 }
 0x2a6   : > { %v3504_v25 = vpack.c.bf16 %v3149_v60, %v3134_v9  ;;  %v3155_v6 = vadd.f32 %v4637_v1, %v3154_v32  ;;  %v3183_v42 = vsub.f32 1.0, %v3182_v19  ;;  %v3178_v7 = vor.u32 1.1754944e-38, %v3177_v14 }
 0x2a7   : > { %v3170_v0 = vadd.f32 %v4639_v37, %v3169_v34  ;;  %v7073_v47 = vadd.f32 1.0, %v4633_v30  ;;  %4644 = vpow2.f32 %v6980_v40  ;;  %v7080_v27 = vadd.f32 1.0, %v4635_v58  ;;  %v1011_v34 = vpop.f32.mrf.mxu3 }
 0x2a8   : > { %v4643_v11 = vpop.eup %4642  ;;  %3568 = vst [vmem:[%s5101_s20 + $0x1a8] sm:$0xff] %v3504_v25  ;;  %v3159_v31 = vsel %vm3158_vm3, %v4637_v1, %v3155_v6  ;;  %v3184_v28 = vmul.f32 %v7054_v5, %v3183_v42  ;;  %4646 = vpow2.f32 %v6992_v15  ;;  %vm3187_vm5 = vweird.f32 %v7054_v5 }
 0x2a9   : > { %v3164_v20 = vsel %vm7044_vm12, %v3163_v2, %v3159_v31  ;;  %v3174_v29 = vsel %vm3173_vm4, %v4639_v37, %v3170_v0  ;;  %v3197_v40 = vmul.f32 %v4643_v11, %v7032_v35  ;;  %v3192_v48 = vand.u32 2147483648, %v7016_v56 }
 0x2aa   : > { %v3179_v3 = vsel %vm7065_vm2, %v3178_v7, %v3174_v29  ;;  %v3185_v51 = vadd.f32 %v7054_v5, %v3184_v28  ;;  %4648 = vrcp.f32 %v7073_v47  ;;  %vm3186_vm6 = vweird.f32 %v7016_v56 }
 0x2ab   : > { %v3505_v12 = vpack.c.bf16 %v3179_v3, %v3164_v20  ;;  %v3198_v15 = vsub.f32 1.0, %v3197_v40  ;;  %v3207_v53 = vand.u32 2147483648, %v7032_v35  ;;  %vm7094_vm0 = vmor %vm3186_vm6, %vm3187_vm5  ;;  %vm7098_vm7 = vcmp.eq.f32.partialorder %v3190_v16, 8.507059e+37 }
 0x2ac   : > { %4650 = vrcp.f32 %v7080_v27  ;;  %v3189_v10 = vsel %vm7094_vm0, %v7054_v5, %v3185_v51  ;;  %vm3202_vm8 = vweird.f32 %v4643_v11  ;;  %v3205_v30 = vand.u32 2147483647, %v7032_v35 }
 0x2ad   : > { %v4645_v49 = vpop.eup %4644  ;;  %3569 = vst [vmem:[%s5101_s20 + $0x1b0] sm:$0xff] %v3505_v12  ;;  %v3199_v56 = vmul.f32 %v4643_v11, %v3198_v15  ;;  %v3193_v43 = vor.u32 1.1754944e-38, %v3192_v48  ;;  %vm3201_vm9 = vweird.f32 %v7032_v35  ;;  %4652 = vpow2.f32 %v6994_v23  ;;  %v836_v15 = vpop.f32.mrf.mxu1 }
 0x2ae   : > { %v4647_v52 = vpop.eup %4646  ;;  %v7109_v41 = vadd.f32 1.0, %v4645_v49  ;;  %v3208_v24 = vor.u32 1.1754944e-38, %v3207_v53  ;;  %4654 = vpow2.f32 %v7011_v36  ;;  %vm3203_vm10 = vmor %vm3201_vm9, %vm3202_vm8  ;;  %v3220_v61 = vand.u32 2147483647, %v7073_v47 }
 0x2af   : > { %v3200_v4 = vadd.f32 %v4643_v11, %v3199_v56  ;;  %v7112_v58 = vadd.f32 1.0, %v4647_v52  ;;  %v3194_v38 = vsel %vm7098_vm7, %v3193_v43, %v3189_v10  ;;  %v4069_v35 = vmul.f32 -1.442695, %v922_v55 }
 0x2b0   : > { %v4649_v17 = vpop.eup %4648  ;;  %4656 = vrcp.f32 %v7109_v41  ;;  %vm3206_vm11 = vcmp.eq.f32.partialorder %v3205_v30, 8.507059e+37  ;;  %v3222_v44 = vand.u32 2147483648, %v7073_v47  ;;  %v3235_v36 = vand.u32 2147483647, %v7080_v27 }
 0x2b1   : > { %v3204_v1 = vsel %vm3203_vm10, %v4643_v11, %v3200_v4  ;;  %v3212_v23 = vmul.f32 %v4649_v17, %v7073_v47  ;;  %v3237_v50 = vand.u32 2147483648, %v7080_v27  ;;  %4658 = vrcp.f32 %v7112_v58  ;;  %v747_v11 = vpop.f32.mrf.mxu0 }
 0x2b2   : > { %v4651_v45 = vpop.eup %4650  ;;  %v3209_v37 = vsel %vm3206_vm11, %v3208_v24, %v3204_v1  ;;  %vm3216_vm12 = vweird.f32 %v7073_v47  ;;  %vm7126_vm13 = vcmp.eq.f32.partialorder %v3220_v61, 8.507059e+37  ;;  %vm3231_vm14 = vweird.f32 %v7080_v27 }
 0x2b3   : > { %v3506_v26 = vpack.c.bf16 %v3209_v37, %v3194_v38  ;;  %v3213_v18 = vsub.f32 1.0, %v3212_v23  ;;  %v3227_v63 = vmul.f32 %v4651_v45, %v7080_v27  ;;  %v4653_v46 = vpop.eup %4652  ;;  %v3250_v39 = vand.u32 2147483647, %v7109_v41 }
 0x2b4   : > { %4660 = vpow2.f32 %v4069_v35  ;;  %v4655_v8 = vpop.eup %4654  ;;  %vm3217_vm15 = vweird.f32 %v4649_v17  ;;  %v7133_v5 = vadd.f32 1.0, %v4653_v46  ;;  %v3223_v22 = vor.u32 1.1754944e-38, %v3222_v44  ;;  %v925_v35 = vpop.f32.mrf.mxu2 }
 0x2b5   : > { %3570 = vst [vmem:[%s5101_s20 + $0x1b8] sm:$0xff] %v3506_v26  ;;  %v3214_v62 = vmul.f32 %v4649_v17, %v3213_v18  ;;  %v3228_v2 = vsub.f32 1.0, %v3227_v63  ;;  %vm3232_vm1 = vweird.f32 %v4651_v45  ;;  %vm7135_vm2 = vcmp.eq.f32.partialorder %v3235_v36, 8.507059e+37  ;;  %vm3218_vm3 = vmor %vm3216_vm12, %vm3217_vm15  ;;  %v1014_v44 = vpop.f32.mrf.mxu3 }
 0x2b6   : > { %v4657_v21 = vpop.eup %4656  ;;  %v3238_v9 = vor.u32 1.1754944e-38, %v3237_v50  ;;  %v7140_v60 = vadd.f32 1.0, %v4655_v8  ;;  %vm3246_vm4 = vweird.f32 %v7109_v41  ;;  %vm7145_vm5 = vcmp.eq.f32.partialorder %v3250_v39, 8.507059e+37  ;;  %vm3233_vm6 = vmor %vm3231_vm14, %vm3232_vm1 }
 0x2b7   : > { %v3215_v13 = vadd.f32 %v4649_v17, %v3214_v62  ;;  %v3229_v32 = vmul.f32 %v4651_v45, %v3228_v2  ;;  %v3242_v19 = vmul.f32 %v4657_v21, %v7109_v41  ;;  %v4659_v54 = vpop.eup %4658  ;;  %v3252_v6 = vand.u32 2147483648, %v7109_v41 }
 0x2b8   : > { %4662 = vrcp.f32 %v7133_v5  ;;  %v3257_v7 = vmul.f32 %v4659_v54, %v7112_v58  ;;  %vm3247_vm0 = vweird.f32 %v4657_v21  ;;  %v3265_v28 = vand.u32 2147483647, %v7112_v58 }
 0x2b9   : > { %v3219_v42 = vsel %vm3218_vm3, %v4649_v17, %v3215_v13  ;;  %v3230_v16 = vadd.f32 %v4651_v45, %v3229_v32  ;;  %v3243_v0 = vsub.f32 1.0, %v3242_v19  ;;  %v4070_v20 = vmul.f32 -1.442695, %v1011_v34  ;;  %vm3248_vm8 = vmor %vm3246_vm4, %vm3247_vm0  ;;  %v749_v62 = vpop.f32.mrf.mxu0 }
 0x2ba   : > { %v4661_v31 = vpop.eup %4660  ;;  %v3224_v47 = vsel %vm7126_vm13, %v3223_v22, %v3219_v42  ;;  %v3258_v3 = vsub.f32 1.0, %v3257_v7  ;;  %4664 = vrcp.f32 %v7140_v60  ;;  %vm3262_vm7 = vweird.f32 %v4659_v54 }
 0x2bb   : > { %v3234_v29 = vsel %vm3233_vm6, %v4651_v45, %v3230_v16  ;;  %v3244_v40 = vmul.f32 %v4657_v21, %v3243_v0  ;;  %v3267_v48 = vand.u32 2147483648, %v7112_v58  ;;  %v4071_v12 = vmul.f32 -1.442695, %v747_v11 }
 0x2bc   : > { %v3239_v51 = vsel %vm7135_vm2, %v3238_v9, %v3234_v29  ;;  %v3259_v57 = vmul.f32 %v4659_v54, %v3258_v3  ;;  %v7162_v33 = vadd.f32 1.0, %v4661_v31  ;;  %v3253_v10 = vor.u32 1.1754944e-38, %v3252_v6 }
 0x2bd   : > { %v3507_v27 = vpack.c.bf16 %v3239_v51, %v3224_v47  ;;  %v3245_v53 = vadd.f32 %v4657_v21, %v3244_v40  ;;  %vm3261_vm9 = vweird.f32 %v7112_v58  ;;  %vm7168_vm10 = vcmp.eq.f32.partialorder %v3265_v28, 8.507059e+37  ;;  %v927_v40 = vpop.f32.mrf.mxu2  ;;  %v1016_v3 = vpop.f32.mrf.mxu3 }
 0x2be   : > { %v4663_v49 = vpop.eup %4662  ;;  %4666 = vpow2.f32 %v4070_v20  ;;  %v3260_v55 = vadd.f32 %v4659_v54, %v3259_v57  ;;  %v4072_v43 = vmul.f32 -1.442695, %v836_v15  ;;  %vm3263_vm11 = vmor %vm3261_vm9, %vm3262_vm7  ;;  %v3268_v41 = vor.u32 1.1754944e-38, %v3267_v48 }
 0x2bf   : > { %3571 = vst [vmem:[%s5101_s20 + $0x1c0] sm:$0xff] %v3507_v27  ;;  %v3249_v30 = vsel %vm3248_vm8, %v4657_v21, %v3245_v53  ;;  %v3272_v52 = vmul.f32 %v4663_v49, %v7133_v5  ;;  %v3280_v24 = vand.u32 2147483647, %v7133_v5  ;;  %4668 = vrcp.f32 %v7162_v33 }
 0x2c0   : > { %v3254_v4 = vsel %vm7145_vm5, %v3253_v10, %v3249_v30  ;;  %v4665_v58 = vpop.eup %4664  ;;  %v3264_v17 = vsel %vm3263_vm11, %v4659_v54, %v3260_v55  ;;  %v3282_v61 = vand.u32 2147483648, %v7133_v5  ;;  %4670 = vpow2.f32 %v4071_v12 }
 0x2c1   : > { %v3273_v38 = vsub.f32 1.0, %v3272_v52  ;;  %v3269_v1 = vsel %vm7168_vm10, %v3268_v41, %v3264_v17  ;;  %vm3276_vm12 = vweird.f32 %v7133_v5  ;;  %v3287_v23 = vmul.f32 %v4665_v58, %v7140_v60 }
 0x2c2   : > { %v3508_v45 = vpack.c.bf16 %v3269_v1, %v3254_v4  ;;  %vm3277_vm13 = vweird.f32 %v4663_v49  ;;  %4672 = vpow2.f32 %v4072_v43  ;;  %vm7184_vm14 = vcmp.eq.f32.partialorder %v3280_v24, 8.507059e+37 }
 0x2c3   : > { %v3274_v37 = vmul.f32 %v4663_v49, %v3273_v38  ;;  %v3288_v26 = vsub.f32 1.0, %v3287_v23  ;;  %v3297_v18 = vand.u32 2147483648, %v7140_v60  ;;  %v4073_v63 = vmul.f32 -1.442695, %v925_v35  ;;  %vm7196_vm15 = vmor %vm3276_vm12, %vm3277_vm13 }
 0x2c4   : > { %v4667_v36 = vpop.eup %4666  ;;  %3572 = vst [vmem:[%s5101_s20 + $0x1c8] sm:$0xff] %v3508_v45  ;;  %v3283_v59 = vor.u32 1.1754944e-38, %v3282_v61  ;;  %v4074_v8 = vmul.f32 -1.442695, %v1014_v44  ;;  %vm3292_vm1 = vweird.f32 %v4665_v58  ;;  %v3295_v14 = vand.u32 2147483647, %v7140_v60 }
 0x2c5   : > { %v3275_v46 = vadd.f32 %v4663_v49, %v3274_v37  ;;  %v7190_v39 = vadd.f32 1.0, %v4667_v36  ;;  %v7192_v2 = vpop.eup %4668  ;;  %v3289_v22 = vmul.f32 %v4665_v58, %v3288_v26  ;;  %4674 = vpow2.f32 %v4073_v63 }
 0x2c6   : > { %v4671_v9 = vpop.eup %4670  ;;  %vm3291_vm2 = vweird.f32 %v7140_v60  ;;  %v3302_v32 = vmul.f32 %v7192_v2, %v7162_v33  ;;  %v3298_v19 = vor.u32 1.1754944e-38, %v3297_v18  ;;  %v3310_v34 = vand.u32 2147483647, %v7162_v33  ;;  %v838_v60 = vpop.f32.mrf.mxu1 }
 0x2c7   : > { %v3279_v13 = vsel %vm7196_vm15, %v4663_v49, %v3275_v46  ;;  %4676 = vrcp.f32 %v7190_v39  ;;  %v3290_v5 = vadd.f32 %v4665_v58, %v3289_v22  ;;  %v4075_v54 = vmul.f32 -1.442695, %v749_v62  ;;  %vm3293_vm3 = vmor %vm3291_vm2, %vm3292_vm1 }
 0x2c8   : > { %v4673_v25 = vpop.eup %4672  ;;  %v3284_v6 = vsel %vm7184_vm14, %v3283_v59, %v3279_v13  ;;  %v3303_v42 = vsub.f32 1.0, %v3302_v32  ;;  %v7210_v16 = vadd.f32 1.0, %v4671_v9  ;;  %4678 = vpow2.f32 %v4074_v8 }
 0x2c9   : > { %v3294_v0 = vsel %vm3293_vm3, %v4665_v58, %v3290_v5  ;;  %vm3296_vm4 = vcmp.eq.f32.partialorder %v3295_v14, 8.507059e+37  ;;  %v3312_v7 = vand.u32 2147483648, %v7162_v33  ;;  %v7213_v11 = vadd.f32 1.0, %v4673_v25 }
 0x2ca   : > { %v3299_v31 = vsel %vm3296_vm4, %v3298_v19, %v3294_v0  ;;  %v3304_v47 = vmul.f32 %v7192_v2, %v3303_v42  ;;  %4680 = vrcp.f32 %v7210_v16  ;;  %vm3306_vm5 = vweird.f32 %v7162_v33 }
 0x2cb   : > { %v4675_v28 = vpop.eup %4674  ;;  %v3509_v20 = vpack.c.bf16 %v3299_v31, %v3284_v6  ;;  %4682 = vpow2.f32 %v4075_v54  ;;  %v4076_v29 = vmul.f32 -1.442695, %v838_v60  ;;  %vm7218_vm6 = vcmp.eq.f32.partialorder %v3310_v34, 8.507059e+37 }
 0x2cc   : > { %v3325_v12 = vand.u32 2147483647, %v7190_v39  ;;  %v3327_v15 = vand.u32 2147483648, %v7190_v39  ;;  %4684 = vrcp.f32 %v7213_v11  ;;  %v3305_v27 = vadd.f32 %v7192_v2, %v3304_v47 }
 0x2cd   : > { %v4677_v51 = vpop.eup %4676  ;;  %3573 = vst [vmem:[%s5101_s20 + $0x1d0] sm:$0xff] %v3509_v20  ;;  %vm3307_vm0 = vweird.f32 %v7192_v2  ;;  %v3313_v53 = vor.u32 1.1754944e-38, %v3312_v7  ;;  %vm3321_vm7 = vweird.f32 %v7190_v39  ;;  %v7230_v10 = vadd.f32 1.0, %v4675_v28 }
 0x2ce   : > { %v3317_v57 = vmul.f32 %v4677_v51, %v7190_v39  ;;  %v4679_v49 = vpop.eup %4678  ;;  %v4077_v56 = vmul.f32 -1.442695, %v927_v40  ;;  %v7232_v30 = vmul.f32 -1.442695, %v1016_v3  ;;  %v3340_v52 = vand.u32 2147483647, %v7210_v16  ;;  %vm7239_vm8 = vmor %vm3306_vm5, %vm3307_vm0 }
 0x2cf   : > { %v7235_v43 = vadd.f32 1.0, %v4679_v49  ;;  %4686 = vpow2.f32 %v4076_v29  ;;  %vm7243_vm9 = vcmp.eq.f32.partialorder %v3325_v12, 8.507059e+37  ;;  %v3328_v58 = vor.u32 1.1754944e-38, %v3327_v15 }
 0x2d0   : > { %v3318_v55 = vsub.f32 1.0, %v3317_v57  ;;  %v4681_v4 = vpop.eup %4680  ;;  %vm3336_vm10 = vweird.f32 %v7210_v16  ;;  %4688 = vrcp.f32 %v7230_v10  ;;  %v3309_v38 = vsel %vm7239_vm8, %v7192_v2, %v3305_v27 }
 0x2d1   : > { %v4683_v17 = vpop.eup %4682  ;;  %vm3322_vm11 = vweird.f32 %v4677_v51  ;;  %v3332_v33 = vmul.f32 %v4681_v4, %v7210_v16  ;;  %v3342_v1 = vand.u32 2147483648, %v7210_v16  ;;  %vm3351_vm12 = vweird.f32 %v7213_v11 }
 0x2d2   : > { %v3319_v61 = vmul.f32 %v4677_v51, %v3318_v55  ;;  %v4685_v35 = vpop.eup %4684  ;;  %v3355_v23 = vand.u32 2147483647, %v7213_v11  ;;  %4690 = vrcp.f32 %v7235_v43  ;;  %vm7257_vm13 = vcmp.eq.f32.partialorder %v3340_v52, 8.507059e+37  ;;  %vm3323_vm14 = vmor %vm3321_vm7, %vm3322_vm11 }
 0x2d3   : > { %v3333_v45 = vsub.f32 1.0, %v3332_v33  ;;  %v3347_v36 = vmul.f32 %v4685_v35, %v7213_v11  ;;  %v3314_v50 = vsel %vm7218_vm6, %v3313_v53, %v3309_v38  ;;  %vm3337_vm15 = vweird.f32 %v4681_v4 }
 0x2d4   : > { %v3320_v44 = vadd.f32 %v4677_v51, %v3319_v61  ;;  %v3357_v26 = vand.u32 2147483648, %v7213_v11  ;;  %v7267_v18 = vadd.f32 1.0, %v4683_v17  ;;  %4692 = vpow2.f32 %v4077_v56  ;;  %vm3338_vm2 = vmor %vm3336_vm10, %vm3337_vm15 }
 0x2d5   : > { %v4687_v63 = vpop.eup %4686  ;;  %v3334_v59 = vmul.f32 %v4681_v4, %v3333_v45  ;;  %v3348_v8 = vsub.f32 1.0, %v3347_v36  ;;  %v3343_v21 = vor.u32 1.1754944e-38, %v3342_v1  ;;  %vm3352_vm1 = vweird.f32 %v4685_v35 }
 0x2d6   : > { %v3324_v46 = vsel %vm3323_vm14, %v4677_v51, %v3320_v44  ;;  %v4689_v62 = vpop.eup %4688  ;;  %4694 = vrcp.f32 %v7267_v18  ;;  %vm7276_vm3 = vcmp.eq.f32.partialorder %v3355_v23, 8.507059e+37  ;;  %v3358_v5 = vor.u32 1.1754944e-38, %v3357_v26  ;;  %vm3353_vm5 = vmor %vm3351_vm12, %vm3352_vm1 }
 0x2d7   : > { %v3329_v2 = vsel %vm7243_vm9, %v3328_v58, %v3324_v46  ;;  %v3335_v22 = vadd.f32 %v4681_v4, %v3334_v59  ;;  %v3349_v14 = vmul.f32 %v4685_v35, %v3348_v8  ;;  %v3362_v9 = vmul.f32 %v4689_v62, %v7230_v10 }
 0x2d8   : > { %v3510_v39 = vpack.c.bf16 %v3329_v2, %v3314_v50  ;;  %v4691_v13 = vpop.eup %4690  ;;  %vm3366_vm4 = vweird.f32 %v7230_v10  ;;  %v7281_v19 = vadd.f32 1.0, %v4687_v63  ;;  %vm3367_vm6 = vweird.f32 %v4689_v62 }
 0x2d9   : > { %v3339_v34 = vsel %vm3338_vm2, %v4681_v4, %v3335_v22  ;;  %v3350_v54 = vadd.f32 %v4685_v35, %v3349_v14  ;;  %v3363_v25 = vsub.f32 1.0, %v3362_v9  ;;  %v3377_v6 = vmul.f32 %v4691_v13, %v7235_v43  ;;  %vm3368_vm7 = vmor %vm3366_vm4, %vm3367_vm6 }
 0x2da   : > { %3574 = vst [vmem:[%s5101_s20 + $0x1d8] sm:$0xff] %v3510_v39  ;;  %v3344_v42 = vsel %vm7257_vm13, %v3343_v21, %v3339_v34  ;;  %v3370_v16 = vand.u32 2147483647, %v7230_v10  ;;  %v3372_v60 = vand.u32 2147483648, %v7230_v10  ;;  %v4693_v0 = vpop.eup %4692  ;;  %4696 = vrcp.f32 %v7281_v19 }
 0x2db   : > { %v3354_v7 = vsel %vm3353_vm5, %v4685_v35, %v3350_v54  ;;  %v3364_v31 = vmul.f32 %v4689_v62, %v3363_v25  ;;  %v3378_v47 = vsub.f32 1.0, %v3377_v6  ;;  %vm3382_vm0 = vweird.f32 %v4691_v13 }
 0x2dc   : > { %v4695_v28 = vpop.eup %4694  ;;  %v3359_v20 = vsel %vm7276_vm3, %v3358_v5, %v3354_v7  ;;  %v3385_v11 = vand.u32 2147483647, %v7235_v43  ;;  %v3387_v29 = vand.u32 2147483648, %v7235_v43  ;;  %vm3371_vm8 = vcmp.eq.f32.partialorder %v3370_v16, 8.507059e+37 }
 0x2dd   : > { %v3511_v40 = vpack.c.bf16 %v3359_v20, %v3344_v42  ;;  %v3365_v3 = vadd.f32 %v4689_v62, %v3364_v31  ;;  %v3379_v51 = vmul.f32 %v4691_v13, %v3378_v47  ;;  %v3392_v48 = vmul.f32 %v4695_v28, %v7267_v18 }
 0x2de   : > { %v3373_v12 = vor.u32 1.1754944e-38, %v3372_v60  ;;  %vm3381_vm9 = vweird.f32 %v7235_v43  ;;  %v7302_v15 = vadd.f32 1.0, %v4693_v0  ;;  %4698 = vpow2.f32 %v7232_v30 }
 0x2df   : > { %3575 = vst [vmem:[%s5101_s20 + $0x1e0] sm:$0xff] %v3511_v40  ;;  %v3369_v27 = vsel %vm3368_vm7, %v4689_v62, %v3365_v3  ;;  %v3380_v53 = vadd.f32 %v4691_v13, %v3379_v51  ;;  %v3393_v57 = vsub.f32 1.0, %v3392_v48  ;;  %vm3383_vm10 = vmor %vm3381_vm9, %vm3382_vm0  ;;  %v3388_v56 = vor.u32 1.1754944e-38, %v3387_v29 }
 0x2e0   : > { %v3374_v49 = vsel %vm3371_vm8, %v3373_v12, %v3369_v27  ;;  %4700 = vrcp.f32 %v7302_v15  ;;  %v4697_v10 = vpop.eup %4696  ;;  %vm3386_vm11 = vcmp.eq.f32.partialorder %v3385_v11, 8.507059e+37  ;;  %vm3397_vm12 = vweird.f32 %v4695_v28 }
 0x2e1   : > { %v3384_v55 = vsel %vm3383_vm10, %v4691_v13, %v3380_v53  ;;  %v3394_v52 = vmul.f32 %v4695_v28, %v3393_v57  ;;  %v3407_v4 = vmul.f32 %v4697_v10, %v7281_v19  ;;  %v3402_v58 = vand.u32 2147483648, %v7267_v18 }
 0x2e2   : > { %v3389_v43 = vsel %vm3386_vm11, %v3388_v56, %v3384_v55  ;;  %vm3396_vm13 = vweird.f32 %v7267_v18  ;;  %v3400_v30 = vand.u32 2147483647, %v7267_v18  ;;  %v3415_v61 = vand.u32 2147483647, %v7281_v19 }
 0x2e3   : > { %v3512_v41 = vpack.c.bf16 %v3389_v43, %v3374_v49  ;;  %v3395_v24 = vadd.f32 %v4695_v28, %v3394_v52  ;;  %v3408_v17 = vsub.f32 1.0, %v3407_v4  ;;  %vm3398_vm14 = vmor %vm3396_vm13, %vm3397_vm12  ;;  %v3417_v33 = vand.u32 2147483648, %v7281_v19 }
 0x2e4   : > { %v4699_v38 = vpop.eup %4698  ;;  %vm3412_vm15 = vweird.f32 %v4697_v10  ;;  %v3403_v45 = vor.u32 1.1754944e-38, %v3402_v58  ;;  %vm3401_vm1 = vcmp.eq.f32.partialorder %v3400_v30, 8.507059e+37  ;;  %vm3411_vm2 = vweird.f32 %v7281_v19 }
 0x2e5   : > { %3576 = vst [vmem:[%s5101_s20 + $0x1e8] sm:$0xff] %v3512_v41  ;;  %v3399_v1 = vsel %vm3398_vm14, %v4695_v28, %v3395_v24  ;;  %v3409_v23 = vmul.f32 %v4697_v10, %v3408_v17  ;;  %v1530_v44 = vadd.f32 1.0, %v4699_v38  ;;  %vm3413_vm3 = vmor %vm3411_vm2, %vm3412_vm15  ;;  %v3418_v26 = vor.u32 1.1754944e-38, %v3417_v33 }
 0x2e6   : > { %v4701_v35 = vpop.eup %4700  ;;  %v3404_v50 = vsel %vm3401_vm1, %v3403_v45, %v3399_v1  ;;  %vm3416_vm4 = vcmp.eq.f32.partialorder %v3415_v61, 8.507059e+37  ;;  %v3432_v39 = vand.u32 2147483648, %v7302_v15  ;;  %vm3426_vm6 = vweird.f32 %v7302_v15 }
 0x2e7   : > { %v3422_v37 = vmul.f32 %v4701_v35, %v7302_v15  ;;  %v3410_v36 = vadd.f32 %v4697_v10, %v3409_v23  ;;  %4702 = vrcp.f32 %v1530_v44  ;;  %vm3427_vm5 = vweird.f32 %v4701_v35 }
 0x2e8   : > { %v3430_v22 = vand.u32 2147483647, %v7302_v15  ;;  %vm3428_vm0 = vmor %vm3426_vm6, %vm3427_vm5  ;;  %v3447_v9 = vand.u32 2147483648, %v1530_v44  ;;  %v3445_v5 = vand.u32 2147483647, %v1530_v44  ;;  %v3433_v19 = vor.u32 1.1754944e-38, %v3432_v39 }
 0x2e9   : > { %v3423_v18 = vsub.f32 1.0, %v3422_v37  ;;  %v3414_v63 = vsel %vm3413_vm3, %v4697_v10, %v3410_v36  ;;  %vm3441_vm9 = vweird.f32 %v1530_v44 }
 0x2ea   : > { %v3419_v46 = vsel %vm3416_vm4, %v3418_v26, %v3414_v63  ;;  %vm3431_vm8 = vcmp.eq.f32.partialorder %v3430_v22, 8.507059e+37  ;;  %v3448_v25 = vor.u32 1.1754944e-38, %v3447_v9  ;;  %vm3446_vm11 = vcmp.eq.f32.partialorder %v3445_v5, 8.507059e+37 }
 0x2eb   : > { %v3424_v59 = vmul.f32 %v4701_v35, %v3423_v18  ;;  %v3513_v8 = vpack.c.bf16 %v3419_v46, %v3404_v50 }
 0x2ed   : > { %v4703_v62 = vpop.eup %4702  ;;  %3577 = vst [vmem:[%s5101_s20 + $0x1f0] sm:$0xff] %v3513_v8  ;;  %v3425_v2 = vadd.f32 %v4701_v35, %v3424_v59 }
 0x2ee   : > { %v3437_v21 = vmul.f32 %v4703_v62, %v1530_v44  ;;  %vm3442_vm7 = vweird.f32 %v4703_v62 }
 0x2ef   : > { %v3429_v13 = vsel %vm3428_vm0, %v4701_v35, %v3425_v2  ;;  %vm3443_vm10 = vmor %vm3441_vm9, %vm3442_vm7 }
 0x2f0   : > { %v3438_v14 = vsub.f32 1.0, %v3437_v21  ;;  %v3434_v54 = vsel %vm3431_vm8, %v3433_v19, %v3429_v13 }
 0x2f2   : > { %v3439_v32 = vmul.f32 %v4703_v62, %v3438_v14 }
 0x2f4   : > { %v3440_v34 = vadd.f32 %v4703_v62, %v3439_v32 }
 0x2f6   : > { %v3444_v6 = vsel %vm3443_vm10, %v4703_v62, %v3440_v34 }
 0x2f7   : > { %v3449_v42 = vsel %vm3446_vm11, %v3448_v25, %v3444_v6 }
 0x2f8   : > { %v3514_v16 = vpack.c.bf16 %v3449_v42, %v3434_v54 }
 0x2fa   : > { %3578 = vst [vmem:[%s5101_s20 + $0x1f8] sm:$0xff] %v3514_v16 }
 0x2fb   : > { %4731 = shalt.err (!%p4728_p5)
}
 0x2fc   : > { %s4784_s8 = smov 256   ;;  %s4785_s15 = smov 16  }
 0x2fd   : > { %4135 = dma.vmem_to_hbm [thread:$0]  (%p4841_p4), %s3596_s12, 8192, %s3598_s27, %s3580_s28, %s4784_s8, %s4784_s8, %s4785_s15  }
 0x2fe PF: > { %p4141_p6 = scmp.ge.s32.totalorder %s4782_s14, 2  ;;  %s3612_s16 = sand.u32 1, %s4762_s9  }
 0x2ff   : > { %s3613_s18 = scalar_lea.sflag [#allocation3], %s3612_s16 }
 0x300   : > { %p4138_p7 = pnand %p4141_p6, %p4848_p8 }
 0x302   : > { %p4139_p9 = pneg %p4138_p7 }
 0x304   : > { %4757 = dma.done.wait (%p4139_p9), %s3613_s18, 8192  }
 0x305   : > { %4759 = vsyncadd (%p4139_p9), %s3613_s18, 4294959104  ;;  %s15_s14 = sadd.s32 1, %s4782_s14   ;;  %s7618_s9 = smov %s4766_s10 }
 0x306   : > { %p12_p10 = scmp.ge.s32.totalorder %s15_s14, 4   ;;  %s7619_s10 = smov %s4770_s11 }
 0x307   : > { %s7620_s11 = smov %s4854_s22  ;;  %s7621_s12 = smov %s4778_s13 }
 0x308   : > { %s7622_s13 = smov %s7624_s17  ;;  %14 = sbr.rel (!%p12_p10) target bundleno = 4 (0x4), region = 66 }
 0x30d   :  { %3619 = vsyncpa [#allocation3], 1 }
 0x30e   :  { %3621 = vsyncpa [#allocation3 + $0x1], 1 }

</bundles_post_ra>
